<compile_context>
chip_gen: v7x
topology: tpu7x:2x2x1
jax: 0.10.0
libtpu: 0.0.40
codegen_flags: <defaults>
</compile_context>

<pallas_src>
import functools

import numpy as np

import jax
import jax.numpy as jnp
from jax.experimental import pallas as pl
from jax.experimental.pallas import tpu as pltpu

LANE = 128  # output-channel padding target (lane-dense stores)


def _round_up(x, m):
    return (x + m - 1) // m * m


# ----------------------------------------------------------------------------
# Pallas kernels
# ----------------------------------------------------------------------------
def _conv_relu_pool_kernel(p_ref, w_ref, b_ref, o_ref, *, kk):
    """Fused conv(im2col-matmul) + bias + ReLU + max-pool.

    p_ref : (KK, TG, K)  im2col patches, grouped by pool-window position
    w_ref : (K, 128)     z-folded, lane-padded weight
    b_ref : (1, 128)     lane-padded bias (unscaled by z)
    o_ref : (TG, 128)    pooled output tile
    """
    w = w_ref[...].astype(jnp.bfloat16)
    b = b_ref[...]
    acc = None
    for p in range(kk):  # static unroll: KK in {1, 4, 9}
        y = jnp.dot(p_ref[p].astype(jnp.bfloat16), w,
                    preferred_element_type=jnp.float32) + b
        y = jnp.maximum(y, 0.0)                       # ReLU (commutes with max-pool)
        acc = y if acc is None else jnp.maximum(acc, y)
    o_ref[...] = acc.astype(o_ref.dtype)


def _fc_stack_kernel(x_ref, w1_ref, b1_ref, w2_ref, b2_ref, w3_ref, b3_ref, o_ref):
    """Fused fc1 -> ReLU -> fc2 -> fc3 (all weights VMEM-resident)."""
    h = jnp.dot(x_ref[...].astype(jnp.bfloat16), w1_ref[...].astype(jnp.bfloat16),
                preferred_element_type=jnp.float32) + b1_ref[...]
    h = jnp.maximum(h, 0.0)
    h = jnp.dot(h.astype(jnp.bfloat16), w2_ref[...].astype(jnp.bfloat16),
                preferred_element_type=jnp.float32) + b2_ref[...]
    h = jnp.dot(h.astype(jnp.bfloat16), w3_ref[...].astype(jnp.bfloat16),
                preferred_element_type=jnp.float32) + b3_ref[...]
    o_ref[...] = h.astype(o_ref.dtype)


# ----------------------------------------------------------------------------
# Pallas wrappers
# ----------------------------------------------------------------------------
def _conv_relu_pool_call(patches, w_pad, b_pad, tile_g):
    KK, Gp, K = patches.shape
    grid = (Gp // tile_g,)
    kern = functools.partial(_conv_relu_pool_kernel, kk=KK)
    return pl.pallas_call(
        kern,
        out_shape=jax.ShapeDtypeStruct((Gp, LANE), jnp.float32),
        grid_spec=pltpu.PrefetchScalarGridSpec(
            num_scalar_prefetch=0,
            grid=grid,
            in_specs=[
                pl.BlockSpec((KK, tile_g, K), lambda g: (0, g, 0)),
                pl.BlockSpec((K, LANE), lambda g: (0, 0)),
                pl.BlockSpec((1, LANE), lambda g: (0, 0)),
            ],
            out_specs=pl.BlockSpec((tile_g, LANE), lambda g: (g, 0)),
        ),
        compiler_params=pltpu.CompilerParams(
            dimension_semantics=("parallel",),
            vmem_limit_bytes=32 * 1024 * 1024,
        ),
    )(patches, w_pad, b_pad)


def _fc_stack_call(x, w1, b1, w2, b2, w3, b3):
    M = x.shape[0]
    spec = pl.BlockSpec(memory_space=pltpu.MemorySpace.VMEM)
    return pl.pallas_call(
        _fc_stack_kernel,
        out_shape=jax.ShapeDtypeStruct((M, LANE), jnp.float32),
        in_specs=[spec] * 7,
        out_specs=spec,
        compiler_params=pltpu.CompilerParams(vmem_limit_bytes=32 * 1024 * 1024),
    )(x, w1, b1, w2, b2, w3, b3)


# ----------------------------------------------------------------------------
# im2col glue (pool-window-position grouped)
# ----------------------------------------------------------------------------
def _pooled_im2col(x, pad, kpool, spool):
    """x: (N, H, W, Cin) -> patches (KK, G, K) with K = 9*Cin, G = N*Hp*Wp.

    Block p (= py*kpool + px) holds the im2col rows of the conv-output positions that
    are the p-th element of every pool window, ordered (n, ho, wo)."""
    N, H, W, Cin = x.shape
    xp = jnp.pad(x, ((0, 0), (pad, pad), (pad, pad), (0, 0)))
    Hc = H + 2 * pad - 2
    Wc = W + 2 * pad - 2
    # im2col features ordered (kh, kw, cin) to match HWIO weight flattening
    cols = [xp[:, i:i + Hc, j:j + Wc, :] for i in range(3) for j in range(3)]
    pfull = jnp.concatenate(cols, axis=-1)                    # (N, Hc, Wc, 9*Cin)
    if kpool == 1:
        Hp, Wp = Hc, Wc
        blocks = [pfull]
    else:
        Hp = (Hc - kpool) // spool + 1
        Wp = (Wc - kpool) // spool + 1
        blocks = [
            pfull[:, py:py + spool * (Hp - 1) + 1:spool,
                  px:px + spool * (Wp - 1) + 1:spool, :]
            for py in range(kpool) for px in range(kpool)
        ]
    G = N * Hp * Wp
    K = 9 * Cin
    patches = jnp.stack([b.reshape(G, K) for b in blocks], axis=0)   # (KK, G, K)
    return patches, (N, Hp, Wp), G, K


def _conv_stage(x, w_pad, b_pad, *, cout, pad, kpool, spool):
    """Eval-mode Conv2dGroupNJ + ReLU (+ optional max-pool) as one Pallas kernel."""
    patches, (N, Hp, Wp), G, K = _pooled_im2col(x, pad, kpool, spool)
    tile_g = 256 if G >= 256 else _round_up(G, 8)
    Gp = _round_up(G, tile_g)
    if Gp != G:
        patches = jnp.pad(patches, ((0, 0), (0, Gp - G), (0, 0)))
    out = _conv_relu_pool_call(patches, w_pad, b_pad, tile_g)
    out = out[:G].reshape(N, Hp, Wp, LANE)[..., :cout]        # drop lane padding
    return out


# ----------------------------------------------------------------------------
# Parameters (PyTorch-convention "raw" params) and offline preparation
# ----------------------------------------------------------------------------
def init_params(key, n_classes, i_channel):
    keys = iter(jax.random.split(key, 32))

    def nrm(shape, scale=0.1):
        return scale * jax.random.normal(next(keys), shape, jnp.float32)

    def conv_p(cin, cout):
        return {"w": nrm((3, 3, cin, cout)),            # HWIO weight_mu
                "b": nrm((cout,)),                      # bias_mu
                "z": 1.0 + nrm((cout,), 0.05)}          # z_mu (per out-channel)

    def fc_p(fin, fout):
        return {"w": nrm((fin, fout)),                  # weight_mu (in x out)
                "b": nrm((fout,)),                      # bias_mu
                "z": 1.0 + nrm((fin,), 0.05)}           # z_mu (per in-feature)

    i_dense_dim = 256 if i_channel == 1 else 192
    return {
        "conv1": conv_p(i_channel, 24),
        "conv2": conv_p(24, 24),
        "conv3": conv_p(24, 48),
        "conv4": conv_p(48, 48),
        "fc1": fc_p(i_dense_dim, 256),
        "fc2": fc_p(256, 128),
        "fc3": fc_p(128, n_classes),
    }


def prepare_params(params, n_classes):
    """Fold z into weights, pad output channels to 128 lanes, permute fc1 rows to the
    NHWC-flatten feature order (removes the NHWC->NCHW transpose from forward())."""
    def conv_prep(p):
        kh, kw, cin, cout = p["w"].shape
        w_eff = (p["w"] * p["z"][None, None, None, :]).reshape(kh * kw * cin, cout)
        w_pad = jnp.pad(w_eff, ((0, 0), (0, LANE - cout)))
        b_pad = jnp.pad(p["b"], (0, LANE - cout)).reshape(1, LANE)
        return w_pad, b_pad

    prepared = {}
    for name in ("conv1", "conv2", "conv3", "conv4"):
        w_pad, b_pad = conv_prep(params[name])
        prepared[name + "_w"] = w_pad
        prepared[name + "_b"] = b_pad

    # fc1: permute rows so that PyTorch's NCHW flatten order is matched by NHWC flatten.
    Hf, Wf, Cf = 2, 2, 48                                    # conv4/pool3 output map
    assert params["fc1"]["w"].shape[0] == Hf * Wf * Cf
    h_i, w_i, c_i = np.meshgrid(np.arange(Hf), np.arange(Wf), np.arange(Cf), indexing="ij")
    perm = (c_i * (Hf * Wf) + h_i * Wf + w_i).reshape(-1)    # torch idx for each NHWC slot
    perm = jnp.asarray(perm, jnp.int32)
    w1 = params["fc1"]["w"][perm, :] * params["fc1"]["z"][perm, None]
    prepared["fc1_w"] = w1
    prepared["fc1_b"] = params["fc1"]["b"].reshape(1, -1)

    prepared["fc2_w"] = params["fc2"]["w"] * params["fc2"]["z"][:, None]
    prepared["fc2_b"] = params["fc2"]["b"].reshape(1, -1)

    w3 = params["fc3"]["w"] * params["fc3"]["z"][:, None]    # (128, n_classes)
    prepared["fc3_w"] = jnp.pad(w3, ((0, 0), (0, LANE - n_classes)))
    prepared["fc3_b"] = jnp.pad(params["fc3"]["b"], (0, LANE - n_classes)).reshape(1, LANE)
    return prepared


# ----------------------------------------------------------------------------
# Model forward
# ----------------------------------------------------------------------------
def forward(prepared, x_nchw, *, n_classes):
    x = jnp.transpose(x_nchw.astype(jnp.float32), (0, 2, 3, 1))          # NCHW -> NHWC

    x = _conv_stage(x, prepared["conv1_w"], prepared["conv1_b"],
                    cout=24, pad=1, kpool=2, spool=2)                    # conv1+relu+pool2
    x = _conv_stage(x, prepared["conv2_w"], prepared["conv2_b"],
                    cout=24, pad=0, kpool=2, spool=2)                    # conv2+relu+pool2
    x = _conv_stage(x, prepared["conv3_w"], prepared["conv3_b"],
                    cout=48, pad=1, kpool=1, spool=1)                    # conv3+relu
    x = _conv_stage(x, prepared["conv4_w"], prepared["conv4_b"],
                    cout=48, pad=0, kpool=3, spool=2)                    # conv4+relu+pool3/2

    n = x.shape[0]
    feats = x.reshape(n, -1)        # NHWC flatten; fc1 rows pre-permuted to match NCHW view

    logits_pad = _fc_stack_call(feats,
                                prepared["fc1_w"], prepared["fc1_b"],
                                prepared["fc2_w"], prepared["fc2_b"],
                                prepared["fc3_w"], prepared["fc3_b"])
    return logits_pad[:, :n_classes]


if __name__ == "__main__":
    key = jax.random.PRNGKey(0)
    pkey, xkey = jax.random.split(key)

    n_classes, i_channel = 10, 3              # CIFAR-like config -> i_dense_dim = 192
    params = init_params(pkey, n_classes, i_channel)
    prepared = prepare_params(params, n_classes)

    # 32x32 spatial so the flatten dim matches the module's i_dense_dim=192 exactly.
    x = jax.random.normal(xkey, (2, i_channel, 32, 32), jnp.float32)

    fwd = jax.jit(functools.partial(forward, n_classes=n_classes))
    out = jax.block_until_ready(fwd(prepared, x))
    assert out.shape == (2, n_classes), out.shape
    assert out.dtype == jnp.float32
    print("KERNEL_OK")
</pallas_src>

<mosaic_0001>
module attributes {stable_mosaic.version = 11 : i64} {
  func.func @_conv_relu_pool_kernel(%arg0: i32, %arg1: memref<4x256x27xf32, #tpu.memory_space<vmem>>, %arg2: memref<27x128xf32, #tpu.memory_space<vmem>>, %arg3: memref<1x128xf32, #tpu.memory_space<vmem>>, %arg4: memref<256x128xf32, #tpu.memory_space<vmem>>) attributes {dimension_semantics = [#tpu.dimension_semantics<parallel>], iteration_bounds = array<i64: 2>, scalar_prefetch = 0 : i64, scratch_operands = 0 : i64, tpu.core_type = #tpu.core_type<tc>, window_params = [{transform_indices = @transform_0, window_bounds = array<i64: 4, 256, 27>}, {pipeline_mode = #tpu.pipeline_mode<synchronous>, transform_indices = @transform_1, window_bounds = array<i64: 27, 128>}, {pipeline_mode = #tpu.pipeline_mode<synchronous>, transform_indices = @transform_2, window_bounds = array<i64: 1, 128>}, {transform_indices = @transform_3, window_bounds = array<i64: 256, 128>}]} {
    %c0 = arith.constant 0 : index
    %c0_0 = arith.constant 0 : index
    %0 = vector.load %arg2[%c0, %c0_0] : memref<27x128xf32, #tpu.memory_space<vmem>>, vector<27x128xf32>
    %1 = arith.truncf %0 : vector<27x128xf32> to vector<27x128xbf16>
    %c0_1 = arith.constant 0 : index
    %c0_2 = arith.constant 0 : index
    %2 = vector.load %arg3[%c0_1, %c0_2] : memref<1x128xf32, #tpu.memory_space<vmem>>, vector<1x128xf32>
    %c0_3 = arith.constant 0 : index
    %c0_4 = arith.constant 0 : index
    %c0_5 = arith.constant 0 : index
    %3 = vector.load %arg1[%c0_3, %c0_4, %c0_5] : memref<4x256x27xf32, #tpu.memory_space<vmem>>, vector<1x256x27xf32>
    %4 = vector.shape_cast %3 : vector<1x256x27xf32> to vector<256x27xf32>
    %5 = arith.truncf %4 : vector<256x27xf32> to vector<256x27xbf16>
    %cst = arith.constant dense<0.000000e+00> : vector<256x128xf32>
    %6 = tpu.matmul %5, %1, %cst {dimension_numbers = #tpu.dot_dimension_numbers<[1], [0], [0], [1], [0, 0, 1, 1], [], []>} : vector<256x27xbf16>, vector<27x128xbf16>, vector<256x128xf32> -> vector<256x128xf32>
    %7 = vector.broadcast %2 : vector<1x128xf32> to vector<256x128xf32>
    %8 = arith.addf %6, %7 : vector<256x128xf32>
    %cst_6 = arith.constant 0.000000e+00 : f32
    %9 = vector.broadcast %cst_6 : f32 to vector<256x128xf32>
    %10 = arith.maximumf %8, %9 : vector<256x128xf32>
    %c1 = arith.constant 1 : index
    %c0_7 = arith.constant 0 : index
    %c0_8 = arith.constant 0 : index
    %11 = vector.load %arg1[%c1, %c0_7, %c0_8] : memref<4x256x27xf32, #tpu.memory_space<vmem>>, vector<1x256x27xf32>
    %12 = vector.shape_cast %11 : vector<1x256x27xf32> to vector<256x27xf32>
    %13 = arith.truncf %12 : vector<256x27xf32> to vector<256x27xbf16>
    %cst_9 = arith.constant dense<0.000000e+00> : vector<256x128xf32>
    %14 = tpu.matmul %13, %1, %cst_9 {dimension_numbers = #tpu.dot_dimension_numbers<[1], [0], [0], [1], [0, 0, 1, 1], [], []>} : vector<256x27xbf16>, vector<27x128xbf16>, vector<256x128xf32> -> vector<256x128xf32>
    %15 = vector.broadcast %2 : vector<1x128xf32> to vector<256x128xf32>
    %16 = arith.addf %14, %15 : vector<256x128xf32>
    %cst_10 = arith.constant 0.000000e+00 : f32
    %17 = vector.broadcast %cst_10 : f32 to vector<256x128xf32>
    %18 = arith.maximumf %16, %17 : vector<256x128xf32>
    %19 = arith.maximumf %10, %18 : vector<256x128xf32>
    %c2 = arith.constant 2 : index
    %c0_11 = arith.constant 0 : index
    %c0_12 = arith.constant 0 : index
    %20 = vector.load %arg1[%c2, %c0_11, %c0_12] : memref<4x256x27xf32, #tpu.memory_space<vmem>>, vector<1x256x27xf32>
    %21 = vector.shape_cast %20 : vector<1x256x27xf32> to vector<256x27xf32>
    %22 = arith.truncf %21 : vector<256x27xf32> to vector<256x27xbf16>
    %cst_13 = arith.constant dense<0.000000e+00> : vector<256x128xf32>
    %23 = tpu.matmul %22, %1, %cst_13 {dimension_numbers = #tpu.dot_dimension_numbers<[1], [0], [0], [1], [0, 0, 1, 1], [], []>} : vector<256x27xbf16>, vector<27x128xbf16>, vector<256x128xf32> -> vector<256x128xf32>
    %24 = vector.broadcast %2 : vector<1x128xf32> to vector<256x128xf32>
    %25 = arith.addf %23, %24 : vector<256x128xf32>
    %cst_14 = arith.constant 0.000000e+00 : f32
    %26 = vector.broadcast %cst_14 : f32 to vector<256x128xf32>
    %27 = arith.maximumf %25, %26 : vector<256x128xf32>
    %28 = arith.maximumf %19, %27 : vector<256x128xf32>
    %c3 = arith.constant 3 : index
    %c0_15 = arith.constant 0 : index
    %c0_16 = arith.constant 0 : index
    %29 = vector.load %arg1[%c3, %c0_15, %c0_16] : memref<4x256x27xf32, #tpu.memory_space<vmem>>, vector<1x256x27xf32>
    %30 = vector.shape_cast %29 : vector<1x256x27xf32> to vector<256x27xf32>
    %31 = arith.truncf %30 : vector<256x27xf32> to vector<256x27xbf16>
    %cst_17 = arith.constant dense<0.000000e+00> : vector<256x128xf32>
    %32 = tpu.matmul %31, %1, %cst_17 {dimension_numbers = #tpu.dot_dimension_numbers<[1], [0], [0], [1], [0, 0, 1, 1], [], []>} : vector<256x27xbf16>, vector<27x128xbf16>, vector<256x128xf32> -> vector<256x128xf32>
    %33 = vector.broadcast %2 : vector<1x128xf32> to vector<256x128xf32>
    %34 = arith.addf %32, %33 : vector<256x128xf32>
    %cst_18 = arith.constant 0.000000e+00 : f32
    %35 = vector.broadcast %cst_18 : f32 to vector<256x128xf32>
    %36 = arith.maximumf %34, %35 : vector<256x128xf32>
    %37 = arith.maximumf %28, %36 : vector<256x128xf32>
    %c0_19 = arith.constant 0 : index
    %c0_20 = arith.constant 0 : index
    %38 = vector.load %arg4[%c0_19, %c0_20] : memref<256x128xf32, #tpu.memory_space<vmem>>, vector<256x128xf32>
    tpu.vector_store %arg4[%c0_19, %c0_20], %37 {strides = array<i32>} : memref<256x128xf32, #tpu.memory_space<vmem>>, vector<256x128xf32>,
    return
  }
  func.func @transform_0(%arg0: i32) -> (i32, i32, i32) {
    %c0_i32 = arith.constant 0 : i32
    %c0_i32_0 = arith.constant 0 : i32
    %c0_i32_1 = arith.constant 0 : i32
    return %c0_i32, %arg0, %c0_i32_0 : i32, i32, i32
  }
  func.func @transform_1(%arg0: i32) -> (i32, i32) {
    %c0_i32 = arith.constant 0 : i32
    %c0_i32_0 = arith.constant 0 : i32
    %c0_i32_1 = arith.constant 0 : i32
    return %c0_i32, %c0_i32_0 : i32, i32
  }
  func.func @transform_2(%arg0: i32) -> (i32, i32) {
    %c0_i32 = arith.constant 0 : i32
    %c0_i32_0 = arith.constant 0 : i32
    %c0_i32_1 = arith.constant 0 : i32
    return %c0_i32, %c0_i32_0 : i32, i32
  }
  func.func @transform_3(%arg0: i32) -> (i32, i32) {
    %c0_i32 = arith.constant 0 : i32
    %c0_i32_0 = arith.constant 0 : i32
    return %arg0, %c0_i32 : i32, i32
  }
}

module attributes {stable_mosaic.version = 11 : i64} {
  func.func @_conv_relu_pool_kernel(%arg0: i32, %arg1: memref<4x104x216xf32, #tpu.memory_space<vmem>>, %arg2: memref<216x128xf32, #tpu.memory_space<vmem>>, %arg3: memref<1x128xf32, #tpu.memory_space<vmem>>, %arg4: memref<104x128xf32, #tpu.memory_space<vmem>>) attributes {dimension_semantics = [#tpu.dimension_semantics<parallel>], iteration_bounds = array<i64: 1>, scalar_prefetch = 0 : i64, scratch_operands = 0 : i64, tpu.core_type = #tpu.core_type<tc>, window_params = [{transform_indices = @transform_0, window_bounds = array<i64: 4, 104, 216>}, {pipeline_mode = #tpu.pipeline_mode<synchronous>, transform_indices = @transform_1, window_bounds = array<i64: 216, 128>}, {pipeline_mode = #tpu.pipeline_mode<synchronous>, transform_indices = @transform_2, window_bounds = array<i64: 1, 128>}, {transform_indices = @transform_3, window_bounds = array<i64: 104, 128>}]} {
    %c0 = arith.constant 0 : index
    %c0_0 = arith.constant 0 : index
    %0 = vector.load %arg2[%c0, %c0_0] : memref<216x128xf32, #tpu.memory_space<vmem>>, vector<216x128xf32>
    %1 = arith.truncf %0 : vector<216x128xf32> to vector<216x128xbf16>
    %c0_1 = arith.constant 0 : index
    %c0_2 = arith.constant 0 : index
    %2 = vector.load %arg3[%c0_1, %c0_2] : memref<1x128xf32, #tpu.memory_space<vmem>>, vector<1x128xf32>
    %c0_3 = arith.constant 0 : index
    %c0_4 = arith.constant 0 : index
    %c0_5 = arith.constant 0 : index
    %3 = vector.load %arg1[%c0_3, %c0_4, %c0_5] : memref<4x104x216xf32, #tpu.memory_space<vmem>>, vector<1x104x216xf32>
    %4 = vector.shape_cast %3 : vector<1x104x216xf32> to vector<104x216xf32>
    %5 = arith.truncf %4 : vector<104x216xf32> to vector<104x216xbf16>
    %cst = arith.constant dense<0.000000e+00> : vector<104x128xf32>
    %6 = tpu.matmul %5, %1, %cst {dimension_numbers = #tpu.dot_dimension_numbers<[1], [0], [0], [1], [0, 0, 1, 1], [], []>} : vector<104x216xbf16>, vector<216x128xbf16>, vector<104x128xf32> -> vector<104x128xf32>
    %7 = vector.broadcast %2 : vector<1x128xf32> to vector<104x128xf32>
    %8 = arith.addf %6, %7 : vector<104x128xf32>
    %cst_6 = arith.constant 0.000000e+00 : f32
    %9 = vector.broadcast %cst_6 : f32 to vector<104x128xf32>
    %10 = arith.maximumf %8, %9 : vector<104x128xf32>
    %c1 = arith.constant 1 : index
    %c0_7 = arith.constant 0 : index
    %c0_8 = arith.constant 0 : index
    %11 = vector.load %arg1[%c1, %c0_7, %c0_8] : memref<4x104x216xf32, #tpu.memory_space<vmem>>, vector<1x104x216xf32>
    %12 = vector.shape_cast %11 : vector<1x104x216xf32> to vector<104x216xf32>
    %13 = arith.truncf %12 : vector<104x216xf32> to vector<104x216xbf16>
    %cst_9 = arith.constant dense<0.000000e+00> : vector<104x128xf32>
    %14 = tpu.matmul %13, %1, %cst_9 {dimension_numbers = #tpu.dot_dimension_numbers<[1], [0], [0], [1], [0, 0, 1, 1], [], []>} : vector<104x216xbf16>, vector<216x128xbf16>, vector<104x128xf32> -> vector<104x128xf32>
    %15 = vector.broadcast %2 : vector<1x128xf32> to vector<104x128xf32>
    %16 = arith.addf %14, %15 : vector<104x128xf32>
    %cst_10 = arith.constant 0.000000e+00 : f32
    %17 = vector.broadcast %cst_10 : f32 to vector<104x128xf32>
    %18 = arith.maximumf %16, %17 : vector<104x128xf32>
    %19 = arith.maximumf %10, %18 : vector<104x128xf32>
    %c2 = arith.constant 2 : index
    %c0_11 = arith.constant 0 : index
    %c0_12 = arith.constant 0 : index
    %20 = vector.load %arg1[%c2, %c0_11, %c0_12] : memref<4x104x216xf32, #tpu.memory_space<vmem>>, vector<1x104x216xf32>
    %21 = vector.shape_cast %20 : vector<1x104x216xf32> to vector<104x216xf32>
    %22 = arith.truncf %21 : vector<104x216xf32> to vector<104x216xbf16>
    %cst_13 = arith.constant dense<0.000000e+00> : vector<104x128xf32>
    %23 = tpu.matmul %22, %1, %cst_13 {dimension_numbers = #tpu.dot_dimension_numbers<[1], [0], [0], [1], [0, 0, 1, 1], [], []>} : vector<104x216xbf16>, vector<216x128xbf16>, vector<104x128xf32> -> vector<104x128xf32>
    %24 = vector.broadcast %2 : vector<1x128xf32> to vector<104x128xf32>
    %25 = arith.addf %23, %24 : vector<104x128xf32>
    %cst_14 = arith.constant 0.000000e+00 : f32
    %26 = vector.broadcast %cst_14 : f32 to vector<104x128xf32>
    %27 = arith.maximumf %25, %26 : vector<104x128xf32>
    %28 = arith.maximumf %19, %27 : vector<104x128xf32>
    %c3 = arith.constant 3 : index
    %c0_15 = arith.constant 0 : index
    %c0_16 = arith.constant 0 : index
    %29 = vector.load %arg1[%c3, %c0_15, %c0_16] : memref<4x104x216xf32, #tpu.memory_space<vmem>>, vector<1x104x216xf32>
    %30 = vector.shape_cast %29 : vector<1x104x216xf32> to vector<104x216xf32>
    %31 = arith.truncf %30 : vector<104x216xf32> to vector<104x216xbf16>
    %cst_17 = arith.constant dense<0.000000e+00> : vector<104x128xf32>
    %32 = tpu.matmul %31, %1, %cst_17 {dimension_numbers = #tpu.dot_dimension_numbers<[1], [0], [0], [1], [0, 0, 1, 1], [], []>} : vector<104x216xbf16>, vector<216x128xbf16>, vector<104x128xf32> -> vector<104x128xf32>
    %33 = vector.broadcast %2 : vector<1x128xf32> to vector<104x128xf32>
    %34 = arith.addf %32, %33 : vector<104x128xf32>
    %cst_18 = arith.constant 0.000000e+00 : f32
    %35 = vector.broadcast %cst_18 : f32 to vector<104x128xf32>
    %36 = arith.maximumf %34, %35 : vector<104x128xf32>
    %37 = arith.maximumf %28, %36 : vector<104x128xf32>
    %c0_19 = arith.constant 0 : index
    %c0_20 = arith.constant 0 : index
    %38 = vector.load %arg4[%c0_19, %c0_20] : memref<104x128xf32, #tpu.memory_space<vmem>>, vector<104x128xf32>
    tpu.vector_store %arg4[%c0_19, %c0_20], %37 {strides = array<i32>} : memref<104x128xf32, #tpu.memory_space<vmem>>, vector<104x128xf32>,
    return
  }
  func.func @transform_0(%arg0: i32) -> (i32, i32, i32) {
    %c0_i32 = arith.constant 0 : i32
    %c0_i32_0 = arith.constant 0 : i32
    %c0_i32_1 = arith.constant 0 : i32
    return %c0_i32, %arg0, %c0_i32_0 : i32, i32, i32
  }
  func.func @transform_1(%arg0: i32) -> (i32, i32) {
    %c0_i32 = arith.constant 0 : i32
    %c0_i32_0 = arith.constant 0 : i32
    %c0_i32_1 = arith.constant 0 : i32
    return %c0_i32, %c0_i32_0 : i32, i32
  }
  func.func @transform_2(%arg0: i32) -> (i32, i32) {
    %c0_i32 = arith.constant 0 : i32
    %c0_i32_0 = arith.constant 0 : i32
    %c0_i32_1 = arith.constant 0 : i32
    return %c0_i32, %c0_i32_0 : i32, i32
  }
  func.func @transform_3(%arg0: i32) -> (i32, i32) {
    %c0_i32 = arith.constant 0 : i32
    %c0_i32_0 = arith.constant 0 : i32
    return %arg0, %c0_i32 : i32, i32
  }
}

module attributes {stable_mosaic.version = 11 : i64} {
  func.func @_conv_relu_pool_kernel(%arg0: i32, %arg1: memref<1x104x216xf32, #tpu.memory_space<vmem>>, %arg2: memref<216x128xf32, #tpu.memory_space<vmem>>, %arg3: memref<1x128xf32, #tpu.memory_space<vmem>>, %arg4: memref<104x128xf32, #tpu.memory_space<vmem>>) attributes {dimension_semantics = [#tpu.dimension_semantics<parallel>], iteration_bounds = array<i64: 1>, scalar_prefetch = 0 : i64, scratch_operands = 0 : i64, tpu.core_type = #tpu.core_type<tc>, window_params = [{transform_indices = @transform_0, window_bounds = array<i64: 1, 104, 216>}, {pipeline_mode = #tpu.pipeline_mode<synchronous>, transform_indices = @transform_1, window_bounds = array<i64: 216, 128>}, {pipeline_mode = #tpu.pipeline_mode<synchronous>, transform_indices = @transform_2, window_bounds = array<i64: 1, 128>}, {transform_indices = @transform_3, window_bounds = array<i64: 104, 128>}]} {
    %c0 = arith.constant 0 : index
    %c0_0 = arith.constant 0 : index
    %0 = vector.load %arg2[%c0, %c0_0] : memref<216x128xf32, #tpu.memory_space<vmem>>, vector<216x128xf32>
    %1 = arith.truncf %0 : vector<216x128xf32> to vector<216x128xbf16>
    %c0_1 = arith.constant 0 : index
    %c0_2 = arith.constant 0 : index
    %2 = vector.load %arg3[%c0_1, %c0_2] : memref<1x128xf32, #tpu.memory_space<vmem>>, vector<1x128xf32>
    %c0_3 = arith.constant 0 : index
    %c0_4 = arith.constant 0 : index
    %c0_5 = arith.constant 0 : index
    %3 = vector.load %arg1[%c0_3, %c0_4, %c0_5] : memref<1x104x216xf32, #tpu.memory_space<vmem>>, vector<1x104x216xf32>
    %4 = vector.shape_cast %3 : vector<1x104x216xf32> to vector<104x216xf32>
    %5 = arith.truncf %4 : vector<104x216xf32> to vector<104x216xbf16>
    %cst = arith.constant dense<0.000000e+00> : vector<104x128xf32>
    %6 = tpu.matmul %5, %1, %cst {dimension_numbers = #tpu.dot_dimension_numbers<[1], [0], [0], [1], [0, 0, 1, 1], [], []>} : vector<104x216xbf16>, vector<216x128xbf16>, vector<104x128xf32> -> vector<104x128xf32>
    %7 = vector.broadcast %2 : vector<1x128xf32> to vector<104x128xf32>
    %8 = arith.addf %6, %7 : vector<104x128xf32>
    %cst_6 = arith.constant 0.000000e+00 : f32
    %9 = vector.broadcast %cst_6 : f32 to vector<104x128xf32>
    %10 = arith.maximumf %8, %9 : vector<104x128xf32>
    %c0_7 = arith.constant 0 : index
    %c0_8 = arith.constant 0 : index
    %11 = vector.load %arg4[%c0_7, %c0_8] : memref<104x128xf32, #tpu.memory_space<vmem>>, vector<104x128xf32>
    tpu.vector_store %arg4[%c0_7, %c0_8], %10 {strides = array<i32>} : memref<104x128xf32, #tpu.memory_space<vmem>>, vector<104x128xf32>,
    return
  }
  func.func @transform_0(%arg0: i32) -> (i32, i32, i32) {
    %c0_i32 = arith.constant 0 : i32
    %c0_i32_0 = arith.constant 0 : i32
    %c0_i32_1 = arith.constant 0 : i32
    return %c0_i32, %arg0, %c0_i32_0 : i32, i32, i32
  }
  func.func @transform_1(%arg0: i32) -> (i32, i32) {
    %c0_i32 = arith.constant 0 : i32
    %c0_i32_0 = arith.constant 0 : i32
    %c0_i32_1 = arith.constant 0 : i32
    return %c0_i32, %c0_i32_0 : i32, i32
  }
  func.func @transform_2(%arg0: i32) -> (i32, i32) {
    %c0_i32 = arith.constant 0 : i32
    %c0_i32_0 = arith.constant 0 : i32
    %c0_i32_1 = arith.constant 0 : i32
    return %c0_i32, %c0_i32_0 : i32, i32
  }
  func.func @transform_3(%arg0: i32) -> (i32, i32) {
    %c0_i32 = arith.constant 0 : i32
    %c0_i32_0 = arith.constant 0 : i32
    return %arg0, %c0_i32 : i32, i32
  }
}

module attributes {stable_mosaic.version = 11 : i64} {
  func.func @_fc_stack_kernel(%arg0: memref<2x192xf32, #tpu.memory_space<vmem>>, %arg1: memref<192x256xf32, #tpu.memory_space<vmem>>, %arg2: memref<1x256xf32, #tpu.memory_space<vmem>>, %arg3: memref<256x128xf32, #tpu.memory_space<vmem>>, %arg4: memref<1x128xf32, #tpu.memory_space<vmem>>, %arg5: memref<128x128xf32, #tpu.memory_space<vmem>>, %arg6: memref<1x128xf32, #tpu.memory_space<vmem>>, %arg7: memref<2x128xf32, #tpu.memory_space<vmem>>) attributes {dimension_semantics = [], scalar_prefetch = 0 : i64, scratch_operands = 0 : i64, tpu.core_type = #tpu.core_type<tc>} {
    %c0 = arith.constant 0 : index
    %c0_0 = arith.constant 0 : index
    %0 = vector.load %arg0[%c0, %c0_0] : memref<2x192xf32, #tpu.memory_space<vmem>>, vector<2x192xf32>
    %1 = arith.truncf %0 : vector<2x192xf32> to vector<2x192xbf16>
    %c0_1 = arith.constant 0 : index
    %c0_2 = arith.constant 0 : index
    %2 = vector.load %arg1[%c0_1, %c0_2] : memref<192x256xf32, #tpu.memory_space<vmem>>, vector<192x256xf32>
    %3 = arith.truncf %2 : vector<192x256xf32> to vector<192x256xbf16>
    %cst = arith.constant dense<0.000000e+00> : vector<2x256xf32>
    %4 = tpu.matmul %1, %3, %cst {dimension_numbers = #tpu.dot_dimension_numbers<[1], [0], [0], [1], [0, 0, 1, 1], [], []>} : vector<2x192xbf16>, vector<192x256xbf16>, vector<2x256xf32> -> vector<2x256xf32>
    %c0_3 = arith.constant 0 : index
    %c0_4 = arith.constant 0 : index
    %5 = vector.load %arg2[%c0_3, %c0_4] : memref<1x256xf32, #tpu.memory_space<vmem>>, vector<1x256xf32>
    %6 = vector.broadcast %5 : vector<1x256xf32> to vector<2x256xf32>
    %7 = arith.addf %4, %6 : vector<2x256xf32>
    %cst_5 = arith.constant 0.000000e+00 : f32
    %8 = vector.broadcast %cst_5 : f32 to vector<2x256xf32>
    %9 = arith.maximumf %7, %8 : vector<2x256xf32>
    %10 = arith.truncf %9 : vector<2x256xf32> to vector<2x256xbf16>
    %c0_6 = arith.constant 0 : index
    %c0_7 = arith.constant 0 : index
    %11 = vector.load %arg3[%c0_6, %c0_7] : memref<256x128xf32, #tpu.memory_space<vmem>>, vector<256x128xf32>
    %12 = arith.truncf %11 : vector<256x128xf32> to vector<256x128xbf16>
    %cst_8 = arith.constant dense<0.000000e+00> : vector<2x128xf32>
    %13 = tpu.matmul %10, %12, %cst_8 {dimension_numbers = #tpu.dot_dimension_numbers<[1], [0], [0], [1], [0, 0, 1, 1], [], []>} : vector<2x256xbf16>, vector<256x128xbf16>, vector<2x128xf32> -> vector<2x128xf32>
    %c0_9 = arith.constant 0 : index
    %c0_10 = arith.constant 0 : index
    %14 = vector.load %arg4[%c0_9, %c0_10] : memref<1x128xf32, #tpu.memory_space<vmem>>, vector<1x128xf32>
    %15 = vector.broadcast %14 : vector<1x128xf32> to vector<2x128xf32>
    %16 = arith.addf %13, %15 : vector<2x128xf32>
    %17 = arith.truncf %16 : vector<2x128xf32> to vector<2x128xbf16>
    %c0_11 = arith.constant 0 : index
    %c0_12 = arith.constant 0 : index
    %18 = vector.load %arg5[%c0_11, %c0_12] : memref<128x128xf32, #tpu.memory_space<vmem>>, vector<128x128xf32>
    %19 = arith.truncf %18 : vector<128x128xf32> to vector<128x128xbf16>
    %cst_13 = arith.constant dense<0.000000e+00> : vector<2x128xf32>
    %20 = tpu.matmul %17, %19, %cst_13 {dimension_numbers = #tpu.dot_dimension_numbers<[1], [0], [0], [1], [0, 0, 1, 1], [], []>} : vector<2x128xbf16>, vector<128x128xbf16>, vector<2x128xf32> -> vector<2x128xf32>
    %c0_14 = arith.constant 0 : index
    %c0_15 = arith.constant 0 : index
    %21 = vector.load %arg6[%c0_14, %c0_15] : memref<1x128xf32, #tpu.memory_space<vmem>>, vector<1x128xf32>
    %22 = vector.broadcast %21 : vector<1x128xf32> to vector<2x128xf32>
    %23 = arith.addf %20, %22 : vector<2x128xf32>
    %c0_16 = arith.constant 0 : index
    %c0_17 = arith.constant 0 : index
    %24 = vector.load %arg7[%c0_16, %c0_17] : memref<2x128xf32, #tpu.memory_space<vmem>>, vector<2x128xf32>
    tpu.vector_store %arg7[%c0_16, %c0_17], %23 {strides = array<i32>} : memref<2x128xf32, #tpu.memory_space<vmem>>, vector<2x128xf32>,
    return
  }
}

module attributes {stable_mosaic.version = 11 : i64} {
  func.func @_conv_relu_pool_kernel(%arg0: i32, %arg1: memref<9x8x432xf32, #tpu.memory_space<vmem>>, %arg2: memref<432x128xf32, #tpu.memory_space<vmem>>, %arg3: memref<1x128xf32, #tpu.memory_space<vmem>>, %arg4: memref<8x128xf32, #tpu.memory_space<vmem>>) attributes {dimension_semantics = [#tpu.dimension_semantics<parallel>], iteration_bounds = array<i64: 1>, scalar_prefetch = 0 : i64, scratch_operands = 0 : i64, tpu.core_type = #tpu.core_type<tc>, window_params = [{transform_indices = @transform_0, window_bounds = array<i64: 9, 8, 432>}, {pipeline_mode = #tpu.pipeline_mode<synchronous>, transform_indices = @transform_1, window_bounds = array<i64: 432, 128>}, {pipeline_mode = #tpu.pipeline_mode<synchronous>, transform_indices = @transform_2, window_bounds = array<i64: 1, 128>}, {transform_indices = @transform_3, window_bounds = array<i64: 8, 128>}]} {
    %c0 = arith.constant 0 : index
    %c0_0 = arith.constant 0 : index
    %0 = vector.load %arg2[%c0, %c0_0] : memref<432x128xf32, #tpu.memory_space<vmem>>, vector<432x128xf32>
    %1 = arith.truncf %0 : vector<432x128xf32> to vector<432x128xbf16>
    %c0_1 = arith.constant 0 : index
    %c0_2 = arith.constant 0 : index
    %2 = vector.load %arg3[%c0_1, %c0_2] : memref<1x128xf32, #tpu.memory_space<vmem>>, vector<1x128xf32>
    %c0_3 = arith.constant 0 : index
    %c0_4 = arith.constant 0 : index
    %c0_5 = arith.constant 0 : index
    %3 = vector.load %arg1[%c0_3, %c0_4, %c0_5] : memref<9x8x432xf32, #tpu.memory_space<vmem>>, vector<1x8x432xf32>
    %4 = vector.shape_cast %3 : vector<1x8x432xf32> to vector<8x432xf32>
    %5 = arith.truncf %4 : vector<8x432xf32> to vector<8x432xbf16>
    %cst = arith.constant dense<0.000000e+00> : vector<8x128xf32>
    %6 = tpu.matmul %5, %1, %cst {dimension_numbers = #tpu.dot_dimension_numbers<[1], [0], [0], [1], [0, 0, 1, 1], [], []>} : vector<8x432xbf16>, vector<432x128xbf16>, vector<8x128xf32> -> vector<8x128xf32>
    %7 = vector.broadcast %2 : vector<1x128xf32> to vector<8x128xf32>
    %8 = arith.addf %6, %7 : vector<8x128xf32>
    %cst_6 = arith.constant 0.000000e+00 : f32
    %9 = vector.broadcast %cst_6 : f32 to vector<8x128xf32>
    %10 = arith.maximumf %8, %9 : vector<8x128xf32>
    %c1 = arith.constant 1 : index
    %c0_7 = arith.constant 0 : index
    %c0_8 = arith.constant 0 : index
    %11 = vector.load %arg1[%c1, %c0_7, %c0_8] : memref<9x8x432xf32, #tpu.memory_space<vmem>>, vector<1x8x432xf32>
    %12 = vector.shape_cast %11 : vector<1x8x432xf32> to vector<8x432xf32>
    %13 = arith.truncf %12 : vector<8x432xf32> to vector<8x432xbf16>
    %cst_9 = arith.constant dense<0.000000e+00> : vector<8x128xf32>
    %14 = tpu.matmul %13, %1, %cst_9 {dimension_numbers = #tpu.dot_dimension_numbers<[1], [0], [0], [1], [0, 0, 1, 1], [], []>} : vector<8x432xbf16>, vector<432x128xbf16>, vector<8x128xf32> -> vector<8x128xf32>
    %15 = vector.broadcast %2 : vector<1x128xf32> to vector<8x128xf32>
    %16 = arith.addf %14, %15 : vector<8x128xf32>
    %cst_10 = arith.constant 0.000000e+00 : f32
    %17 = vector.broadcast %cst_10 : f32 to vector<8x128xf32>
    %18 = arith.maximumf %16, %17 : vector<8x128xf32>
    %19 = arith.maximumf %10, %18 : vector<8x128xf32>
    %c2 = arith.constant 2 : index
    %c0_11 = arith.constant 0 : index
    %c0_12 = arith.constant 0 : index
    %20 = vector.load %arg1[%c2, %c0_11, %c0_12] : memref<9x8x432xf32, #tpu.memory_space<vmem>>, vector<1x8x432xf32>
    %21 = vector.shape_cast %20 : vector<1x8x432xf32> to vector<8x432xf32>
    %22 = arith.truncf %21 : vector<8x432xf32> to vector<8x432xbf16>
    %cst_13 = arith.constant dense<0.000000e+00> : vector<8x128xf32>
    %23 = tpu.matmul %22, %1, %cst_13 {dimension_numbers = #tpu.dot_dimension_numbers<[1], [0], [0], [1], [0, 0, 1, 1], [], []>} : vector<8x432xbf16>, vector<432x128xbf16>, vector<8x128xf32> -> vector<8x128xf32>
    %24 = vector.broadcast %2 : vector<1x128xf32> to vector<8x128xf32>
    %25 = arith.addf %23, %24 : vector<8x128xf32>
    %cst_14 = arith.constant 0.000000e+00 : f32
    %26 = vector.broadcast %cst_14 : f32 to vector<8x128xf32>
    %27 = arith.maximumf %25, %26 : vector<8x128xf32>
    %28 = arith.maximumf %19, %27 : vector<8x128xf32>
    %c3 = arith.constant 3 : index
    %c0_15 = arith.constant 0 : index
    %c0_16 = arith.constant 0 : index
    %29 = vector.load %arg1[%c3, %c0_15, %c0_16] : memref<9x8x432xf32, #tpu.memory_space<vmem>>, vector<1x8x432xf32>
    %30 = vector.shape_cast %29 : vector<1x8x432xf32> to vector<8x432xf32>
    %31 = arith.truncf %30 : vector<8x432xf32> to vector<8x432xbf16>
    %cst_17 = arith.constant dense<0.000000e+00> : vector<8x128xf32>
    %32 = tpu.matmul %31, %1, %cst_17 {dimension_numbers = #tpu.dot_dimension_numbers<[1], [0], [0], [1], [0, 0, 1, 1], [], []>} : vector<8x432xbf16>, vector<432x128xbf16>, vector<8x128xf32> -> vector<8x128xf32>
    %33 = vector.broadcast %2 : vector<1x128xf32> to vector<8x128xf32>
    %34 = arith.addf %32, %33 : vector<8x128xf32>
    %cst_18 = arith.constant 0.000000e+00 : f32
    %35 = vector.broadcast %cst_18 : f32 to vector<8x128xf32>
    %36 = arith.maximumf %34, %35 : vector<8x128xf32>
    %37 = arith.maximumf %28, %36 : vector<8x128xf32>
    %c4 = arith.constant 4 : index
    %c0_19 = arith.constant 0 : index
    %c0_20 = arith.constant 0 : index
    %38 = vector.load %arg1[%c4, %c0_19, %c0_20] : memref<9x8x432xf32, #tpu.memory_space<vmem>>, vector<1x8x432xf32>
    %39 = vector.shape_cast %38 : vector<1x8x432xf32> to vector<8x432xf32>
    %40 = arith.truncf %39 : vector<8x432xf32> to vector<8x432xbf16>
    %cst_21 = arith.constant dense<0.000000e+00> : vector<8x128xf32>
    %41 = tpu.matmul %40, %1, %cst_21 {dimension_numbers = #tpu.dot_dimension_numbers<[1], [0], [0], [1], [0, 0, 1, 1], [], []>} : vector<8x432xbf16>, vector<432x128xbf16>, vector<8x128xf32> -> vector<8x128xf32>
    %42 = vector.broadcast %2 : vector<1x128xf32> to vector<8x128xf32>
    %43 = arith.addf %41, %42 : vector<8x128xf32>
    %cst_22 = arith.constant 0.000000e+00 : f32
    %44 = vector.broadcast %cst_22 : f32 to vector<8x128xf32>
    %45 = arith.maximumf %43, %44 : vector<8x128xf32>
    %46 = arith.maximumf %37, %45 : vector<8x128xf32>
    %c5 = arith.constant 5 : index
    %c0_23 = arith.constant 0 : index
    %c0_24 = arith.constant 0 : index
    %47 = vector.load %arg1[%c5, %c0_23, %c0_24] : memref<9x8x432xf32, #tpu.memory_space<vmem>>, vector<1x8x432xf32>
    %48 = vector.shape_cast %47 : vector<1x8x432xf32> to vector<8x432xf32>
    %49 = arith.truncf %48 : vector<8x432xf32> to vector<8x432xbf16>
    %cst_25 = arith.constant dense<0.000000e+00> : vector<8x128xf32>
    %50 = tpu.matmul %49, %1, %cst_25 {dimension_numbers = #tpu.dot_dimension_numbers<[1], [0], [0], [1], [0, 0, 1, 1], [], []>} : vector<8x432xbf16>, vector<432x128xbf16>, vector<8x128xf32> -> vector<8x128xf32>
    %51 = vector.broadcast %2 : vector<1x128xf32> to vector<8x128xf32>
    %52 = arith.addf %50, %51 : vector<8x128xf32>
    %cst_26 = arith.constant 0.000000e+00 : f32
    %53 = vector.broadcast %cst_26 : f32 to vector<8x128xf32>
    %54 = arith.maximumf %52, %53 : vector<8x128xf32>
    %55 = arith.maximumf %46, %54 : vector<8x128xf32>
    %c6 = arith.constant 6 : index
    %c0_27 = arith.constant 0 : index
    %c0_28 = arith.constant 0 : index
    %56 = vector.load %arg1[%c6, %c0_27, %c0_28] : memref<9x8x432xf32, #tpu.memory_space<vmem>>, vector<1x8x432xf32>
    %57 = vector.shape_cast %56 : vector<1x8x432xf32> to vector<8x432xf32>
    %58 = arith.truncf %57 : vector<8x432xf32> to vector<8x432xbf16>
    %cst_29 = arith.constant dense<0.000000e+00> : vector<8x128xf32>
    %59 = tpu.matmul %58, %1, %cst_29 {dimension_numbers = #tpu.dot_dimension_numbers<[1], [0], [0], [1], [0, 0, 1, 1], [], []>} : vector<8x432xbf16>, vector<432x128xbf16>, vector<8x128xf32> -> vector<8x128xf32>
    %60 = vector.broadcast %2 : vector<1x128xf32> to vector<8x128xf32>
    %61 = arith.addf %59, %60 : vector<8x128xf32>
    %cst_30 = arith.constant 0.000000e+00 : f32
    %62 = vector.broadcast %cst_30 : f32 to vector<8x128xf32>
    %63 = arith.maximumf %61, %62 : vector<8x128xf32>
    %64 = arith.maximumf %55, %63 : vector<8x128xf32>
    %c7 = arith.constant 7 : index
    %c0_31 = arith.constant 0 : index
    %c0_32 = arith.constant 0 : index
    %65 = vector.load %arg1[%c7, %c0_31, %c0_32] : memref<9x8x432xf32, #tpu.memory_space<vmem>>, vector<1x8x432xf32>
    %66 = vector.shape_cast %65 : vector<1x8x432xf32> to vector<8x432xf32>
    %67 = arith.truncf %66 : vector<8x432xf32> to vector<8x432xbf16>
    %cst_33 = arith.constant dense<0.000000e+00> : vector<8x128xf32>
    %68 = tpu.matmul %67, %1, %cst_33 {dimension_numbers = #tpu.dot_dimension_numbers<[1], [0], [0], [1], [0, 0, 1, 1], [], []>} : vector<8x432xbf16>, vector<432x128xbf16>, vector<8x128xf32> -> vector<8x128xf32>
    %69 = vector.broadcast %2 : vector<1x128xf32> to vector<8x128xf32>
    %70 = arith.addf %68, %69 : vector<8x128xf32>
    %cst_34 = arith.constant 0.000000e+00 : f32
    %71 = vector.broadcast %cst_34 : f32 to vector<8x128xf32>
    %72 = arith.maximumf %70, %71 : vector<8x128xf32>
    %73 = arith.maximumf %64, %72 : vector<8x128xf32>
    %c8 = arith.constant 8 : index
    %c0_35 = arith.constant 0 : index
    %c0_36 = arith.constant 0 : index
    %74 = vector.load %arg1[%c8, %c0_35, %c0_36] : memref<9x8x432xf32, #tpu.memory_space<vmem>>, vector<1x8x432xf32>
    %75 = vector.shape_cast %74 : vector<1x8x432xf32> to vector<8x432xf32>
    %76 = arith.truncf %75 : vector<8x432xf32> to vector<8x432xbf16>
    %cst_37 = arith.constant dense<0.000000e+00> : vector<8x128xf32>
    %77 = tpu.matmul %76, %1, %cst_37 {dimension_numbers = #tpu.dot_dimension_numbers<[1], [0], [0], [1], [0, 0, 1, 1], [], []>} : vector<8x432xbf16>, vector<432x128xbf16>, vector<8x128xf32> -> vector<8x128xf32>
    %78 = vector.broadcast %2 : vector<1x128xf32> to vector<8x128xf32>
    %79 = arith.addf %77, %78 : vector<8x128xf32>
    %cst_38 = arith.constant 0.000000e+00 : f32
    %80 = vector.broadcast %cst_38 : f32 to vector<8x128xf32>
    %81 = arith.maximumf %79, %80 : vector<8x128xf32>
    %82 = arith.maximumf %73, %81 : vector<8x128xf32>
    %c0_39 = arith.constant 0 : index
    %c0_40 = arith.constant 0 : index
    %83 = vector.load %arg4[%c0_39, %c0_40] : memref<8x128xf32, #tpu.memory_space<vmem>>, vector<8x128xf32>
    tpu.vector_store %arg4[%c0_39, %c0_40], %82 {strides = array<i32>} : memref<8x128xf32, #tpu.memory_space<vmem>>, vector<8x128xf32>,
    return
  }
  func.func @transform_0(%arg0: i32) -> (i32, i32, i32) {
    %c0_i32 = arith.constant 0 : i32
    %c0_i32_0 = arith.constant 0 : i32
    %c0_i32_1 = arith.constant 0 : i32
    return %c0_i32, %arg0, %c0_i32_0 : i32, i32, i32
  }
  func.func @transform_1(%arg0: i32) -> (i32, i32) {
    %c0_i32 = arith.constant 0 : i32
    %c0_i32_0 = arith.constant 0 : i32
    %c0_i32_1 = arith.constant 0 : i32
    return %c0_i32, %c0_i32_0 : i32, i32
  }
  func.func @transform_2(%arg0: i32) -> (i32, i32) {
    %c0_i32 = arith.constant 0 : i32
    %c0_i32_0 = arith.constant 0 : i32
    %c0_i32_1 = arith.constant 0 : i32
    return %c0_i32, %c0_i32_0 : i32, i32
  }
  func.func @transform_3(%arg0: i32) -> (i32, i32) {
    %c0_i32 = arith.constant 0 : i32
    %c0_i32_0 = arith.constant 0 : i32
    return %arg0, %c0_i32 : i32, i32
  }
}

</mosaic_0001>

<bundles_post_ra>
// kernel: forward.5
= control target key start
LH: loop header
LB: loop body
LE: loop exit
PB: predicated region body
PF: predicated region fallthrough
CT: control target
= control target key end

     0   :  { %s2548_s12 = smov 0   ;;  %s2550_s13 = smov 0   ;;  %s3329_s0 = inlined_call_operand.vmem [shape: f32[4,512,27], index: 0, kind: input, shape index: {}]   ;;  %s3330_s1 = inlined_call_operand.vmem [shape: f32[27,128], index: 1, kind: input, shape index: {}]   ;;  %s3331_s2 = inlined_call_operand.vmem [shape: f32[1,128], index: 2, kind: input, shape index: {}]   ;;  %s3332_s3 = inlined_call_operand.vmem [shape: f32[512,128], index: 3, kind: output, shape index: {}]  }
   0x1   :  { %s2552_s14 = smov 0  }
   0x2 LB: > { %s2087_s15 = sadd.s32 4294967295, %s2525_s14   ;;  %s2565_s16 = sadd.s32 1, %s2525_s14   ;;  %s2525_s14 = sphi %s2552_s14, %s3335_s14   ;;  %s2521_s13 = sphi %s2550_s13, %s3334_s13   ;;  %s2517_s12 = sphi %s2548_s12, %s3333_s12  }
   0x3   : > { %s17_s17 = ssub.s32 %s2525_s14, %s2565_s16  ;;  %s20_s18 = sadd.s32 1, %s2521_s13 }
   0x4   : > { %p18_p0 = scmp.eq.s32.totalorder %s17_s17, 0  ;;  %p27_p1 = scmp.ne.s32.totalorder %s2521_s13, %s2517_s12 }
   0x5   : > { %p28_p2 = scmp.eq.s32.totalorder %s2525_s14, 0  ;;  %p2090_p4 = scmp.ge.s32.totalorder %s2525_s14, 2 }
   0x6   : > { %s2574_s19 = scalar_select %p18_p0, %s2521_s13, %s20_s18  }
   0x7   : > { %p29_p3 = por %p28_p2, %p27_p1  ;;  %127 = sbr.rel (%p2090_p4) target bundleno = 82 (0x52), region = 24 }
   0xe   : > { %130 = sbr.rel (!%p29_p3) target bundleno = 82 (0x52), region = 28  ;;  %s132_s20 = sand.u32 (%p29_p3), 1, %s2521_s13  }
   0xf   : > { %s2261_s21 = sshll.u32 (%p29_p3), %s2525_s14, 8  ;;  %s2091_s22 = sshll.u32 (%p29_p3), %s132_s20, 10 }
  0x10   : > { %s2582_s25 = scalar_lea.vmem (%p29_p3), %s3329_s0, %s2261_s21  ;;  %s2587_s26 = scalar_lea.vmem (%p29_p3), [#allocation2], %s2091_s22 }
  0x11   : > { %v419_v0 = vld [vmem:[%s2582_s25] sm:$0xff] (%p29_p3)  ;;  %v421_v1 = vld [vmem:[%s2582_s25 + $0x8] sm:$0xff] (%p29_p3)  ;;  %v423_v2 = vld [vmem:[%s2582_s25 + $0x10] sm:$0xff] (%p29_p3) }
  0x12   : > { %420 = vst [vmem:[%s2587_s26] sm:$0xff] (%p29_p3), %v419_v0  ;;  %422 = vst [vmem:[%s2587_s26 + $0x8] sm:$0xff] (%p29_p3), %v421_v1  ;;  %v425_v3 = vld [vmem:[%s2582_s25 + $0x18] sm:$0xff] (%p29_p3)  ;;  %v427_v4 = vld [vmem:[%s2582_s25 + $0x20] sm:$0xff] (%p29_p3) }
  0x13   : > { %424 = vst [vmem:[%s2587_s26 + $0x10] sm:$0xff] (%p29_p3), %v423_v2  ;;  %v429_v5 = vld [vmem:[%s2582_s25 + $0x28] sm:$0xff] (%p29_p3)  ;;  %426 = vst [vmem:[%s2587_s26 + $0x18] sm:$0xff] (%p29_p3), %v425_v3  ;;  %v431_v6 = vld [vmem:[%s2582_s25 + $0x30] sm:$0xff] (%p29_p3) }
  0x14   : > { %428 = vst [vmem:[%s2587_s26 + $0x20] sm:$0xff] (%p29_p3), %v427_v4  ;;  %430 = vst [vmem:[%s2587_s26 + $0x28] sm:$0xff] (%p29_p3), %v429_v5  ;;  %v433_v7 = vld [vmem:[%s2582_s25 + $0x38] sm:$0xff] (%p29_p3)  ;;  %v435_v8 = vld [vmem:[%s2582_s25 + $0x40] sm:$0xff] (%p29_p3) }
  0x15   : > { %432 = vst [vmem:[%s2587_s26 + $0x30] sm:$0xff] %v431_v6  ;;  %434 = vst [vmem:[%s2587_s26 + $0x38] sm:$0xff] %v433_v7  ;;  %v437_v9 = vld [vmem:[%s2582_s25 + $0x48] sm:$0xff]  ;;  %v439_v10 = vld [vmem:[%s2582_s25 + $0x50] sm:$0xff] }
  0x16   : > { %436 = vst [vmem:[%s2587_s26 + $0x40] sm:$0xff] %v435_v8  ;;  %v441_v11 = vld [vmem:[%s2582_s25 + $0x58] sm:$0xff]  ;;  %438 = vst [vmem:[%s2587_s26 + $0x48] sm:$0xff] %v437_v9  ;;  %v443_v12 = vld [vmem:[%s2582_s25 + $0x60] sm:$0xff] }
  0x17   : > { %440 = vst [vmem:[%s2587_s26 + $0x50] sm:$0xff] %v439_v10  ;;  %442 = vst [vmem:[%s2587_s26 + $0x58] sm:$0xff] %v441_v11  ;;  %v445_v13 = vld [vmem:[%s2582_s25 + $0x68] sm:$0xff]  ;;  %v447_v14 = vld [vmem:[%s2582_s25 + $0x70] sm:$0xff] }
  0x18   : > { %444 = vst [vmem:[%s2587_s26 + $0x60] sm:$0xff] %v443_v12  ;;  %446 = vst [vmem:[%s2587_s26 + $0x68] sm:$0xff] %v445_v13  ;;  %v449_v15 = vld [vmem:[%s2582_s25 + $0x78] sm:$0xff]  ;;  %v451_v16 = vld [vmem:[%s2582_s25 + $0x80] sm:$0xff] }
  0x19   : > { %448 = vst [vmem:[%s2587_s26 + $0x70] sm:$0xff] %v447_v14  ;;  %v453_v17 = vld [vmem:[%s2582_s25 + $0x88] sm:$0xff]  ;;  %450 = vst [vmem:[%s2587_s26 + $0x78] sm:$0xff] %v449_v15  ;;  %v455_v18 = vld [vmem:[%s2582_s25 + $0x90] sm:$0xff] }
  0x1a   : > { %452 = vst [vmem:[%s2587_s26 + $0x80] sm:$0xff] %v451_v16  ;;  %454 = vst [vmem:[%s2587_s26 + $0x88] sm:$0xff] %v453_v17  ;;  %v457_v19 = vld [vmem:[%s2582_s25 + $0x98] sm:$0xff]  ;;  %v459_v20 = vld [vmem:[%s2582_s25 + $0xa0] sm:$0xff] }
  0x1b   : > { %456 = vst [vmem:[%s2587_s26 + $0x90] sm:$0xff] %v455_v18  ;;  %458 = vst [vmem:[%s2587_s26 + $0x98] sm:$0xff] %v457_v19  ;;  %v461_v21 = vld [vmem:[%s2582_s25 + $0xa8] sm:$0xff]  ;;  %v463_v22 = vld [vmem:[%s2582_s25 + $0xb0] sm:$0xff] }
  0x1c   : > { %460 = vst [vmem:[%s2587_s26 + $0xa0] sm:$0xff] %v459_v20  ;;  %v465_v23 = vld [vmem:[%s2582_s25 + $0xb8] sm:$0xff]  ;;  %462 = vst [vmem:[%s2587_s26 + $0xa8] sm:$0xff] %v461_v21  ;;  %v467_v24 = vld [vmem:[%s2582_s25 + $0xc0] sm:$0xff] }
  0x1d   : > { %464 = vst [vmem:[%s2587_s26 + $0xb0] sm:$0xff] %v463_v22  ;;  %466 = vst [vmem:[%s2587_s26 + $0xb8] sm:$0xff] %v465_v23  ;;  %v469_v25 = vld [vmem:[%s2582_s25 + $0xc8] sm:$0xff]  ;;  %v471_v26 = vld [vmem:[%s2582_s25 + $0xd0] sm:$0xff] }
  0x1e   : > { %468 = vst [vmem:[%s2587_s26 + $0xc0] sm:$0xff] %v467_v24  ;;  %470 = vst [vmem:[%s2587_s26 + $0xc8] sm:$0xff] %v469_v25  ;;  %v473_v27 = vld [vmem:[%s2582_s25 + $0xd8] sm:$0xff]  ;;  %v475_v28 = vld [vmem:[%s2582_s25 + $0xe0] sm:$0xff] }
  0x1f   : > { %472 = vst [vmem:[%s2587_s26 + $0xd0] sm:$0xff] %v471_v26  ;;  %v477_v29 = vld [vmem:[%s2582_s25 + $0xe8] sm:$0xff]  ;;  %474 = vst [vmem:[%s2587_s26 + $0xd8] sm:$0xff] %v473_v27  ;;  %v479_v30 = vld [vmem:[%s2582_s25 + $0xf0] sm:$0xff] }
  0x20   : > { %476 = vst [vmem:[%s2587_s26 + $0xe0] sm:$0xff] %v475_v28  ;;  %478 = vst [vmem:[%s2587_s26 + $0xe8] sm:$0xff] %v477_v29  ;;  %v481_v31 = vld [vmem:[%s2582_s25 + $0xf8] sm:$0xff]  ;;  %v483_v32 = vld [vmem:[%s2582_s25 + $0x200] sm:$0xff] }
  0x21   : > { %480 = vst [vmem:[%s2587_s26 + $0xf0] sm:$0xff] %v479_v30  ;;  %482 = vst [vmem:[%s2587_s26 + $0xf8] sm:$0xff] %v481_v31  ;;  %v485_v33 = vld [vmem:[%s2582_s25 + $0x208] sm:$0xff]  ;;  %v487_v34 = vld [vmem:[%s2582_s25 + $0x210] sm:$0xff] }
  0x22   : > { %484 = vst [vmem:[%s2587_s26 + $0x100] sm:$0xff] %v483_v32  ;;  %v489_v35 = vld [vmem:[%s2582_s25 + $0x218] sm:$0xff]  ;;  %486 = vst [vmem:[%s2587_s26 + $0x108] sm:$0xff] %v485_v33  ;;  %v491_v36 = vld [vmem:[%s2582_s25 + $0x220] sm:$0xff] }
  0x23   : > { %488 = vst [vmem:[%s2587_s26 + $0x110] sm:$0xff] %v487_v34  ;;  %490 = vst [vmem:[%s2587_s26 + $0x118] sm:$0xff] %v489_v35  ;;  %v493_v37 = vld [vmem:[%s2582_s25 + $0x228] sm:$0xff]  ;;  %v495_v38 = vld [vmem:[%s2582_s25 + $0x230] sm:$0xff] }
  0x24   : > { %492 = vst [vmem:[%s2587_s26 + $0x120] sm:$0xff] %v491_v36  ;;  %494 = vst [vmem:[%s2587_s26 + $0x128] sm:$0xff] %v493_v37  ;;  %v497_v39 = vld [vmem:[%s2582_s25 + $0x238] sm:$0xff]  ;;  %v499_v40 = vld [vmem:[%s2582_s25 + $0x240] sm:$0xff] }
  0x25   : > { %496 = vst [vmem:[%s2587_s26 + $0x130] sm:$0xff] %v495_v38  ;;  %v501_v41 = vld [vmem:[%s2582_s25 + $0x248] sm:$0xff]  ;;  %498 = vst [vmem:[%s2587_s26 + $0x138] sm:$0xff] %v497_v39  ;;  %v503_v42 = vld [vmem:[%s2582_s25 + $0x250] sm:$0xff] }
  0x26   : > { %500 = vst [vmem:[%s2587_s26 + $0x140] sm:$0xff] %v499_v40  ;;  %502 = vst [vmem:[%s2587_s26 + $0x148] sm:$0xff] %v501_v41  ;;  %v505_v43 = vld [vmem:[%s2582_s25 + $0x258] sm:$0xff]  ;;  %v507_v44 = vld [vmem:[%s2582_s25 + $0x260] sm:$0xff] }
  0x27   : > { %504 = vst [vmem:[%s2587_s26 + $0x150] sm:$0xff] %v503_v42  ;;  %506 = vst [vmem:[%s2587_s26 + $0x158] sm:$0xff] %v505_v43  ;;  %v509_v45 = vld [vmem:[%s2582_s25 + $0x268] sm:$0xff]  ;;  %v511_v46 = vld [vmem:[%s2582_s25 + $0x270] sm:$0xff] }
  0x28   : > { %508 = vst [vmem:[%s2587_s26 + $0x160] sm:$0xff] %v507_v44  ;;  %v513_v47 = vld [vmem:[%s2582_s25 + $0x278] sm:$0xff]  ;;  %510 = vst [vmem:[%s2587_s26 + $0x168] sm:$0xff] %v509_v45  ;;  %v515_v48 = vld [vmem:[%s2582_s25 + $0x280] sm:$0xff] }
  0x29   : > { %512 = vst [vmem:[%s2587_s26 + $0x170] sm:$0xff] %v511_v46  ;;  %514 = vst [vmem:[%s2587_s26 + $0x178] sm:$0xff] %v513_v47  ;;  %v517_v49 = vld [vmem:[%s2582_s25 + $0x288] sm:$0xff]  ;;  %v519_v50 = vld [vmem:[%s2582_s25 + $0x290] sm:$0xff] }
  0x2a   : > { %516 = vst [vmem:[%s2587_s26 + $0x180] sm:$0xff] %v515_v48  ;;  %518 = vst [vmem:[%s2587_s26 + $0x188] sm:$0xff] %v517_v49  ;;  %v521_v51 = vld [vmem:[%s2582_s25 + $0x298] sm:$0xff]  ;;  %v523_v52 = vld [vmem:[%s2582_s25 + $0x2a0] sm:$0xff] }
  0x2b   : > { %520 = vst [vmem:[%s2587_s26 + $0x190] sm:$0xff] %v519_v50  ;;  %v525_v53 = vld [vmem:[%s2582_s25 + $0x2a8] sm:$0xff]  ;;  %522 = vst [vmem:[%s2587_s26 + $0x198] sm:$0xff] %v521_v51  ;;  %v527_v54 = vld [vmem:[%s2582_s25 + $0x2b0] sm:$0xff] }
  0x2c   : > { %524 = vst [vmem:[%s2587_s26 + $0x1a0] sm:$0xff] %v523_v52  ;;  %526 = vst [vmem:[%s2587_s26 + $0x1a8] sm:$0xff] %v525_v53  ;;  %v529_v55 = vld [vmem:[%s2582_s25 + $0x2b8] sm:$0xff]  ;;  %v531_v56 = vld [vmem:[%s2582_s25 + $0x2c0] sm:$0xff] }
  0x2d   : > { %528 = vst [vmem:[%s2587_s26 + $0x1b0] sm:$0xff] %v527_v54  ;;  %530 = vst [vmem:[%s2587_s26 + $0x1b8] sm:$0xff] %v529_v55  ;;  %v533_v57 = vld [vmem:[%s2582_s25 + $0x2c8] sm:$0xff]  ;;  %v535_v58 = vld [vmem:[%s2582_s25 + $0x2d0] sm:$0xff] }
  0x2e   : > { %532 = vst [vmem:[%s2587_s26 + $0x1c0] sm:$0xff] %v531_v56  ;;  %v537_v59 = vld [vmem:[%s2582_s25 + $0x2d8] sm:$0xff]  ;;  %534 = vst [vmem:[%s2587_s26 + $0x1c8] sm:$0xff] %v533_v57  ;;  %v539_v60 = vld [vmem:[%s2582_s25 + $0x2e0] sm:$0xff] }
  0x2f   : > { %536 = vst [vmem:[%s2587_s26 + $0x1d0] sm:$0xff] %v535_v58  ;;  %538 = vst [vmem:[%s2587_s26 + $0x1d8] sm:$0xff] %v537_v59  ;;  %v541_v61 = vld [vmem:[%s2582_s25 + $0x2e8] sm:$0xff]  ;;  %v543_v62 = vld [vmem:[%s2582_s25 + $0x2f0] sm:$0xff] }
  0x30   : > { %540 = vst [vmem:[%s2587_s26 + $0x1e0] sm:$0xff] %v539_v60  ;;  %542 = vst [vmem:[%s2587_s26 + $0x1e8] sm:$0xff] %v541_v61  ;;  %v545_v63 = vld [vmem:[%s2582_s25 + $0x2f8] sm:$0xff]  ;;  %v547_v0 = vld [vmem:[%s2582_s25 + $0x400] sm:$0xff] }
  0x31   : > { %544 = vst [vmem:[%s2587_s26 + $0x1f0] sm:$0xff] %v543_v62  ;;  %v549_v1 = vld [vmem:[%s2582_s25 + $0x408] sm:$0xff]  ;;  %546 = vst [vmem:[%s2587_s26 + $0x1f8] sm:$0xff] %v545_v63  ;;  %v551_v2 = vld [vmem:[%s2582_s25 + $0x410] sm:$0xff] }
  0x32   : > { %548 = vst [vmem:[%s2587_s26 + $0x200] sm:$0xff] %v547_v0  ;;  %550 = vst [vmem:[%s2587_s26 + $0x208] sm:$0xff] %v549_v1  ;;  %v553_v3 = vld [vmem:[%s2582_s25 + $0x418] sm:$0xff]  ;;  %v555_v4 = vld [vmem:[%s2582_s25 + $0x420] sm:$0xff] }
  0x33   : > { %552 = vst [vmem:[%s2587_s26 + $0x210] sm:$0xff] %v551_v2  ;;  %554 = vst [vmem:[%s2587_s26 + $0x218] sm:$0xff] %v553_v3  ;;  %v557_v5 = vld [vmem:[%s2582_s25 + $0x428] sm:$0xff]  ;;  %v559_v6 = vld [vmem:[%s2582_s25 + $0x430] sm:$0xff] }
  0x34   : > { %556 = vst [vmem:[%s2587_s26 + $0x220] sm:$0xff] %v555_v4  ;;  %v561_v7 = vld [vmem:[%s2582_s25 + $0x438] sm:$0xff]  ;;  %558 = vst [vmem:[%s2587_s26 + $0x228] sm:$0xff] %v557_v5  ;;  %v563_v8 = vld [vmem:[%s2582_s25 + $0x440] sm:$0xff] }
  0x35   : > { %560 = vst [vmem:[%s2587_s26 + $0x230] sm:$0xff] %v559_v6  ;;  %562 = vst [vmem:[%s2587_s26 + $0x238] sm:$0xff] %v561_v7  ;;  %v565_v9 = vld [vmem:[%s2582_s25 + $0x448] sm:$0xff]  ;;  %v567_v10 = vld [vmem:[%s2582_s25 + $0x450] sm:$0xff] }
  0x36   : > { %564 = vst [vmem:[%s2587_s26 + $0x240] sm:$0xff] %v563_v8  ;;  %566 = vst [vmem:[%s2587_s26 + $0x248] sm:$0xff] %v565_v9  ;;  %v569_v11 = vld [vmem:[%s2582_s25 + $0x458] sm:$0xff]  ;;  %v571_v12 = vld [vmem:[%s2582_s25 + $0x460] sm:$0xff] }
  0x37   : > { %568 = vst [vmem:[%s2587_s26 + $0x250] sm:$0xff] %v567_v10  ;;  %v573_v13 = vld [vmem:[%s2582_s25 + $0x468] sm:$0xff]  ;;  %570 = vst [vmem:[%s2587_s26 + $0x258] sm:$0xff] %v569_v11  ;;  %v575_v14 = vld [vmem:[%s2582_s25 + $0x470] sm:$0xff] }
  0x38   : > { %572 = vst [vmem:[%s2587_s26 + $0x260] sm:$0xff] %v571_v12  ;;  %574 = vst [vmem:[%s2587_s26 + $0x268] sm:$0xff] %v573_v13  ;;  %v577_v15 = vld [vmem:[%s2582_s25 + $0x478] sm:$0xff]  ;;  %v579_v16 = vld [vmem:[%s2582_s25 + $0x480] sm:$0xff] }
  0x39   : > { %576 = vst [vmem:[%s2587_s26 + $0x270] sm:$0xff] %v575_v14  ;;  %578 = vst [vmem:[%s2587_s26 + $0x278] sm:$0xff] %v577_v15  ;;  %v581_v17 = vld [vmem:[%s2582_s25 + $0x488] sm:$0xff]  ;;  %v583_v18 = vld [vmem:[%s2582_s25 + $0x490] sm:$0xff] }
  0x3a   : > { %580 = vst [vmem:[%s2587_s26 + $0x280] sm:$0xff] %v579_v16  ;;  %v585_v19 = vld [vmem:[%s2582_s25 + $0x498] sm:$0xff]  ;;  %582 = vst [vmem:[%s2587_s26 + $0x288] sm:$0xff] %v581_v17  ;;  %v587_v20 = vld [vmem:[%s2582_s25 + $0x4a0] sm:$0xff] }
  0x3b   : > { %584 = vst [vmem:[%s2587_s26 + $0x290] sm:$0xff] %v583_v18  ;;  %586 = vst [vmem:[%s2587_s26 + $0x298] sm:$0xff] %v585_v19  ;;  %v589_v21 = vld [vmem:[%s2582_s25 + $0x4a8] sm:$0xff]  ;;  %v591_v22 = vld [vmem:[%s2582_s25 + $0x4b0] sm:$0xff] }
  0x3c   : > { %588 = vst [vmem:[%s2587_s26 + $0x2a0] sm:$0xff] %v587_v20  ;;  %590 = vst [vmem:[%s2587_s26 + $0x2a8] sm:$0xff] %v589_v21  ;;  %v593_v23 = vld [vmem:[%s2582_s25 + $0x4b8] sm:$0xff]  ;;  %v595_v24 = vld [vmem:[%s2582_s25 + $0x4c0] sm:$0xff] }
  0x3d   : > { %592 = vst [vmem:[%s2587_s26 + $0x2b0] sm:$0xff] %v591_v22  ;;  %v597_v25 = vld [vmem:[%s2582_s25 + $0x4c8] sm:$0xff]  ;;  %594 = vst [vmem:[%s2587_s26 + $0x2b8] sm:$0xff] %v593_v23  ;;  %v599_v26 = vld [vmem:[%s2582_s25 + $0x4d0] sm:$0xff] }
  0x3e   : > { %596 = vst [vmem:[%s2587_s26 + $0x2c0] sm:$0xff] %v595_v24  ;;  %598 = vst [vmem:[%s2587_s26 + $0x2c8] sm:$0xff] %v597_v25  ;;  %v601_v27 = vld [vmem:[%s2582_s25 + $0x4d8] sm:$0xff]  ;;  %v603_v28 = vld [vmem:[%s2582_s25 + $0x4e0] sm:$0xff] }
  0x3f   : > { %600 = vst [vmem:[%s2587_s26 + $0x2d0] sm:$0xff] %v599_v26  ;;  %602 = vst [vmem:[%s2587_s26 + $0x2d8] sm:$0xff] %v601_v27  ;;  %v605_v29 = vld [vmem:[%s2582_s25 + $0x4e8] sm:$0xff]  ;;  %v607_v30 = vld [vmem:[%s2582_s25 + $0x4f0] sm:$0xff] }
  0x40   : > { %604 = vst [vmem:[%s2587_s26 + $0x2e0] sm:$0xff] %v603_v28  ;;  %v609_v31 = vld [vmem:[%s2582_s25 + $0x4f8] sm:$0xff]  ;;  %606 = vst [vmem:[%s2587_s26 + $0x2e8] sm:$0xff] %v605_v29  ;;  %v611_v32 = vld [vmem:[%s2582_s25 + $0x600] sm:$0xff] }
  0x41   : > { %608 = vst [vmem:[%s2587_s26 + $0x2f0] sm:$0xff] %v607_v30  ;;  %610 = vst [vmem:[%s2587_s26 + $0x2f8] sm:$0xff] %v609_v31  ;;  %v613_v33 = vld [vmem:[%s2582_s25 + $0x608] sm:$0xff]  ;;  %v615_v34 = vld [vmem:[%s2582_s25 + $0x610] sm:$0xff] }
  0x42   : > { %612 = vst [vmem:[%s2587_s26 + $0x300] sm:$0xff] %v611_v32  ;;  %614 = vst [vmem:[%s2587_s26 + $0x308] sm:$0xff] %v613_v33  ;;  %v617_v35 = vld [vmem:[%s2582_s25 + $0x618] sm:$0xff]  ;;  %v619_v36 = vld [vmem:[%s2582_s25 + $0x620] sm:$0xff] }
  0x43   : > { %616 = vst [vmem:[%s2587_s26 + $0x310] sm:$0xff] %v615_v34  ;;  %v621_v37 = vld [vmem:[%s2582_s25 + $0x628] sm:$0xff]  ;;  %618 = vst [vmem:[%s2587_s26 + $0x318] sm:$0xff] %v617_v35  ;;  %v623_v38 = vld [vmem:[%s2582_s25 + $0x630] sm:$0xff] }
  0x44   : > { %620 = vst [vmem:[%s2587_s26 + $0x320] sm:$0xff] %v619_v36  ;;  %622 = vst [vmem:[%s2587_s26 + $0x328] sm:$0xff] %v621_v37  ;;  %v625_v39 = vld [vmem:[%s2582_s25 + $0x638] sm:$0xff]  ;;  %v627_v40 = vld [vmem:[%s2582_s25 + $0x640] sm:$0xff] }
  0x45   : > { %624 = vst [vmem:[%s2587_s26 + $0x330] sm:$0xff] %v623_v38  ;;  %626 = vst [vmem:[%s2587_s26 + $0x338] sm:$0xff] %v625_v39  ;;  %v629_v41 = vld [vmem:[%s2582_s25 + $0x648] sm:$0xff]  ;;  %v631_v42 = vld [vmem:[%s2582_s25 + $0x650] sm:$0xff] }
  0x46   : > { %628 = vst [vmem:[%s2587_s26 + $0x340] sm:$0xff] %v627_v40  ;;  %v633_v43 = vld [vmem:[%s2582_s25 + $0x658] sm:$0xff]  ;;  %630 = vst [vmem:[%s2587_s26 + $0x348] sm:$0xff] %v629_v41  ;;  %v635_v44 = vld [vmem:[%s2582_s25 + $0x660] sm:$0xff] }
  0x47   : > { %632 = vst [vmem:[%s2587_s26 + $0x350] sm:$0xff] %v631_v42  ;;  %634 = vst [vmem:[%s2587_s26 + $0x358] sm:$0xff] %v633_v43  ;;  %v637_v45 = vld [vmem:[%s2582_s25 + $0x668] sm:$0xff]  ;;  %v639_v46 = vld [vmem:[%s2582_s25 + $0x670] sm:$0xff] }
  0x48   : > { %636 = vst [vmem:[%s2587_s26 + $0x360] sm:$0xff] %v635_v44  ;;  %638 = vst [vmem:[%s2587_s26 + $0x368] sm:$0xff] %v637_v45  ;;  %v641_v47 = vld [vmem:[%s2582_s25 + $0x678] sm:$0xff]  ;;  %v643_v48 = vld [vmem:[%s2582_s25 + $0x680] sm:$0xff] }
  0x49   : > { %640 = vst [vmem:[%s2587_s26 + $0x370] sm:$0xff] %v639_v46  ;;  %v645_v49 = vld [vmem:[%s2582_s25 + $0x688] sm:$0xff]  ;;  %642 = vst [vmem:[%s2587_s26 + $0x378] sm:$0xff] %v641_v47  ;;  %v647_v50 = vld [vmem:[%s2582_s25 + $0x690] sm:$0xff] }
  0x4a   : > { %644 = vst [vmem:[%s2587_s26 + $0x380] sm:$0xff] %v643_v48  ;;  %646 = vst [vmem:[%s2587_s26 + $0x388] sm:$0xff] %v645_v49  ;;  %v649_v51 = vld [vmem:[%s2582_s25 + $0x698] sm:$0xff]  ;;  %v651_v52 = vld [vmem:[%s2582_s25 + $0x6a0] sm:$0xff] }
  0x4b   : > { %648 = vst [vmem:[%s2587_s26 + $0x390] sm:$0xff] %v647_v50  ;;  %650 = vst [vmem:[%s2587_s26 + $0x398] sm:$0xff] %v649_v51  ;;  %v653_v53 = vld [vmem:[%s2582_s25 + $0x6a8] sm:$0xff]  ;;  %v655_v54 = vld [vmem:[%s2582_s25 + $0x6b0] sm:$0xff] }
  0x4c   : > { %652 = vst [vmem:[%s2587_s26 + $0x3a0] sm:$0xff] %v651_v52  ;;  %v657_v55 = vld [vmem:[%s2582_s25 + $0x6b8] sm:$0xff]  ;;  %654 = vst [vmem:[%s2587_s26 + $0x3a8] sm:$0xff] %v653_v53  ;;  %v659_v56 = vld [vmem:[%s2582_s25 + $0x6c0] sm:$0xff] }
  0x4d   : > { %656 = vst [vmem:[%s2587_s26 + $0x3b0] sm:$0xff] %v655_v54  ;;  %658 = vst [vmem:[%s2587_s26 + $0x3b8] sm:$0xff] %v657_v55  ;;  %v661_v57 = vld [vmem:[%s2582_s25 + $0x6c8] sm:$0xff]  ;;  %v663_v58 = vld [vmem:[%s2582_s25 + $0x6d0] sm:$0xff] }
  0x4e   : > { %660 = vst [vmem:[%s2587_s26 + $0x3c0] sm:$0xff] %v659_v56  ;;  %662 = vst [vmem:[%s2587_s26 + $0x3c8] sm:$0xff] %v661_v57  ;;  %v665_v59 = vld [vmem:[%s2582_s25 + $0x6d8] sm:$0xff]  ;;  %v667_v60 = vld [vmem:[%s2582_s25 + $0x6e0] sm:$0xff] }
  0x4f   : > { %664 = vst [vmem:[%s2587_s26 + $0x3d0] sm:$0xff] %v663_v58  ;;  %v669_v61 = vld [vmem:[%s2582_s25 + $0x6e8] sm:$0xff]  ;;  %666 = vst [vmem:[%s2587_s26 + $0x3d8] sm:$0xff] %v665_v59  ;;  %v671_v62 = vld [vmem:[%s2582_s25 + $0x6f0] sm:$0xff] }
  0x50   : > { %668 = vst [vmem:[%s2587_s26 + $0x3e0] sm:$0xff] %v667_v60  ;;  %670 = vst [vmem:[%s2587_s26 + $0x3e8] sm:$0xff] %v669_v61  ;;  %v673_v63 = vld [vmem:[%s2582_s25 + $0x6f8] sm:$0xff] }
  0x51   : > { %672 = vst [vmem:[%s2587_s26 + $0x3f0] sm:$0xff] %v671_v62  ;;  %674 = vst [vmem:[%s2587_s26 + $0x3f8] sm:$0xff] %v673_v63 }
  0x52 PF: > { %p2094_p5 = scmp.ge.s32.totalorder %s2525_s14, 1  ;;  %p679_p6 = scmp.lt.s32.totalorder %s2525_s14, 3 }
  0x54   : > { %p680_p7 = pnand %p2094_p5, %p679_p6 }
  0x55   : > { %v717_v0 = vld [vmem:[%s3330_s1] sm:$0xff] (!%p680_p7)  ;;  %v718_v1 = vld [vmem:[%s3330_s1 + $0x8] sm:$0xff] (!%p680_p7)  ;;  %v719_v2 = vld [vmem:[%s3330_s1 + $0x10] sm:$0xff] (!%p680_p7)  ;;  %vm827_vm0 = vcmask (!%p680_p7), 1044480   ;;  %vm828_vm1 = vcmask (!%p680_p7), 1045504   ;;  %v2527_v5 = vmov (!%p680_p7), 65535  }
  0x56   : > { %683 = sbr.rel (%p680_p7) target bundleno = 440 (0x1b8), region = 66  ;;  %v721_v3 = vpack.c.bf16 (!%p680_p7), %v718_v1, %v717_v0  ;;  %v720_v4 = vld [vmem:[%s3330_s1 + $0x18] sm:$0x7] (!%p680_p7)  ;;  %v829_v6 = vsel (!%p680_p7), %vm827_vm0, 4294967295, %v2527_v5  ;;  %s686_s8 = sand.u32 (!%p680_p7), 1, %s2517_s12   ;;  %vm778_vm2 = vcmask (!%p680_p7), 220160  }
  0x57   : > { %v722_v7 = vpack.c.bf16 (!%p680_p7), %v720_v4, %v719_v2  ;;  %v830_v8 = vsel (!%p680_p7), %vm828_vm1, %v829_v6, 0  ;;  %s2095_s9 = sshll.u32 (!%p680_p7), %s686_s8, 10  ;;  %s2096_s17 = sshll.u32 (!%p680_p7), %s2087_s15, 5 }
  0x58   : > { %2334 = vmatprep.subr.bf16.mxu0 (!%p680_p7), %v721_v3  ;;  %2370 = vmatprep.subr.bf16.mxu1 (!%p680_p7), %v721_v3  ;;  %s2857_s10 = scalar_lea.vmem (!%p680_p7), [#allocation2], %s2095_s9  ;;  %p711_p8 = scmp.lt.s32.totalorder (!%p680_p7), %s2096_s17, 63 }
  0x59   : > { %2335 = vmatpush3.bf16.msra.mxu0 (!%p680_p7), %v721_v3  ;;  %2371 = vmatpush3.bf16.msra.mxu1 (!%p680_p7), %v721_v3  ;;  %v832_v9 = vand.u32 (!%p680_p7), %v830_v8, %v722_v7  ;;  %v724_v10 = vld [vmem:[%s2857_s10] sm:$0xff] (!%p680_p7)  ;;  %v725_v11 = vld [vmem:[%s2857_s10 + $0x8] sm:$0xff] (!%p680_p7)  ;;  %v726_v15 = vld [vmem:[%s2857_s10 + $0x10] sm:$0xff] (!%p680_p7) }
  0x5a   : > { %v2115_v12 = vld [vmem:[%s2857_s10 + $0x100] sm:$0xff] (!%p680_p7)  ;;  %v756_v13 = vpack.c.bf16 (!%p680_p7), %v725_v11, %v724_v10  ;;  %v2116_v14 = vld [vmem:[%s2857_s10 + $0x108] sm:$0xff] (!%p680_p7)  ;;  %v727_v16 = vld [vmem:[%s2857_s10 + $0x18] sm:$0xff] (!%p680_p7) }
  0x5b   : > { %2336 = vmatprep.subr.bf16.mxu0 (!%p680_p7), %v832_v9  ;;  %2372 = vmatprep.subr.bf16.mxu1 (!%p680_p7), %v832_v9  ;;  %v1060_v17 = vpack.c.bf16 (!%p680_p7), %v2116_v14, %v2115_v12  ;;  %v2117_v18 = vld [vmem:[%s2857_s10 + $0x110] sm:$0xff] (!%p680_p7)  ;;  %v2118_v19 = vld [vmem:[%s2857_s10 + $0x118] sm:$0xff] (!%p680_p7)  ;;  %v728_v20 = vld [vmem:[%s2857_s10 + $0x20] sm:$0xff] (!%p680_p7)  ;;  %v757_v21 = vpack.c.bf16 (!%p680_p7), %v727_v16, %v726_v15 }
  0x5c   : > { %2338 = vmatprep.mubr.msk.bf16.mxu0 (!%p680_p7), %vm778_vm2, %v756_v13  ;;  %v1061_v22 = vpack.c.bf16 (!%p680_p7), %v2118_v19, %v2117_v18  ;;  %v729_v23 = vld [vmem:[%s2857_s10 + $0x28] sm:$0xff] (!%p680_p7)  ;;  %v2119_v24 = vld [vmem:[%s2857_s10 + $0x120] sm:$0xff] (!%p680_p7)  ;;  %v730_v28 = vld [vmem:[%s2857_s10 + $0x30] sm:$0xff] (!%p680_p7) }
  0x5d   : > { %v2120_v25 = vld [vmem:[%s2857_s10 + $0x128] sm:$0xff]  ;;  %2337 = vmatpush3.bf16.msra.mxu0 %v832_v9  ;;  %2373 = vmatpush3.bf16.msra.mxu1 %v832_v9  ;;  %v758_v26 = vpack.c.bf16 %v729_v23, %v728_v20  ;;  %v731_v29 = vld [vmem:[%s2857_s10 + $0x38] sm:$0xff]  ;;  %v2121_v30 = vld [vmem:[%s2857_s10 + $0x130] sm:$0xff]  ;;  %s3337_s17 = smov (!%p711_p8, %s2096_s17), 63 }
  0x5e   : > { %2374 = vmatprep.mubr.msk.bf16.mxu1 %vm778_vm2, %v1060_v17  ;;  %2406 = vmatprep.subr.bf16.mxu0 %v721_v3  ;;  %v1062_v27 = vpack.c.bf16 %v2120_v25, %v2119_v24  ;;  %v2122_v31 = vld [vmem:[%s2857_s10 + $0x138] sm:$0xff]  ;;  %v732_v32 = vld [vmem:[%s2857_s10 + $0x40] sm:$0xff]  ;;  %v733_v33 = vld [vmem:[%s2857_s10 + $0x48] sm:$0xff]  ;;  %v759_v36 = vpack.c.bf16 %v731_v29, %v730_v28  ;;  %s2097_s14 = sshll.u32 %s3337_s17, 3 }
  0x5f   : > { %2442 = vmatprep.subr.bf16.mxu1 %v721_v3  ;;  %v2123_v34 = vld [vmem:[%s2857_s10 + $0x140] sm:$0xff]  ;;  %v2124_v35 = vld [vmem:[%s2857_s10 + $0x148] sm:$0xff]  ;;  %v1063_v37 = vpack.c.bf16 %v2122_v31, %v2121_v30  ;;  %v760_v38 = vpack.c.bf16 %v733_v33, %v732_v32  ;;  %v734_v40 = vld [vmem:[%s2857_s10 + $0x50] sm:$0xff]  ;;  %s3198_s20 = scalar_lea.vmem %s3332_s3, %s2097_s14 }
  0x60   : > { %2339 = vmatmul.mubr.msk.bf16.vlgmr.msra.gmra.mrb[0].mxu0 %vm778_vm2, %v757_v21  ;;  %2375 = vmatmul.mubr.msk.bf16.vlgmr.msra.gmra.mrb[0].mxu1 %vm778_vm2, %v1061_v22  ;;  %v1064_v39 = vpack.c.bf16 %v2124_v35, %v2123_v34  ;;  %v735_v41 = vld [vmem:[%s2857_s10 + $0x58] sm:$0xff]  ;;  %v2125_v42 = vld [vmem:[%s2857_s10 + $0x150] sm:$0xff]  ;;  %v736_v44 = vld [vmem:[%s2857_s10 + $0x60] sm:$0xff] }
  0x61   : > { %2407 = vmatpush3.bf16.msra.mxu0 %v721_v3  ;;  %2443 = vmatpush3.bf16.msra.mxu1 %v721_v3  ;;  %v2126_v43 = vld [vmem:[%s2857_s10 + $0x158] sm:$0xff]  ;;  %v737_v45 = vld [vmem:[%s2857_s10 + $0x68] sm:$0xff]  ;;  %v2127_v46 = vld [vmem:[%s2857_s10 + $0x160] sm:$0xff]  ;;  %v761_v48 = vpack.c.bf16 %v735_v41, %v734_v40 }
  0x62   : > { %2342 = vmatprep.mubr.msk.bf16.mxu0 %vm778_vm2, %v758_v26  ;;  %2378 = vmatprep.mubr.msk.bf16.mxu1 %vm778_vm2, %v1062_v27  ;;  %v2128_v47 = vld [vmem:[%s2857_s10 + $0x168] sm:$0xff]  ;;  %v1065_v49 = vpack.c.bf16 %v2126_v43, %v2125_v42  ;;  %v762_v50 = vpack.c.bf16 %v737_v45, %v736_v44  ;;  %v738_v52 = vld [vmem:[%s2857_s10 + $0x70] sm:$0xff]  ;;  %v739_v53 = vld [vmem:[%s2857_s10 + $0x78] sm:$0xff] }
  0x63   : > { %2408 = vmatprep.subr.bf16.mxu0 %v832_v9  ;;  %2444 = vmatprep.subr.bf16.mxu1 %v832_v9  ;;  %v1066_v51 = vpack.c.bf16 %v2128_v47, %v2127_v46  ;;  %v2129_v54 = vld [vmem:[%s2857_s10 + $0x170] sm:$0xff]  ;;  %v2130_v55 = vld [vmem:[%s2857_s10 + $0x178] sm:$0xff]  ;;  %v740_v56 = vld [vmem:[%s2857_s10 + $0x80] sm:$0xff]  ;;  %v763_v60 = vpack.c.bf16 %v739_v53, %v738_v52 }
  0x64   : > { %v741_v57 = vld [vmem:[%s2857_s10 + $0x88] sm:$0xff]  ;;  %v2131_v58 = vld [vmem:[%s2857_s10 + $0x180] sm:$0xff]  ;;  %v1067_v61 = vpack.c.bf16 %v2130_v55, %v2129_v54  ;;  %v742_v0 = vld [vmem:[%s2857_s10 + $0x90] sm:$0xff] }
  0x65   : > { %2409 = vmatpush3.bf16.msra.mxu0 %v832_v9  ;;  %2445 = vmatpush3.bf16.msra.mxu1 %v832_v9  ;;  %v2132_v59 = vld [vmem:[%s2857_s10 + $0x188] sm:$0xff]  ;;  %v764_v62 = vpack.c.bf16 %v741_v57, %v740_v56  ;;  %v743_v1 = vld [vmem:[%s2857_s10 + $0x98] sm:$0xff]  ;;  %v2133_v2 = vld [vmem:[%s2857_s10 + $0x190] sm:$0xff] }
  0x66   : > { %v1068_v63 = vpack.c.bf16 %v2132_v59, %v2131_v58  ;;  %v2134_v3 = vld [vmem:[%s2857_s10 + $0x198] sm:$0xff]  ;;  %v744_v4 = vld [vmem:[%s2857_s10 + $0xa0] sm:$0xff]  ;;  %v745_v5 = vld [vmem:[%s2857_s10 + $0xa8] sm:$0xff]  ;;  %v765_v8 = vpack.c.bf16 %v743_v1, %v742_v0 }
  0x67   : > { %v2135_v6 = vld [vmem:[%s2857_s10 + $0x1a0] sm:$0xff]  ;;  %v2136_v7 = vld [vmem:[%s2857_s10 + $0x1a8] sm:$0xff]  ;;  %v1069_v9 = vpack.c.bf16 %v2134_v3, %v2133_v2  ;;  %v766_v10 = vpack.c.bf16 %v745_v5, %v744_v4  ;;  %v746_v12 = vld [vmem:[%s2857_s10 + $0xb0] sm:$0xff] }
  0x68   : > { %2343 = vmatmul.mubr.msk.bf16.gmra.mrb[4].mxu0 %vm778_vm2, %v759_v36  ;;  %2379 = vmatmul.mubr.msk.bf16.gmra.mrb[4].mxu1 %vm778_vm2, %v1063_v37  ;;  %v1070_v11 = vpack.c.bf16 %v2136_v7, %v2135_v6  ;;  %v747_v13 = vld [vmem:[%s2857_s10 + $0xb8] sm:$0xff]  ;;  %v2137_v14 = vld [vmem:[%s2857_s10 + $0x1b0] sm:$0xff]  ;;  %v748_v16 = vld [vmem:[%s2857_s10 + $0xc0] sm:$0xff] }
  0x69   : > { %2346 = vmatprep.mubr.msk.bf16.mxu0 %vm778_vm2, %v760_v38  ;;  %2382 = vmatprep.mubr.msk.bf16.mxu1 %vm778_vm2, %v1064_v39  ;;  %v2138_v15 = vld [vmem:[%s2857_s10 + $0x1b8] sm:$0xff]  ;;  %v749_v17 = vld [vmem:[%s2857_s10 + $0xc8] sm:$0xff]  ;;  %v2139_v18 = vld [vmem:[%s2857_s10 + $0x1c0] sm:$0xff]  ;;  %v767_v20 = vpack.c.bf16 %v747_v13, %v746_v12 }
  0x6a   : > { %v2140_v19 = vld [vmem:[%s2857_s10 + $0x1c8] sm:$0xff]  ;;  %v1071_v21 = vpack.c.bf16 %v2138_v15, %v2137_v14  ;;  %v768_v22 = vpack.c.bf16 %v749_v17, %v748_v16  ;;  %v750_v24 = vld [vmem:[%s2857_s10 + $0xd0] sm:$0xff]  ;;  %v751_v25 = vld [vmem:[%s2857_s10 + $0xd8] sm:$0xff] }
  0x6b   : > { %v1072_v23 = vpack.c.bf16 %v2140_v19, %v2139_v18  ;;  %v2141_v26 = vld [vmem:[%s2857_s10 + $0x1d0] sm:$0xff]  ;;  %v2142_v27 = vld [vmem:[%s2857_s10 + $0x1d8] sm:$0xff]  ;;  %v752_v28 = vld [vmem:[%s2857_s10 + $0xe0] sm:$0xff]  ;;  %v769_v32 = vpack.c.bf16 %v751_v25, %v750_v24 }
  0x6c   : > { %v753_v29 = vld [vmem:[%s2857_s10 + $0xe8] sm:$0xff]  ;;  %v2143_v30 = vld [vmem:[%s2857_s10 + $0x1e0] sm:$0xff]  ;;  %v1073_v33 = vpack.c.bf16 %v2142_v27, %v2141_v26  ;;  %v754_v36 = vld [vmem:[%s2857_s10 + $0xf0] sm:$0xff] }
  0x6d   : > { %v2144_v31 = vld [vmem:[%s2857_s10 + $0x1e8] sm:$0xff]  ;;  %v770_v34 = vpack.c.bf16 %v753_v29, %v752_v28  ;;  %v755_v37 = vld [vmem:[%s2857_s10 + $0xf8] sm:$0xff]  ;;  %v2145_v38 = vld [vmem:[%s2857_s10 + $0x1f0] sm:$0xff] }
  0x6e   : > { %v1074_v35 = vpack.c.bf16 %v2144_v31, %v2143_v30  ;;  %v2146_v39 = vld [vmem:[%s2857_s10 + $0x1f8] sm:$0xff]  ;;  %v2163_v40 = vld [vmem:[%s2857_s10 + $0x200] sm:$0xff]  ;;  %v2164_v41 = vld [vmem:[%s2857_s10 + $0x208] sm:$0xff]  ;;  %v771_v44 = vpack.c.bf16 %v755_v37, %v754_v36 }
  0x6f   : > { %v2211_v42 = vld [vmem:[%s2857_s10 + $0x300] sm:$0xff]  ;;  %v2212_v43 = vld [vmem:[%s2857_s10 + $0x308] sm:$0xff]  ;;  %v1075_v45 = vpack.c.bf16 %v2146_v39, %v2145_v38  ;;  %v1382_v46 = vpack.c.bf16 %v2164_v41, %v2163_v40 }
  0x70   : > { %2347 = vmatmul.mubr.msk.bf16.gmra.mrb[8].mxu0 %vm778_vm2, %v761_v48  ;;  %2383 = vmatmul.mubr.msk.bf16.gmra.mrb[8].mxu1 %vm778_vm2, %v1065_v49  ;;  %v1704_v47 = vpack.c.bf16 %v2212_v43, %v2211_v42  ;;  %v2165_v48 = vld [vmem:[%s2857_s10 + $0x210] sm:$0xff]  ;;  %v2166_v49 = vld [vmem:[%s2857_s10 + $0x218] sm:$0xff]  ;;  %v2167_v52 = vld [vmem:[%s2857_s10 + $0x220] sm:$0xff] }
  0x71   : > { %2350 = vmatprep.mubr.msk.bf16.mxu0 %vm778_vm2, %v762_v50  ;;  %2386 = vmatprep.mubr.msk.bf16.mxu1 %vm778_vm2, %v1066_v51  ;;  %v2213_v50 = vld [vmem:[%s2857_s10 + $0x310] sm:$0xff]  ;;  %v2214_v51 = vld [vmem:[%s2857_s10 + $0x318] sm:$0xff]  ;;  %v2168_v53 = vld [vmem:[%s2857_s10 + $0x228] sm:$0xff]  ;;  %v1383_v56 = vpack.c.bf16 %v2166_v49, %v2165_v48 }
  0x72   : > { %v2215_v54 = vld [vmem:[%s2857_s10 + $0x320] sm:$0xff]  ;;  %v2216_v55 = vld [vmem:[%s2857_s10 + $0x328] sm:$0xff]  ;;  %v1705_v57 = vpack.c.bf16 %v2214_v51, %v2213_v50  ;;  %v1384_v58 = vpack.c.bf16 %v2168_v53, %v2167_v52 }
  0x73   : > { %v1706_v59 = vpack.c.bf16 %v2216_v55, %v2215_v54  ;;  %v2171_v0 = vld [vmem:[%s2857_s10 + $0x240] sm:$0xff]  ;;  %v2172_v1 = vld [vmem:[%s2857_s10 + $0x248] sm:$0xff] }
  0x74   : > { %v2219_v2 = vld [vmem:[%s2857_s10 + $0x340] sm:$0xff]  ;;  %v2220_v3 = vld [vmem:[%s2857_s10 + $0x348] sm:$0xff]  ;;  %v1386_v6 = vpack.c.bf16 %v2172_v1, %v2171_v0 }
  0x75   : > { %v1708_v7 = vpack.c.bf16 %v2220_v3, %v2219_v2  ;;  %v2175_v12 = vld [vmem:[%s2857_s10 + $0x260] sm:$0xff]  ;;  %v2176_v13 = vld [vmem:[%s2857_s10 + $0x268] sm:$0xff] }
  0x76   : > { %v2223_v14 = vld [vmem:[%s2857_s10 + $0x360] sm:$0xff]  ;;  %v2224_v15 = vld [vmem:[%s2857_s10 + $0x368] sm:$0xff]  ;;  %v1388_v18 = vpack.c.bf16 %v2176_v13, %v2175_v12 }
  0x77   : > { %v1710_v19 = vpack.c.bf16 %v2224_v15, %v2223_v14  ;;  %v2179_v24 = vld [vmem:[%s2857_s10 + $0x280] sm:$0xff]  ;;  %v2180_v25 = vld [vmem:[%s2857_s10 + $0x288] sm:$0xff] }
  0x78   : > { %2351 = vmatmul.mubr.msk.bf16.gmra.mrb[12].mxu0 %vm778_vm2, %v763_v60  ;;  %2387 = vmatmul.mubr.msk.bf16.gmra.mrb[12].mxu1 %vm778_vm2, %v1067_v61  ;;  %v2169_v60 = vld [vmem:[%s2857_s10 + $0x230] sm:$0xff]  ;;  %v2170_v61 = vld [vmem:[%s2857_s10 + $0x238] sm:$0xff]  ;;  %v2227_v26 = vld [vmem:[%s2857_s10 + $0x380] sm:$0xff]  ;;  %v1390_v30 = vpack.c.bf16 %v2180_v25, %v2179_v24 }
  0x79   : > { %2354 = vmatprep.mubr.msk.bf16.mxu0 %vm778_vm2, %v764_v62  ;;  %2390 = vmatprep.mubr.msk.bf16.mxu1 %vm778_vm2, %v1068_v63  ;;  %v2217_v62 = vld [vmem:[%s2857_s10 + $0x330] sm:$0xff]  ;;  %v2218_v63 = vld [vmem:[%s2857_s10 + $0x338] sm:$0xff]  ;;  %v1385_v4 = vpack.c.bf16 %v2170_v61, %v2169_v60  ;;  %v2228_v27 = vld [vmem:[%s2857_s10 + $0x388] sm:$0xff] }
  0x7a   : > { %v1707_v5 = vpack.c.bf16 %v2218_v63, %v2217_v62  ;;  %v1712_v31 = vpack.c.bf16 %v2228_v27, %v2227_v26  ;;  %v2183_v36 = vld [vmem:[%s2857_s10 + $0x2a0] sm:$0xff]  ;;  %v2184_v37 = vld [vmem:[%s2857_s10 + $0x2a8] sm:$0xff] }
  0x7b   : > { %v2231_v38 = vld [vmem:[%s2857_s10 + $0x3a0] sm:$0xff]  ;;  %v2232_v39 = vld [vmem:[%s2857_s10 + $0x3a8] sm:$0xff]  ;;  %v1392_v42 = vpack.c.bf16 %v2184_v37, %v2183_v36 }
  0x7c   : > { %v1714_v43 = vpack.c.bf16 %v2232_v39, %v2231_v38  ;;  %v2187_v48 = vld [vmem:[%s2857_s10 + $0x2c0] sm:$0xff]  ;;  %v2188_v49 = vld [vmem:[%s2857_s10 + $0x2c8] sm:$0xff] }
  0x7d   : > { %v2235_v50 = vld [vmem:[%s2857_s10 + $0x3c0] sm:$0xff]  ;;  %v2236_v51 = vld [vmem:[%s2857_s10 + $0x3c8] sm:$0xff]  ;;  %v1394_v54 = vpack.c.bf16 %v2188_v49, %v2187_v48 }
  0x7e   : > { %v1716_v55 = vpack.c.bf16 %v2236_v51, %v2235_v50  ;;  %v2191_v60 = vld [vmem:[%s2857_s10 + $0x2e0] sm:$0xff]  ;;  %v2192_v61 = vld [vmem:[%s2857_s10 + $0x2e8] sm:$0xff] }
  0x7f   : > { %v2239_v62 = vld [vmem:[%s2857_s10 + $0x3e0] sm:$0xff]  ;;  %v2240_v63 = vld [vmem:[%s2857_s10 + $0x3e8] sm:$0xff]  ;;  %v1396_v2 = vpack.c.bf16 %v2192_v61, %v2191_v60 }
  0x80   : > { %2355 = vmatmul.mubr.msk.bf16.gmra.mrb[16].mxu0 %vm778_vm2, %v765_v8  ;;  %2391 = vmatmul.mubr.msk.bf16.gmra.mrb[16].mxu1 %vm778_vm2, %v1069_v9  ;;  %v2173_v8 = vld [vmem:[%s2857_s10 + $0x250] sm:$0xff]  ;;  %v2174_v9 = vld [vmem:[%s2857_s10 + $0x258] sm:$0xff]  ;;  %v1718_v3 = vpack.c.bf16 %v2240_v63, %v2239_v62 }
  0x81   : > { %2358 = vmatprep.mubr.msk.bf16.mxu0 %vm778_vm2, %v766_v10  ;;  %2394 = vmatprep.mubr.msk.bf16.mxu1 %vm778_vm2, %v1070_v11  ;;  %v2221_v10 = vld [vmem:[%s2857_s10 + $0x350] sm:$0xff]  ;;  %v2222_v11 = vld [vmem:[%s2857_s10 + $0x358] sm:$0xff]  ;;  %v1387_v16 = vpack.c.bf16 %v2174_v9, %v2173_v8 }
  0x82   : > { %v1709_v17 = vpack.c.bf16 %v2222_v11, %v2221_v10  ;;  %v3054_v10 = vld [vmem:[%s3331_s2] ss:$0 sm:$0xff] }
  0x88   : > { %2359 = vmatmul.mubr.msk.bf16.gmra.mrb[20].mxu0 %vm778_vm2, %v767_v20  ;;  %2395 = vmatmul.mubr.msk.bf16.gmra.mrb[20].mxu1 %vm778_vm2, %v1071_v21  ;;  %v2177_v20 = vld [vmem:[%s2857_s10 + $0x270] sm:$0xff]  ;;  %v2178_v21 = vld [vmem:[%s2857_s10 + $0x278] sm:$0xff] }
  0x89   : > { %2362 = vmatprep.mubr.msk.bf16.mxu0 %vm778_vm2, %v768_v22  ;;  %2398 = vmatprep.mubr.msk.bf16.mxu1 %vm778_vm2, %v1072_v23  ;;  %v2225_v22 = vld [vmem:[%s2857_s10 + $0x370] sm:$0xff]  ;;  %v2226_v23 = vld [vmem:[%s2857_s10 + $0x378] sm:$0xff]  ;;  %v1389_v28 = vpack.c.bf16 %v2178_v21, %v2177_v20 }
  0x8a   : > { %v1711_v29 = vpack.c.bf16 %v2226_v23, %v2225_v22 }
  0x90   : > { %2363 = vmatmul.mubr.msk.bf16.gmra.mrb[24].mxu0 %vm778_vm2, %v769_v32  ;;  %2399 = vmatmul.mubr.msk.bf16.gmra.mrb[24].mxu1 %vm778_vm2, %v1073_v33  ;;  %v2181_v32 = vld [vmem:[%s2857_s10 + $0x290] sm:$0xff]  ;;  %v2182_v33 = vld [vmem:[%s2857_s10 + $0x298] sm:$0xff] }
  0x91   : > { %2366 = vmatprep.mubr.msk.bf16.mxu0 %vm778_vm2, %v770_v34  ;;  %2402 = vmatprep.mubr.msk.bf16.mxu1 %vm778_vm2, %v1074_v35  ;;  %v2229_v34 = vld [vmem:[%s2857_s10 + $0x390] sm:$0xff]  ;;  %v2230_v35 = vld [vmem:[%s2857_s10 + $0x398] sm:$0xff]  ;;  %v1391_v40 = vpack.c.bf16 %v2182_v33, %v2181_v32 }
  0x92   : > { %v1713_v41 = vpack.c.bf16 %v2230_v35, %v2229_v34 }
  0x98   : > { %2367 = vmatmul.mubr.msk.bf16.gmra.mrb[28].mxu0 %vm778_vm2, %v771_v44  ;;  %2403 = vmatmul.mubr.msk.bf16.gmra.mrb[28].mxu1 %vm778_vm2, %v1075_v45  ;;  %v2185_v44 = vld [vmem:[%s2857_s10 + $0x2b0] sm:$0xff]  ;;  %v2186_v45 = vld [vmem:[%s2857_s10 + $0x2b8] sm:$0xff] }
  0x99   : > { %2410 = vmatprep.mubr.msk.bf16.mxu0 %vm778_vm2, %v1382_v46  ;;  %2446 = vmatprep.mubr.msk.bf16.mxu1 %vm778_vm2, %v1704_v47  ;;  %v2233_v46 = vld [vmem:[%s2857_s10 + $0x3b0] sm:$0xff]  ;;  %v2234_v47 = vld [vmem:[%s2857_s10 + $0x3b8] sm:$0xff]  ;;  %v1393_v52 = vpack.c.bf16 %v2186_v45, %v2185_v44 }
  0x9a   : > { %v1715_v53 = vpack.c.bf16 %v2234_v47, %v2233_v46 }
  0xa0   : > { %2411 = vmatmul.mubr.msk.bf16.vlgmr.msra.gmra.mrb[32].mxu0 %vm778_vm2, %v1383_v56  ;;  %2447 = vmatmul.mubr.msk.bf16.vlgmr.msra.gmra.mrb[32].mxu1 %vm778_vm2, %v1705_v57  ;;  %v2189_v56 = vld [vmem:[%s2857_s10 + $0x2d0] sm:$0xff]  ;;  %v2190_v57 = vld [vmem:[%s2857_s10 + $0x2d8] sm:$0xff] }
  0xa1   : > { %2414 = vmatprep.mubr.msk.bf16.mxu0 %vm778_vm2, %v1384_v58  ;;  %2450 = vmatprep.mubr.msk.bf16.mxu1 %vm778_vm2, %v1706_v59  ;;  %v2237_v58 = vld [vmem:[%s2857_s10 + $0x3d0] sm:$0xff]  ;;  %v2238_v59 = vld [vmem:[%s2857_s10 + $0x3d8] sm:$0xff]  ;;  %v1395_v0 = vpack.c.bf16 %v2190_v57, %v2189_v56 }
  0xa2   : > { %v1717_v1 = vpack.c.bf16 %v2238_v59, %v2237_v58 }
  0xa8   : > { %2415 = vmatmul.mubr.msk.bf16.gmra.mrb[36].mxu0 %vm778_vm2, %v1385_v4  ;;  %2451 = vmatmul.mubr.msk.bf16.gmra.mrb[36].mxu1 %vm778_vm2, %v1707_v5  ;;  %v2193_v4 = vld [vmem:[%s2857_s10 + $0x2f0] sm:$0xff]  ;;  %v2194_v5 = vld [vmem:[%s2857_s10 + $0x2f8] sm:$0xff] }
  0xa9   : > { %2418 = vmatprep.mubr.msk.bf16.mxu0 %vm778_vm2, %v1386_v6  ;;  %2454 = vmatprep.mubr.msk.bf16.mxu1 %vm778_vm2, %v1708_v7  ;;  %v2241_v6 = vld [vmem:[%s2857_s10 + $0x3f0] sm:$0xff]  ;;  %v2242_v7 = vld [vmem:[%s2857_s10 + $0x3f8] sm:$0xff]  ;;  %v1397_v8 = vpack.c.bf16 %v2194_v5, %v2193_v4 }
  0xaa   : > { %v1719_v9 = vpack.c.bf16 %v2242_v7, %v2241_v6 }
  0xb0   : > { %2419 = vmatmul.mubr.msk.bf16.gmra.mrb[40].mxu0 %vm778_vm2, %v1387_v16  ;;  %2455 = vmatmul.mubr.msk.bf16.gmra.mrb[40].mxu1 %vm778_vm2, %v1709_v17 }
  0xb1   : > { %2422 = vmatprep.mubr.msk.bf16.mxu0 %vm778_vm2, %v1388_v18  ;;  %2458 = vmatprep.mubr.msk.bf16.mxu1 %vm778_vm2, %v1710_v19 }
  0xb8   : > { %2423 = vmatmul.mubr.msk.bf16.gmra.mrb[44].mxu0 %vm778_vm2, %v1389_v28  ;;  %2459 = vmatmul.mubr.msk.bf16.gmra.mrb[44].mxu1 %vm778_vm2, %v1711_v29 }
  0xb9   : > { %2426 = vmatprep.mubr.msk.bf16.mxu0 %vm778_vm2, %v1390_v30  ;;  %2462 = vmatprep.mubr.msk.bf16.mxu1 %vm778_vm2, %v1712_v31 }
  0xc0   : > { %2427 = vmatmul.mubr.msk.bf16.gmra.mrb[48].mxu0 %vm778_vm2, %v1391_v40  ;;  %2463 = vmatmul.mubr.msk.bf16.gmra.mrb[48].mxu1 %vm778_vm2, %v1713_v41 }
  0xc1   : > { %2430 = vmatprep.mubr.msk.bf16.mxu0 %vm778_vm2, %v1392_v42  ;;  %2466 = vmatprep.mubr.msk.bf16.mxu1 %vm778_vm2, %v1714_v43 }
  0xc8   : > { %2431 = vmatmul.mubr.msk.bf16.gmra.mrb[52].mxu0 %vm778_vm2, %v1393_v52  ;;  %2467 = vmatmul.mubr.msk.bf16.gmra.mrb[52].mxu1 %vm778_vm2, %v1715_v53 }
  0xc9   : > { %2434 = vmatprep.mubr.msk.bf16.mxu0 %vm778_vm2, %v1394_v54  ;;  %2470 = vmatprep.mubr.msk.bf16.mxu1 %vm778_vm2, %v1716_v55 }
  0xd0   : > { %2435 = vmatmul.mubr.msk.bf16.gmra.mrb[56].mxu0 %vm778_vm2, %v1395_v0  ;;  %2471 = vmatmul.mubr.msk.bf16.gmra.mrb[56].mxu1 %vm778_vm2, %v1717_v1 }
  0xd1   : > { %2438 = vmatprep.mubr.msk.bf16.mxu0 %vm778_vm2, %v1396_v2  ;;  %2474 = vmatprep.mubr.msk.bf16.mxu1 %vm778_vm2, %v1718_v3 }
  0xd8   : > { %2439 = vmatmul.mubr.msk.bf16.gmra.mrb[60].mxu0 %vm778_vm2, %v1397_v8  ;;  %2475 = vmatmul.mubr.msk.bf16.gmra.mrb[60].mxu1 %vm778_vm2, %v1719_v9 }
 0x133   : > { %v2340_v11 = vpop.f32.mrb[0].mxu0  ;;  %v2376_v12 = vpop.f32.mrb[0].mxu1 }
 0x134   : > { %v877_v13 = vadd.f32 %v2340_v11, %v3054_v10  ;;  %v1167_v14 = vadd.f32 %v2376_v12, %v3054_v10  ;;  %v868_v15 = vpop.f32.mrb[1].mxu0  ;;  %v1158_v16 = vpop.f32.mrb[1].mxu1 }
 0x135   : > { %v869_v17 = vadd.f32 %v3054_v10, %v868_v15  ;;  %v1159_v18 = vadd.f32 %v3054_v10, %v1158_v16  ;;  %v2341_v19 = vpop.f32.mrb[2].mxu0  ;;  %v2377_v20 = vpop.f32.mrb[2].mxu1 }
 0x136   : > { %v997_v21 = vmax.f32 %v877_v13, 0.0  ;;  %v1287_v22 = vmax.f32 %v1167_v14, 0.0  ;;  %v880_v23 = vadd.f32 %v2341_v19, %v3054_v10  ;;  %v1170_v24 = vadd.f32 %v2377_v20, %v3054_v10  ;;  %v871_v25 = vpop.f32.mrb[3].mxu0  ;;  %v1161_v26 = vpop.f32.mrb[3].mxu1 }
 0x137   : > { %v995_v27 = vmax.f32 %v869_v17, 0.0  ;;  %v1285_v28 = vmax.f32 %v1159_v18, 0.0  ;;  %v872_v29 = vadd.f32 %v3054_v10, %v871_v25  ;;  %v1162_v30 = vadd.f32 %v3054_v10, %v1161_v26 }
 0x138   : > { %v3064_v31 = vmax.f32 %v997_v21, %v1287_v22  ;;  %v998_v32 = vmax.f32 %v880_v23, 0.0  ;;  %v1288_v33 = vmax.f32 %v1170_v24, 0.0 }
 0x139   : > { %v3066_v34 = vmax.f32 %v995_v27, %v1285_v28  ;;  %v996_v35 = vmax.f32 %v872_v29, 0.0  ;;  %v1286_v36 = vmax.f32 %v1162_v30, 0.0 }
 0x13a   : > { %v3068_v37 = vmax.f32 %v998_v32, %v1288_v33 }
 0x13b   : > { %v3070_v38 = vmax.f32 %v996_v35, %v1286_v36  ;;  %v2344_v39 = vpop.f32.mrb[4].mxu0  ;;  %v2380_v40 = vpop.f32.mrb[4].mxu1 }
 0x13c   : > { %v893_v41 = vadd.f32 %v2344_v39, %v3054_v10  ;;  %v1183_v42 = vadd.f32 %v2380_v40, %v3054_v10  ;;  %v884_v43 = vpop.f32.mrb[5].mxu0  ;;  %v1174_v44 = vpop.f32.mrb[5].mxu1 }
 0x13d   : > { %v885_v45 = vadd.f32 %v3054_v10, %v884_v43  ;;  %v1175_v46 = vadd.f32 %v3054_v10, %v1174_v44  ;;  %v2345_v47 = vpop.f32.mrb[6].mxu0  ;;  %v2381_v48 = vpop.f32.mrb[6].mxu1 }
 0x13e   : > { %v1001_v49 = vmax.f32 %v893_v41, 0.0  ;;  %v1291_v50 = vmax.f32 %v1183_v42, 0.0  ;;  %v896_v51 = vadd.f32 %v2345_v47, %v3054_v10  ;;  %v1186_v52 = vadd.f32 %v2381_v48, %v3054_v10  ;;  %v887_v53 = vpop.f32.mrb[7].mxu0  ;;  %v1177_v54 = vpop.f32.mrb[7].mxu1 }
 0x13f   : > { %v999_v55 = vmax.f32 %v885_v45, 0.0  ;;  %v1289_v56 = vmax.f32 %v1175_v46, 0.0  ;;  %v888_v57 = vadd.f32 %v3054_v10, %v887_v53  ;;  %v1178_v58 = vadd.f32 %v3054_v10, %v1177_v54 }
 0x140   : > { %v3080_v59 = vmax.f32 %v1001_v49, %v1291_v50  ;;  %v1002_v60 = vmax.f32 %v896_v51, 0.0  ;;  %v1292_v61 = vmax.f32 %v1186_v52, 0.0 }
 0x141   : > { %v3082_v62 = vmax.f32 %v999_v55, %v1289_v56  ;;  %v1000_v63 = vmax.f32 %v888_v57, 0.0  ;;  %v1290_v0 = vmax.f32 %v1178_v58, 0.0 }
 0x142   : > { %v3084_v1 = vmax.f32 %v1002_v60, %v1292_v61 }
 0x143   : > { %v3086_v2 = vmax.f32 %v1000_v63, %v1290_v0  ;;  %v2348_v3 = vpop.f32.mrb[8].mxu0  ;;  %v2384_v4 = vpop.f32.mrb[8].mxu1 }
 0x144   : > { %v909_v5 = vadd.f32 %v2348_v3, %v3054_v10  ;;  %v1199_v6 = vadd.f32 %v2384_v4, %v3054_v10  ;;  %v900_v7 = vpop.f32.mrb[9].mxu0  ;;  %v1190_v8 = vpop.f32.mrb[9].mxu1 }
 0x145   : > { %v901_v9 = vadd.f32 %v3054_v10, %v900_v7  ;;  %v1191_v11 = vadd.f32 %v3054_v10, %v1190_v8  ;;  %v2349_v12 = vpop.f32.mrb[10].mxu0  ;;  %v2385_v13 = vpop.f32.mrb[10].mxu1 }
 0x146   : > { %v1005_v14 = vmax.f32 %v909_v5, 0.0  ;;  %v1295_v15 = vmax.f32 %v1199_v6, 0.0  ;;  %v912_v16 = vadd.f32 %v2349_v12, %v3054_v10  ;;  %v1202_v17 = vadd.f32 %v2385_v13, %v3054_v10  ;;  %v903_v18 = vpop.f32.mrb[11].mxu0  ;;  %v1193_v19 = vpop.f32.mrb[11].mxu1 }
 0x147   : > { %v1003_v20 = vmax.f32 %v901_v9, 0.0  ;;  %v1293_v21 = vmax.f32 %v1191_v11, 0.0  ;;  %v904_v22 = vadd.f32 %v3054_v10, %v903_v18  ;;  %v1194_v23 = vadd.f32 %v3054_v10, %v1193_v19 }
 0x148   : > { %v3096_v24 = vmax.f32 %v1005_v14, %v1295_v15  ;;  %v1006_v25 = vmax.f32 %v912_v16, 0.0  ;;  %v1296_v26 = vmax.f32 %v1202_v17, 0.0 }
 0x149   : > { %v3098_v27 = vmax.f32 %v1003_v20, %v1293_v21  ;;  %v1004_v28 = vmax.f32 %v904_v22, 0.0  ;;  %v1294_v29 = vmax.f32 %v1194_v23, 0.0 }
 0x14a   : > { %v3100_v30 = vmax.f32 %v1006_v25, %v1296_v26 }
 0x14b   : > { %v3102_v32 = vmax.f32 %v1004_v28, %v1294_v29  ;;  %v2352_v33 = vpop.f32.mrb[12].mxu0  ;;  %v2388_v35 = vpop.f32.mrb[12].mxu1 }
 0x14c   : > { %v925_v36 = vadd.f32 %v2352_v33, %v3054_v10  ;;  %v1215_v39 = vadd.f32 %v2388_v35, %v3054_v10  ;;  %v916_v40 = vpop.f32.mrb[13].mxu0  ;;  %v1206_v41 = vpop.f32.mrb[13].mxu1 }
 0x14d   : > { %v917_v42 = vadd.f32 %v3054_v10, %v916_v40  ;;  %v1207_v43 = vadd.f32 %v3054_v10, %v1206_v41  ;;  %v2353_v44 = vpop.f32.mrb[14].mxu0  ;;  %v2389_v45 = vpop.f32.mrb[14].mxu1 }
 0x14e   : > { %v1009_v46 = vmax.f32 %v925_v36, 0.0  ;;  %v1299_v47 = vmax.f32 %v1215_v39, 0.0  ;;  %v928_v48 = vadd.f32 %v2353_v44, %v3054_v10  ;;  %v1218_v49 = vadd.f32 %v2389_v45, %v3054_v10  ;;  %v919_v50 = vpop.f32.mrb[15].mxu0  ;;  %v1209_v51 = vpop.f32.mrb[15].mxu1 }
 0x14f   : > { %v1007_v52 = vmax.f32 %v917_v42, 0.0  ;;  %v1297_v53 = vmax.f32 %v1207_v43, 0.0  ;;  %v920_v54 = vadd.f32 %v3054_v10, %v919_v50  ;;  %v1210_v55 = vadd.f32 %v3054_v10, %v1209_v51 }
 0x150   : > { %v3112_v56 = vmax.f32 %v1009_v46, %v1299_v47  ;;  %v1010_v57 = vmax.f32 %v928_v48, 0.0  ;;  %v1300_v58 = vmax.f32 %v1218_v49, 0.0 }
 0x151   : > { %v3114_v60 = vmax.f32 %v1007_v52, %v1297_v53  ;;  %v1008_v61 = vmax.f32 %v920_v54, 0.0  ;;  %v1298_v63 = vmax.f32 %v1210_v55, 0.0 }
 0x152   : > { %v3116_v0 = vmax.f32 %v1010_v57, %v1300_v58 }
 0x153   : > { %v3118_v3 = vmax.f32 %v1008_v61, %v1298_v63  ;;  %v2356_v4 = vpop.f32.mrb[16].mxu0  ;;  %v2392_v5 = vpop.f32.mrb[16].mxu1 }
 0x154   : > { %v941_v6 = vadd.f32 %v2356_v4, %v3054_v10  ;;  %v1231_v7 = vadd.f32 %v2392_v5, %v3054_v10  ;;  %v932_v8 = vpop.f32.mrb[17].mxu0  ;;  %v1222_v9 = vpop.f32.mrb[17].mxu1 }
 0x155   : > { %v933_v11 = vadd.f32 %v3054_v10, %v932_v8  ;;  %v1223_v12 = vadd.f32 %v3054_v10, %v1222_v9  ;;  %v2357_v13 = vpop.f32.mrb[18].mxu0  ;;  %v2393_v14 = vpop.f32.mrb[18].mxu1 }
 0x156   : > { %v1013_v15 = vmax.f32 %v941_v6, 0.0  ;;  %v1303_v16 = vmax.f32 %v1231_v7, 0.0  ;;  %v944_v17 = vadd.f32 %v2357_v13, %v3054_v10  ;;  %v1234_v18 = vadd.f32 %v2393_v14, %v3054_v10  ;;  %v935_v19 = vpop.f32.mrb[19].mxu0  ;;  %v1225_v20 = vpop.f32.mrb[19].mxu1 }
 0x157   : > { %v1011_v21 = vmax.f32 %v933_v11, 0.0  ;;  %v1301_v22 = vmax.f32 %v1223_v12, 0.0  ;;  %v936_v23 = vadd.f32 %v3054_v10, %v935_v19  ;;  %v1226_v25 = vadd.f32 %v3054_v10, %v1225_v20 }
 0x158   : > { %v3128_v26 = vmax.f32 %v1013_v15, %v1303_v16  ;;  %v1014_v28 = vmax.f32 %v944_v17, 0.0  ;;  %v1304_v29 = vmax.f32 %v1234_v18, 0.0 }
 0x159   : > { %v3130_v33 = vmax.f32 %v1011_v21, %v1301_v22  ;;  %v1012_v35 = vmax.f32 %v936_v23, 0.0  ;;  %v1302_v36 = vmax.f32 %v1226_v25, 0.0 }
 0x15a   : > { %v3132_v39 = vmax.f32 %v1014_v28, %v1304_v29 }
 0x15b   : > { %v3134_v40 = vmax.f32 %v1012_v35, %v1302_v36  ;;  %v2360_v41 = vpop.f32.mrb[20].mxu0  ;;  %v2396_v42 = vpop.f32.mrb[20].mxu1 }
 0x15c   : > { %v957_v43 = vadd.f32 %v2360_v41, %v3054_v10  ;;  %v1247_v44 = vadd.f32 %v2396_v42, %v3054_v10  ;;  %v948_v45 = vpop.f32.mrb[21].mxu0  ;;  %v1238_v46 = vpop.f32.mrb[21].mxu1 }
 0x15d   : > { %v949_v47 = vadd.f32 %v3054_v10, %v948_v45  ;;  %v1239_v48 = vadd.f32 %v3054_v10, %v1238_v46  ;;  %v2361_v49 = vpop.f32.mrb[22].mxu0  ;;  %v2397_v50 = vpop.f32.mrb[22].mxu1 }
 0x15e   : > { %v1017_v51 = vmax.f32 %v957_v43, 0.0  ;;  %v1307_v52 = vmax.f32 %v1247_v44, 0.0  ;;  %v960_v53 = vadd.f32 %v2361_v49, %v3054_v10  ;;  %v1250_v54 = vadd.f32 %v2397_v50, %v3054_v10  ;;  %v951_v55 = vpop.f32.mrb[23].mxu0  ;;  %v1241_v57 = vpop.f32.mrb[23].mxu1 }
 0x15f   : > { %v1015_v58 = vmax.f32 %v949_v47, 0.0  ;;  %v1305_v61 = vmax.f32 %v1239_v48, 0.0  ;;  %v952_v63 = vadd.f32 %v3054_v10, %v951_v55  ;;  %v1242_v4 = vadd.f32 %v3054_v10, %v1241_v57 }
 0x160   : > { %v3144_v5 = vmax.f32 %v1017_v51, %v1307_v52  ;;  %v1018_v6 = vmax.f32 %v960_v53, 0.0  ;;  %v1308_v7 = vmax.f32 %v1250_v54, 0.0 }
 0x161   : > { %v3146_v8 = vmax.f32 %v1015_v58, %v1305_v61  ;;  %v1016_v9 = vmax.f32 %v952_v63, 0.0  ;;  %v1306_v11 = vmax.f32 %v1242_v4, 0.0 }
 0x162   : > { %v3148_v12 = vmax.f32 %v1018_v6, %v1308_v7 }
 0x163   : > { %v3150_v13 = vmax.f32 %v1016_v9, %v1306_v11  ;;  %v2364_v14 = vpop.f32.mrb[24].mxu0  ;;  %v2400_v15 = vpop.f32.mrb[24].mxu1 }
 0x164   : > { %v973_v16 = vadd.f32 %v2364_v14, %v3054_v10  ;;  %v1263_v17 = vadd.f32 %v2400_v15, %v3054_v10  ;;  %v964_v18 = vpop.f32.mrb[25].mxu0  ;;  %v1254_v19 = vpop.f32.mrb[25].mxu1 }
 0x165   : > { %v965_v20 = vadd.f32 %v3054_v10, %v964_v18  ;;  %v1255_v21 = vadd.f32 %v3054_v10, %v1254_v19  ;;  %v2365_v22 = vpop.f32.mrb[26].mxu0  ;;  %v2401_v23 = vpop.f32.mrb[26].mxu1 }
 0x166   : > { %v1021_v25 = vmax.f32 %v973_v16, 0.0  ;;  %v1311_v28 = vmax.f32 %v1263_v17, 0.0  ;;  %v976_v29 = vadd.f32 %v2365_v22, %v3054_v10  ;;  %v1266_v35 = vadd.f32 %v2401_v23, %v3054_v10  ;;  %v967_v36 = vpop.f32.mrb[27].mxu0  ;;  %v1257_v41 = vpop.f32.mrb[27].mxu1 }
 0x167   : > { %v1019_v42 = vmax.f32 %v965_v20, 0.0  ;;  %v1309_v43 = vmax.f32 %v1255_v21, 0.0  ;;  %v968_v44 = vadd.f32 %v3054_v10, %v967_v36  ;;  %v1258_v45 = vadd.f32 %v3054_v10, %v1257_v41 }
 0x168   : > { %v3160_v46 = vmax.f32 %v1021_v25, %v1311_v28  ;;  %v1022_v47 = vmax.f32 %v976_v29, 0.0  ;;  %v1312_v48 = vmax.f32 %v1266_v35, 0.0 }
 0x169   : > { %v3162_v49 = vmax.f32 %v1019_v42, %v1309_v43  ;;  %v1020_v50 = vmax.f32 %v968_v44, 0.0  ;;  %v1310_v51 = vmax.f32 %v1258_v45, 0.0 }
 0x16a   : > { %v3164_v52 = vmax.f32 %v1022_v47, %v1312_v48 }
 0x16b   : > { %v3166_v53 = vmax.f32 %v1020_v50, %v1310_v51  ;;  %v2368_v54 = vpop.f32.mrb[28].mxu0  ;;  %v2404_v55 = vpop.f32.mrb[28].mxu1 }
 0x16c   : > { %v989_v57 = vadd.f32 %v2368_v54, %v3054_v10  ;;  %v1279_v58 = vadd.f32 %v2404_v55, %v3054_v10  ;;  %v980_v61 = vpop.f32.mrb[29].mxu0  ;;  %v1270_v63 = vpop.f32.mrb[29].mxu1 }
 0x16d   : > { %v981_v4 = vadd.f32 %v3054_v10, %v980_v61  ;;  %v1271_v6 = vadd.f32 %v3054_v10, %v1270_v63  ;;  %v2369_v7 = vpop.f32.mrb[30].mxu0  ;;  %v2405_v9 = vpop.f32.mrb[30].mxu1 }
 0x16e   : > { %v1025_v11 = vmax.f32 %v989_v57, 0.0  ;;  %v1315_v14 = vmax.f32 %v1279_v58, 0.0  ;;  %v992_v15 = vadd.f32 %v2369_v7, %v3054_v10  ;;  %v1282_v16 = vadd.f32 %v2405_v9, %v3054_v10  ;;  %v983_v17 = vpop.f32.mrb[31].mxu0  ;;  %v1273_v18 = vpop.f32.mrb[31].mxu1 }
 0x16f   : > { %v1023_v19 = vmax.f32 %v981_v4, 0.0  ;;  %v1313_v20 = vmax.f32 %v1271_v6, 0.0  ;;  %v984_v21 = vadd.f32 %v3054_v10, %v983_v17  ;;  %v1274_v22 = vadd.f32 %v3054_v10, %v1273_v18 }
 0x170   : > { %v3178_v23 = vmax.f32 %v1025_v11, %v1315_v14  ;;  %v1026_v25 = vmax.f32 %v992_v15, 0.0  ;;  %v1316_v28 = vmax.f32 %v1282_v16, 0.0 }
 0x171   : > { %v3180_v29 = vmax.f32 %v1023_v19, %v1313_v20  ;;  %v1024_v35 = vmax.f32 %v984_v21, 0.0  ;;  %v1314_v36 = vmax.f32 %v1274_v22, 0.0 }
 0x172   : > { %v3182_v41 = vmax.f32 %v1026_v25, %v1316_v28 }
 0x173   : > { %v3184_v42 = vmax.f32 %v1024_v35, %v1314_v36  ;;  %v2412_v43 = vpop.f32.mrb[32].mxu0  ;;  %v2448_v44 = vpop.f32.mrb[32].mxu1 }
 0x174   : > { %v1489_v45 = vadd.f32 %v2412_v43, %v3054_v10  ;;  %v1811_v47 = vadd.f32 %v2448_v44, %v3054_v10  ;;  %v1480_v48 = vpop.f32.mrb[33].mxu0  ;;  %v1802_v50 = vpop.f32.mrb[33].mxu1 }
 0x175   : > { %v1481_v51 = vadd.f32 %v3054_v10, %v1480_v48  ;;  %v1803_v54 = vadd.f32 %v3054_v10, %v1802_v50  ;;  %v2413_v55 = vpop.f32.mrb[34].mxu0  ;;  %v2449_v57 = vpop.f32.mrb[34].mxu1 }
 0x176   : > { %v1609_v58 = vmax.f32 %v1489_v45, 0.0  ;;  %v1931_v61 = vmax.f32 %v1811_v47, 0.0  ;;  %v1492_v63 = vadd.f32 %v2413_v55, %v3054_v10  ;;  %v1814_v4 = vadd.f32 %v2449_v57, %v3054_v10  ;;  %v1483_v6 = vpop.f32.mrb[35].mxu0  ;;  %v1805_v7 = vpop.f32.mrb[35].mxu1 }
 0x177   : > { %v1607_v9 = vmax.f32 %v1481_v51, 0.0  ;;  %v1929_v11 = vmax.f32 %v1803_v54, 0.0  ;;  %v1484_v14 = vadd.f32 %v3054_v10, %v1483_v6  ;;  %v1806_v15 = vadd.f32 %v3054_v10, %v1805_v7 }
 0x178   : > { %v1641_v16 = vmax.f32 %v3064_v31, %v1609_v58  ;;  %v1610_v17 = vmax.f32 %v1492_v63, 0.0  ;;  %v1932_v22 = vmax.f32 %v1814_v4, 0.0 }
 0x179   : > { %v1639_v18 = vmax.f32 %v3066_v34, %v1607_v9  ;;  %v1608_v19 = vmax.f32 %v1484_v14, 0.0  ;;  %v1930_v31 = vmax.f32 %v1806_v15, 0.0 }
 0x17a   : > { %v1963_v20 = vmax.f32 %v1641_v16, %v1931_v61  ;;  %v1642_v21 = vmax.f32 %v3068_v37, %v1610_v17 }
 0x17b   : > { %v1961_v25 = vmax.f32 %v1639_v18, %v1929_v11  ;;  %v1640_v28 = vmax.f32 %v3070_v38, %v1608_v19  ;;  %v2416_v35 = vpop.f32.mrb[36].mxu0  ;;  %v2452_v36 = vpop.f32.mrb[36].mxu1 }
 0x17c   : > { %1995 = vst [vmem:[%s3198_s20 + $0x10] sm:$0xff] %v1963_v20  ;;  %v1964_v43 = vmax.f32 %v1642_v21, %v1932_v22  ;;  %v1505_v44 = vadd.f32 %v2416_v35, %v3054_v10  ;;  %v1827_v45 = vadd.f32 %v2452_v36, %v3054_v10  ;;  %v1496_v34 = vpop.f32.mrb[37].mxu0  ;;  %v1818_v47 = vpop.f32.mrb[37].mxu1 }
 0x17d   : > { %1993 = vst [vmem:[%s3198_s20] sm:$0xff] %v1961_v25  ;;  %v1962_v48 = vmax.f32 %v1640_v28, %v1930_v31  ;;  %v1497_v37 = vadd.f32 %v3054_v10, %v1496_v34  ;;  %v1819_v50 = vadd.f32 %v3054_v10, %v1818_v47  ;;  %v2417_v38 = vpop.f32.mrb[38].mxu0  ;;  %v2453_v51 = vpop.f32.mrb[38].mxu1 }
 0x17e   : > { %1996 = vst [vmem:[%s3198_s20 + $0x18] sm:$0xff] %v1964_v43  ;;  %v1613_v54 = vmax.f32 %v1505_v44, 0.0  ;;  %v1935_v55 = vmax.f32 %v1827_v45, 0.0  ;;  %v1508_v57 = vadd.f32 %v2417_v38, %v3054_v10  ;;  %v1830_v58 = vadd.f32 %v2453_v51, %v3054_v10  ;;  %v1499_v61 = vpop.f32.mrb[39].mxu0  ;;  %v1821_v63 = vpop.f32.mrb[39].mxu1 }
 0x17f   : > { %1994 = vst [vmem:[%s3198_s20 + $0x8] sm:$0xff] %v1962_v48  ;;  %v1611_v4 = vmax.f32 %v1497_v37, 0.0  ;;  %v1933_v6 = vmax.f32 %v1819_v50, 0.0  ;;  %v1500_v7 = vadd.f32 %v3054_v10, %v1499_v61  ;;  %v1822_v9 = vadd.f32 %v3054_v10, %v1821_v63 }
 0x180   : > { %v1645_v11 = vmax.f32 %v3080_v59, %v1613_v54  ;;  %v1614_v14 = vmax.f32 %v1508_v57, 0.0  ;;  %v1936_v19 = vmax.f32 %v1830_v58, 0.0 }
 0x181   : > { %v1643_v15 = vmax.f32 %v3082_v62, %v1611_v4  ;;  %v1612_v16 = vmax.f32 %v1500_v7, 0.0  ;;  %v1934_v22 = vmax.f32 %v1822_v9, 0.0 }
 0x182   : > { %v1967_v17 = vmax.f32 %v1645_v11, %v1935_v55  ;;  %v1646_v18 = vmax.f32 %v3084_v1, %v1614_v14 }
 0x183   : > { %v1965_v20 = vmax.f32 %v1643_v15, %v1933_v6  ;;  %v1644_v21 = vmax.f32 %v3086_v2, %v1612_v16  ;;  %v2420_v25 = vpop.f32.mrb[40].mxu0  ;;  %v2456_v28 = vpop.f32.mrb[40].mxu1 }
 0x184   : > { %1999 = vst [vmem:[%s3198_s20 + $0x30] sm:$0xff] %v1967_v17  ;;  %v1968_v31 = vmax.f32 %v1646_v18, %v1936_v19  ;;  %v1521_v59 = vadd.f32 %v2420_v25, %v3054_v10  ;;  %v1843_v35 = vadd.f32 %v2456_v28, %v3054_v10  ;;  %v1512_v62 = vpop.f32.mrb[41].mxu0  ;;  %v1834_v36 = vpop.f32.mrb[41].mxu1 }
 0x185   : > { %1997 = vst [vmem:[%s3198_s20 + $0x20] sm:$0xff] %v1965_v20  ;;  %v1966_v43 = vmax.f32 %v1644_v21, %v1934_v22  ;;  %v1513_v1 = vadd.f32 %v3054_v10, %v1512_v62  ;;  %v1835_v44 = vadd.f32 %v3054_v10, %v1834_v36  ;;  %v2421_v2 = vpop.f32.mrb[42].mxu0  ;;  %v2457_v45 = vpop.f32.mrb[42].mxu1 }
 0x186   : > { %2000 = vst [vmem:[%s3198_s20 + $0x38] sm:$0xff] %v1968_v31  ;;  %v1617_v34 = vmax.f32 %v1521_v59, 0.0  ;;  %v1939_v47 = vmax.f32 %v1843_v35, 0.0  ;;  %v1524_v48 = vadd.f32 %v2421_v2, %v3054_v10  ;;  %v1846_v37 = vadd.f32 %v2457_v45, %v3054_v10  ;;  %v1515_v50 = vpop.f32.mrb[43].mxu0  ;;  %v1837_v38 = vpop.f32.mrb[43].mxu1 }
 0x187   : > { %1998 = vst [vmem:[%s3198_s20 + $0x28] sm:$0xff] %v1966_v43  ;;  %v1615_v51 = vmax.f32 %v1513_v1, 0.0  ;;  %v1937_v54 = vmax.f32 %v1835_v44, 0.0  ;;  %v1516_v55 = vadd.f32 %v3054_v10, %v1515_v50  ;;  %v1838_v57 = vadd.f32 %v3054_v10, %v1837_v38 }
 0x188   : > { %v1649_v58 = vmax.f32 %v3096_v24, %v1617_v34  ;;  %v1618_v61 = vmax.f32 %v1524_v48, 0.0  ;;  %v1940_v9 = vmax.f32 %v1846_v37, 0.0 }
 0x189   : > { %v1647_v63 = vmax.f32 %v3098_v27, %v1615_v51  ;;  %v1616_v4 = vmax.f32 %v1516_v55, 0.0  ;;  %v1938_v15 = vmax.f32 %v1838_v57, 0.0 }
 0x18a   : > { %v1971_v6 = vmax.f32 %v1649_v58, %v1939_v47  ;;  %v1650_v7 = vmax.f32 %v3100_v30, %v1618_v61 }
 0x18b   : > { %v1969_v11 = vmax.f32 %v1647_v63, %v1937_v54  ;;  %v1648_v14 = vmax.f32 %v3102_v32, %v1616_v4  ;;  %v2424_v16 = vpop.f32.mrb[44].mxu0  ;;  %v2460_v17 = vpop.f32.mrb[44].mxu1 }
 0x18c   : > { %2003 = vst [vmem:[%s3198_s20 + $0x50] sm:$0xff] %v1971_v6  ;;  %v1972_v18 = vmax.f32 %v1650_v7, %v1940_v9  ;;  %v1537_v24 = vadd.f32 %v2424_v16, %v3054_v10  ;;  %v1859_v19 = vadd.f32 %v2460_v17, %v3054_v10  ;;  %v1528_v27 = vpop.f32.mrb[45].mxu0  ;;  %v1850_v20 = vpop.f32.mrb[45].mxu1 }
 0x18d   : > { %2001 = vst [vmem:[%s3198_s20 + $0x40] sm:$0xff] %v1969_v11  ;;  %v1970_v21 = vmax.f32 %v1648_v14, %v1938_v15  ;;  %v1529_v30 = vadd.f32 %v3054_v10, %v1528_v27  ;;  %v1851_v22 = vadd.f32 %v3054_v10, %v1850_v20  ;;  %v2425_v32 = vpop.f32.mrb[46].mxu0  ;;  %v2461_v25 = vpop.f32.mrb[46].mxu1 }
 0x18e   : > { %2004 = vst [vmem:[%s3198_s20 + $0x58] sm:$0xff] %v1972_v18  ;;  %v1621_v28 = vmax.f32 %v1537_v24, 0.0  ;;  %v1943_v31 = vmax.f32 %v1859_v19, 0.0  ;;  %v1540_v59 = vadd.f32 %v2425_v32, %v3054_v10  ;;  %v1862_v35 = vadd.f32 %v2461_v25, %v3054_v10  ;;  %v1531_v62 = vpop.f32.mrb[47].mxu0  ;;  %v1853_v36 = vpop.f32.mrb[47].mxu1 }
 0x18f   : > { %2002 = vst [vmem:[%s3198_s20 + $0x48] sm:$0xff] %v1970_v21  ;;  %v1619_v43 = vmax.f32 %v1529_v30, 0.0  ;;  %v1941_v1 = vmax.f32 %v1851_v22, 0.0  ;;  %v1532_v44 = vadd.f32 %v3054_v10, %v1531_v62  ;;  %v1854_v2 = vadd.f32 %v3054_v10, %v1853_v36 }
 0x190   : > { %v1653_v45 = vmax.f32 %v3112_v56, %v1621_v28  ;;  %v1622_v34 = vmax.f32 %v1540_v59, 0.0  ;;  %v1944_v38 = vmax.f32 %v1862_v35, 0.0 }
 0x191   : > { %v1651_v47 = vmax.f32 %v3114_v60, %v1619_v43  ;;  %v1620_v48 = vmax.f32 %v1532_v44, 0.0  ;;  %v1942_v55 = vmax.f32 %v1854_v2, 0.0 }
 0x192   : > { %v1975_v37 = vmax.f32 %v1653_v45, %v1943_v31  ;;  %v1654_v50 = vmax.f32 %v3116_v0, %v1622_v34 }
 0x193   : > { %v1973_v51 = vmax.f32 %v1651_v47, %v1941_v1  ;;  %v1652_v54 = vmax.f32 %v3118_v3, %v1620_v48  ;;  %v2428_v57 = vpop.f32.mrb[48].mxu0  ;;  %v2464_v58 = vpop.f32.mrb[48].mxu1 }
 0x194   : > { %2007 = vst [vmem:[%s3198_s20 + $0x70] sm:$0xff] %v1975_v37  ;;  %v1976_v61 = vmax.f32 %v1654_v50, %v1944_v38  ;;  %v1553_v56 = vadd.f32 %v2428_v57, %v3054_v10  ;;  %v1875_v63 = vadd.f32 %v2464_v58, %v3054_v10  ;;  %v1544_v60 = vpop.f32.mrb[49].mxu0  ;;  %v1866_v4 = vpop.f32.mrb[49].mxu1 }
 0x195   : > { %2005 = vst [vmem:[%s3198_s20 + $0x60] sm:$0xff] %v1973_v51  ;;  %v1974_v6 = vmax.f32 %v1652_v54, %v1942_v55  ;;  %v1545_v0 = vadd.f32 %v3054_v10, %v1544_v60  ;;  %v1867_v7 = vadd.f32 %v3054_v10, %v1866_v4  ;;  %v2429_v3 = vpop.f32.mrb[50].mxu0  ;;  %v2465_v9 = vpop.f32.mrb[50].mxu1 }
 0x196   : > { %2008 = vst [vmem:[%s3198_s20 + $0x78] sm:$0xff] %v1976_v61  ;;  %v1625_v11 = vmax.f32 %v1553_v56, 0.0  ;;  %v1947_v14 = vmax.f32 %v1875_v63, 0.0  ;;  %v1556_v15 = vadd.f32 %v2429_v3, %v3054_v10  ;;  %v1878_v16 = vadd.f32 %v2465_v9, %v3054_v10  ;;  %v1547_v17 = vpop.f32.mrb[51].mxu0  ;;  %v1869_v18 = vpop.f32.mrb[51].mxu1 }
 0x197   : > { %2006 = vst [vmem:[%s3198_s20 + $0x68] sm:$0xff] %v1974_v6  ;;  %v1623_v24 = vmax.f32 %v1545_v0, 0.0  ;;  %v1945_v19 = vmax.f32 %v1867_v7, 0.0  ;;  %v1548_v27 = vadd.f32 %v3054_v10, %v1547_v17  ;;  %v1870_v20 = vadd.f32 %v3054_v10, %v1869_v18 }
 0x198   : > { %v1657_v21 = vmax.f32 %v3128_v26, %v1625_v11  ;;  %v1626_v30 = vmax.f32 %v1556_v15, 0.0  ;;  %v1948_v31 = vmax.f32 %v1878_v16, 0.0 }
 0x199   : > { %v1655_v22 = vmax.f32 %v3130_v33, %v1623_v24  ;;  %v1624_v32 = vmax.f32 %v1548_v27, 0.0  ;;  %v1946_v62 = vmax.f32 %v1870_v20, 0.0 }
 0x19a   : > { %v1979_v25 = vmax.f32 %v1657_v21, %v1947_v14  ;;  %v1658_v28 = vmax.f32 %v3132_v39, %v1626_v30 }
 0x19b   : > { %v1977_v59 = vmax.f32 %v1655_v22, %v1945_v19  ;;  %v1656_v35 = vmax.f32 %v3134_v40, %v1624_v32  ;;  %v2432_v36 = vpop.f32.mrb[52].mxu0  ;;  %v2468_v43 = vpop.f32.mrb[52].mxu1 }
 0x19c   : > { %2011 = vst [vmem:[%s3198_s20 + $0x90] sm:$0xff] %v1979_v25  ;;  %v1980_v1 = vmax.f32 %v1658_v28, %v1948_v31  ;;  %v1569_v26 = vadd.f32 %v2432_v36, %v3054_v10  ;;  %v1891_v44 = vadd.f32 %v2468_v43, %v3054_v10  ;;  %v1560_v33 = vpop.f32.mrb[53].mxu0  ;;  %v1882_v2 = vpop.f32.mrb[53].mxu1 }
 0x19d   : > { %2009 = vst [vmem:[%s3198_s20 + $0x80] sm:$0xff] %v1977_v59  ;;  %v1978_v45 = vmax.f32 %v1656_v35, %v1946_v62  ;;  %v1561_v39 = vadd.f32 %v3054_v10, %v1560_v33  ;;  %v1883_v34 = vadd.f32 %v3054_v10, %v1882_v2  ;;  %v2433_v40 = vpop.f32.mrb[54].mxu0  ;;  %v2469_v47 = vpop.f32.mrb[54].mxu1 }
 0x19e   : > { %2012 = vst [vmem:[%s3198_s20 + $0x98] sm:$0xff] %v1980_v1  ;;  %v1629_v48 = vmax.f32 %v1569_v26, 0.0  ;;  %v1951_v37 = vmax.f32 %v1891_v44, 0.0  ;;  %v1572_v50 = vadd.f32 %v2433_v40, %v3054_v10  ;;  %v1894_v38 = vadd.f32 %v2469_v47, %v3054_v10  ;;  %v1563_v51 = vpop.f32.mrb[55].mxu0  ;;  %v1885_v54 = vpop.f32.mrb[55].mxu1 }
 0x19f   : > { %2010 = vst [vmem:[%s3198_s20 + $0x88] sm:$0xff] %v1978_v45  ;;  %v1627_v55 = vmax.f32 %v1561_v39, 0.0  ;;  %v1949_v57 = vmax.f32 %v1883_v34, 0.0  ;;  %v1564_v58 = vadd.f32 %v3054_v10, %v1563_v51  ;;  %v1886_v61 = vadd.f32 %v3054_v10, %v1885_v54 }
 0x1a0   : > { %v1661_v56 = vmax.f32 %v3144_v5, %v1629_v48  ;;  %v1630_v63 = vmax.f32 %v1572_v50, 0.0  ;;  %v1952_v7 = vmax.f32 %v1894_v38, 0.0 }
 0x1a1   : > { %v1659_v60 = vmax.f32 %v3146_v8, %v1627_v55  ;;  %v1628_v4 = vmax.f32 %v1564_v58, 0.0  ;;  %v1950_v11 = vmax.f32 %v1886_v61, 0.0 }
 0x1a2   : > { %v1983_v6 = vmax.f32 %v1661_v56, %v1951_v37  ;;  %v1662_v0 = vmax.f32 %v3148_v12, %v1630_v63 }
 0x1a3   : > { %v1981_v3 = vmax.f32 %v1659_v60, %v1949_v57  ;;  %v1660_v9 = vmax.f32 %v3150_v13, %v1628_v4  ;;  %v2436_v14 = vpop.f32.mrb[56].mxu0  ;;  %v2472_v15 = vpop.f32.mrb[56].mxu1 }
 0x1a4   : > { %2015 = vst [vmem:[%s3198_s20 + $0xb0] sm:$0xff] %v1983_v6  ;;  %v1984_v16 = vmax.f32 %v1662_v0, %v1952_v7  ;;  %v1585_v5 = vadd.f32 %v2436_v14, %v3054_v10  ;;  %v1907_v17 = vadd.f32 %v2472_v15, %v3054_v10  ;;  %v1576_v8 = vpop.f32.mrb[57].mxu0  ;;  %v1898_v18 = vpop.f32.mrb[57].mxu1 }
 0x1a5   : > { %2013 = vst [vmem:[%s3198_s20 + $0xa0] sm:$0xff] %v1981_v3  ;;  %v1982_v24 = vmax.f32 %v1660_v9, %v1950_v11  ;;  %v1577_v12 = vadd.f32 %v3054_v10, %v1576_v8  ;;  %v1899_v19 = vadd.f32 %v3054_v10, %v1898_v18  ;;  %v2437_v13 = vpop.f32.mrb[58].mxu0  ;;  %v2473_v27 = vpop.f32.mrb[58].mxu1 }
 0x1a6   : > { %2016 = vst [vmem:[%s3198_s20 + $0xb8] sm:$0xff] %v1984_v16  ;;  %v1633_v20 = vmax.f32 %v1585_v5, 0.0  ;;  %v1955_v21 = vmax.f32 %v1907_v17, 0.0  ;;  %v1588_v30 = vadd.f32 %v2437_v13, %v3054_v10  ;;  %v1910_v22 = vadd.f32 %v2473_v27, %v3054_v10  ;;  %v1579_v32 = vpop.f32.mrb[59].mxu0  ;;  %v1901_v25 = vpop.f32.mrb[59].mxu1 }
 0x1a7   : > { %2014 = vst [vmem:[%s3198_s20 + $0xa8] sm:$0xff] %v1982_v24  ;;  %v1631_v28 = vmax.f32 %v1577_v12, 0.0  ;;  %v1953_v31 = vmax.f32 %v1899_v19, 0.0  ;;  %v1580_v59 = vadd.f32 %v3054_v10, %v1579_v32  ;;  %v1902_v35 = vadd.f32 %v3054_v10, %v1901_v25 }
 0x1a8   : > { %v1665_v62 = vmax.f32 %v3160_v46, %v1633_v20  ;;  %v1634_v36 = vmax.f32 %v1588_v30, 0.0  ;;  %v1956_v33 = vmax.f32 %v1910_v22, 0.0 }
 0x1a9   : > { %v1663_v43 = vmax.f32 %v3162_v49, %v1631_v28  ;;  %v1632_v1 = vmax.f32 %v1580_v59, 0.0  ;;  %v1954_v39 = vmax.f32 %v1902_v35, 0.0 }
 0x1aa   : > { %v1987_v26 = vmax.f32 %v1665_v62, %v1955_v21  ;;  %v1666_v44 = vmax.f32 %v3164_v52, %v1634_v36 }
 0x1ab   : > { %v1985_v2 = vmax.f32 %v1663_v43, %v1953_v31  ;;  %v1664_v45 = vmax.f32 %v3166_v53, %v1632_v1  ;;  %v2440_v34 = vpop.f32.mrb[60].mxu0  ;;  %v2476_v40 = vpop.f32.mrb[60].mxu1 }
 0x1ac   : > { %2019 = vst [vmem:[%s3198_s20 + $0xd0] sm:$0xff] %v1987_v26  ;;  %v1988_v47 = vmax.f32 %v1666_v44, %v1956_v33  ;;  %v1601_v46 = vadd.f32 %v2440_v34, %v3054_v10  ;;  %v1923_v48 = vadd.f32 %v2476_v40, %v3054_v10  ;;  %v1592_v49 = vpop.f32.mrb[61].mxu0  ;;  %v1914_v37 = vpop.f32.mrb[61].mxu1 }
 0x1ad   : > { %2017 = vst [vmem:[%s3198_s20 + $0xc0] sm:$0xff] %v1985_v2  ;;  %v1986_v50 = vmax.f32 %v1664_v45, %v1954_v39  ;;  %v1593_v52 = vadd.f32 %v3054_v10, %v1592_v49  ;;  %v1915_v38 = vadd.f32 %v3054_v10, %v1914_v37  ;;  %v2441_v53 = vpop.f32.mrb[62].mxu0  ;;  %v2477_v51 = vpop.f32.mrb[62].mxu1 }
 0x1ae   : > { %2020 = vst [vmem:[%s3198_s20 + $0xd8] sm:$0xff] %v1988_v47  ;;  %v1637_v54 = vmax.f32 %v1601_v46, 0.0  ;;  %v1959_v55 = vmax.f32 %v1923_v48, 0.0  ;;  %v1604_v57 = vadd.f32 %v2441_v53, %v3054_v10  ;;  %v1926_v58 = vadd.f32 %v2477_v51, %v3054_v10  ;;  %v1595_v61 = vpop.f32.mrb[63].mxu0  ;;  %v1917_v56 = vpop.f32.mrb[63].mxu1 }
 0x1af   : > { %2018 = vst [vmem:[%s3198_s20 + $0xc8] sm:$0xff] %v1986_v50  ;;  %v1635_v63 = vmax.f32 %v1593_v52, 0.0  ;;  %v1957_v60 = vmax.f32 %v1915_v38, 0.0  ;;  %v1596_v4 = vadd.f32 %v3054_v10, %v1595_v61  ;;  %v1918_v6 = vadd.f32 %v3054_v10, %v1917_v56 }
 0x1b0   : > { %v1669_v0 = vmax.f32 %v3178_v23, %v1637_v54  ;;  %v1638_v7 = vmax.f32 %v1604_v57, 0.0  ;;  %v1960_v15 = vmax.f32 %v1926_v58, 0.0 }
 0x1b1   : > { %v1667_v3 = vmax.f32 %v3180_v29, %v1635_v63  ;;  %v1636_v9 = vmax.f32 %v1596_v4, 0.0  ;;  %v1958_v17 = vmax.f32 %v1918_v6, 0.0 }
 0x1b2   : > { %v1991_v11 = vmax.f32 %v1669_v0, %v1959_v55  ;;  %v1670_v14 = vmax.f32 %v3182_v41, %v1638_v7 }
 0x1b3   : > { %v1989_v16 = vmax.f32 %v1667_v3, %v1957_v60  ;;  %v1668_v5 = vmax.f32 %v3184_v42, %v1636_v9 }
 0x1b4   : > { %2023 = vst [vmem:[%s3198_s20 + $0xf0] sm:$0xff] %v1991_v11  ;;  %v1992_v8 = vmax.f32 %v1670_v14, %v1960_v15 }
 0x1b5   : > { %2021 = vst [vmem:[%s3198_s20 + $0xe0] sm:$0xff] %v1989_v16  ;;  %v1990_v18 = vmax.f32 %v1668_v5, %v1958_v17 }
 0x1b6   : > { %2024 = vst [vmem:[%s3198_s20 + $0xf8] sm:$0xff] %v1992_v8 }
 0x1b7   : > { %2022 = vst [vmem:[%s3198_s20 + $0xe8] sm:$0xff] %v1990_v18 }
 0x1b8 PF: > { %p10_p9 = scmp.ge.s32.totalorder %s2565_s16, 4   ;;  %s3333_s12 = smov %s2521_s13 }
 0x1b9   : > { %s3334_s13 = smov %s2574_s19  ;;  %s3335_s14 = smov %s2565_s16 }
 0x1ba   :  { %12 = sbr.rel (!%p10_p9) target bundleno = 2 (0x2), region = 108 }

// kernel: forward.6
= control target key start
LH: loop header
LB: loop body
LE: loop exit
PB: predicated region body
PF: predicated region fallthrough
CT: control target
= control target key end

     0   :  { %v883_v0 = vmov 0   ;;  %vm103_vm0 = vcmask 719872   ;;  %vm125_vm1 = vcmask 1043456   ;;  %s1600_s1 = inlined_call_operand.vmem [shape: f32[216,128], index: 1, kind: input, shape index: {}]   ;;  %s1601_s0 = inlined_call_operand.vmem [shape: f32[4,104,216], index: 0, kind: input, shape index: {}]   ;;  %s1602_s2 = inlined_call_operand.vmem [shape: f32[1,128], index: 2, kind: input, shape index: {}]   ;;  %s1603_s3 = inlined_call_operand.vmem [shape: f32[104,128], index: 3, kind: output, shape index: {}]  }
   0x1   :  { %129 = vmatprep.subr.bf16.mxu0 %v883_v0  ;;  %292 = vmatprep.subr.bf16.mxu1 %v883_v0  ;;  %v15_v1 = vld [vmem:[%s1600_s1] sm:$0xff]  ;;  %v16_v2 = vld [vmem:[%s1600_s1 + $0x8] sm:$0xff]  ;;  %v17_v3 = vld [vmem:[%s1600_s1 + $0x10] sm:$0xff] }
   0x2   :  { %v915_v4 = vpack.c.bf16 %v16_v2, %v15_v1  ;;  %v18_v5 = vld [vmem:[%s1600_s1 + $0x18] sm:$0xff]  ;;  %v19_v7 = vld [vmem:[%s1600_s1 + $0x20] sm:$0xff]  ;;  %v20_v8 = vld [vmem:[%s1600_s1 + $0x28] sm:$0xff] }
   0x3   :  { %v922_v6 = vpack.c.bf16 %v18_v5, %v17_v3  ;;  %v934_v9 = vpack.c.bf16 %v20_v8, %v19_v7  ;;  %v21_v10 = vld [vmem:[%s1600_s1 + $0x30] sm:$0xff]  ;;  %v22_v11 = vld [vmem:[%s1600_s1 + $0x38] sm:$0xff]  ;;  %v58_v12 = vld [vmem:[%s1601_s0 + $0x8] sm:$0xff] }
   0x4   :  { %130 = vmatpush1.bf16.msra.mxu0 %v915_v4  ;;  %293 = vmatpush1.bf16.msra.mxu1 %v915_v4  ;;  %v60_v13 = vld [vmem:[%s1601_s0 + $0x18] sm:$0xff]  ;;  %v786_v16 = vld [vmem:[%s1601_s0 + $0xe8] sm:$0xff]  ;;  %v958_v17 = vpack.c.bf16 %v22_v11, %v21_v10  ;;  %v23_v19 = vld [vmem:[%s1600_s1 + $0x40] sm:$0xff] }
   0x5   :  { %131 = vmatprep.subr.bf16.mxu0 %v883_v0  ;;  %294 = vmatprep.subr.bf16.mxu1 %v883_v0  ;;  %v784_v14 = vld [vmem:[%s1601_s0 + $0xd8] sm:$0xff]  ;;  %v84_v15 = vpack.c.bf16 %v60_v13, %v58_v12  ;;  %v24_v20 = vld [vmem:[%s1600_s1 + $0x48] sm:$0xff]  ;;  %v25_v22 = vld [vmem:[%s1600_s1 + $0x50] sm:$0xff] }
   0x6   :  { %v258_v18 = vpack.c.bf16 %v786_v16, %v784_v14  ;;  %v972_v21 = vpack.c.bf16 %v24_v20, %v23_v19  ;;  %v26_v23 = vld [vmem:[%s1600_s1 + $0x58] sm:$0xff]  ;;  %v27_v25 = vld [vmem:[%s1600_s1 + $0x60] sm:$0xff]  ;;  %v28_v26 = vld [vmem:[%s1600_s1 + $0x68] sm:$0xff] }
   0x7   :  { %776 = vmatprep.mubr.msk.bf16.mxu0 %vm103_vm0, %v84_v15  ;;  %v984_v24 = vpack.c.bf16 %v26_v23, %v25_v22  ;;  %v996_v27 = vpack.c.bf16 %v28_v26, %v27_v25  ;;  %v29_v28 = vld [vmem:[%s1600_s1 + $0x70] sm:$0xff]  ;;  %v30_v29 = vld [vmem:[%s1600_s1 + $0x78] sm:$0xff]  ;;  %v31_v31 = vld [vmem:[%s1600_s1 + $0x80] sm:$0xff] }
   0x8   :  { %132 = vmatpush1.bf16.msra.mxu0 %v922_v6  ;;  %295 = vmatpush1.bf16.msra.mxu1 %v922_v6  ;;  %v1008_v30 = vpack.c.bf16 %v30_v29, %v29_v28  ;;  %v32_v32 = vld [vmem:[%s1600_s1 + $0x88] sm:$0xff]  ;;  %v33_v34 = vld [vmem:[%s1600_s1 + $0x90] sm:$0xff]  ;;  %v34_v35 = vld [vmem:[%s1600_s1 + $0x98] sm:$0xff] }
   0x9   :  { %133 = vmatprep.subr.bf16.mxu0 %v883_v0  ;;  %296 = vmatprep.subr.bf16.mxu1 %v883_v0  ;;  %v1020_v33 = vpack.c.bf16 %v32_v32, %v31_v31  ;;  %v1032_v36 = vpack.c.bf16 %v34_v35, %v33_v34  ;;  %v35_v37 = vld [vmem:[%s1600_s1 + $0xa0] sm:$0xff]  ;;  %v36_v38 = vld [vmem:[%s1600_s1 + $0xa8] sm:$0xff]  ;;  %v37_v40 = vld [vmem:[%s1600_s1 + $0xb0] sm:$0xff] }
   0xa   :  { %809 = vmatprep.mubr.msk.bf16.mxu1 %vm103_vm0, %v258_v18  ;;  %v1044_v39 = vpack.c.bf16 %v36_v38, %v35_v37  ;;  %v38_v41 = vld [vmem:[%s1600_s1 + $0xb8] sm:$0xff]  ;;  %v39_v43 = vld [vmem:[%s1600_s1 + $0xc0] sm:$0xff]  ;;  %v40_v44 = vld [vmem:[%s1600_s1 + $0xc8] sm:$0xff] }
   0xb   :  { %v1056_v42 = vpack.c.bf16 %v38_v41, %v37_v40  ;;  %v41_v45 = vld [vmem:[%s1600_s1 + $0xd0] sm:$0xff]  ;;  %v1071_v46 = vpack.c.bf16 %v40_v44, %v39_v43  ;;  %v57_v48 = vld [vmem:[%s1601_s0] sm:$0xff]  ;;  %v62_v53 = vld [vmem:[%s1601_s0 + $0x28] sm:$0xff] }
   0xc   :  { %134 = vmatpush1.bf16.msra.mxu0 %v934_v9  ;;  %297 = vmatpush1.bf16.msra.mxu1 %v934_v9  ;;  %v55_v47 = vpack.c.bf16 %v41_v45, %v41_v45  ;;  %v59_v49 = vld [vmem:[%s1601_s0 + $0x10] sm:$0xff]  ;;  %v785_v51 = vld [vmem:[%s1601_s0 + $0xe0] sm:$0xff]  ;;  %v64_v56 = vld [vmem:[%s1601_s0 + $0x38] sm:$0xff] }
   0xd   :  { %135 = vmatprep.subr.bf16.mxu0 %v883_v0  ;;  %298 = vmatprep.subr.bf16.mxu1 %v883_v0  ;;  %v783_v50 = vld [vmem:[%s1601_s0 + $0xd0] sm:$0xff]  ;;  %v83_v54 = vpack.c.bf16 %v59_v49, %v57_v48  ;;  %v788_v57 = vld [vmem:[%s1601_s0 + $0xf8] sm:$0xff]  ;;  %v790_v58 = vld [vmem:[%s1601_s0 + $0x108] sm:$0xff]  ;;  %v86_v59 = vpack.c.bf16 %v64_v56, %v62_v53 }
   0xe   :  { %v1091_v52 = vsel %vm125_vm1, %v55_v47, 0  ;;  %v257_v55 = vpack.c.bf16 %v785_v51, %v783_v50  ;;  %v260_v60 = vpack.c.bf16 %v790_v58, %v788_v57  ;;  %v61_v61 = vld [vmem:[%s1601_s0 + $0x20] sm:$0xff]  ;;  %v63_v62 = vld [vmem:[%s1601_s0 + $0x30] sm:$0xff]  ;;  %v66_v2 = vld [vmem:[%s1601_s0 + $0x48] sm:$0xff] }
   0xf   :  { %v787_v63 = vld [vmem:[%s1601_s0 + $0xf0] sm:$0xff]  ;;  %v789_v1 = vld [vmem:[%s1601_s0 + $0x100] sm:$0xff]  ;;  %v85_v3 = vpack.c.bf16 %v63_v62, %v61_v61  ;;  %v68_v5 = vld [vmem:[%s1601_s0 + $0x58] sm:$0xff] }
  0x10   :  { %136 = vmatpush1.bf16.msra.mxu0 %v958_v17  ;;  %299 = vmatpush1.bf16.msra.mxu1 %v958_v17  ;;  %v792_v7 = vld [vmem:[%s1601_s0 + $0x118] sm:$0xff]  ;;  %v794_v8 = vld [vmem:[%s1601_s0 + $0x128] sm:$0xff]  ;;  %v88_v10 = vpack.c.bf16 %v68_v5, %v66_v2  ;;  %v65_v12 = vld [vmem:[%s1601_s0 + $0x40] sm:$0xff] }
  0x11   :  { %137 = vmatprep.subr.bf16.mxu0 %v883_v0  ;;  %300 = vmatprep.subr.bf16.mxu1 %v883_v0  ;;  %v262_v11 = vpack.c.bf16 %v794_v8, %v792_v7  ;;  %v791_v13 = vld [vmem:[%s1601_s0 + $0x110] sm:$0xff]  ;;  %v793_v14 = vld [vmem:[%s1601_s0 + $0x120] sm:$0xff]  ;;  %v72_v18 = vld [vmem:[%s1601_s0 + $0x78] sm:$0xff] }
  0x12   :  { %v261_v16 = vpack.c.bf16 %v793_v14, %v791_v13  ;;  %v796_v19 = vld [vmem:[%s1601_s0 + $0x138] sm:$0xff]  ;;  %v798_v20 = vld [vmem:[%s1601_s0 + $0x148] sm:$0xff]  ;;  %v69_v25 = vld [vmem:[%s1601_s0 + $0x60] sm:$0xff] }
  0x13   :  { %v264_v23 = vpack.c.bf16 %v798_v20, %v796_v19  ;;  %v795_v26 = vld [vmem:[%s1601_s0 + $0x130] sm:$0xff]  ;;  %v797_v28 = vld [vmem:[%s1601_s0 + $0x140] sm:$0xff]  ;;  %v76_v32 = vld [vmem:[%s1601_s0 + $0x98] sm:$0xff] }
  0x14   :  { %138 = vmatpush1.bf16.msra.mxu0 %v972_v21  ;;  %301 = vmatpush1.bf16.msra.mxu1 %v972_v21  ;;  %v263_v31 = vpack.c.bf16 %v797_v28, %v795_v26  ;;  %v800_v34 = vld [vmem:[%s1601_s0 + $0x158] sm:$0xff]  ;;  %v802_v35 = vld [vmem:[%s1601_s0 + $0x168] sm:$0xff]  ;;  %v73_v40 = vld [vmem:[%s1601_s0 + $0x80] sm:$0xff] }
  0x15   :  { %139 = vmatprep.subr.bf16.mxu0 %v883_v0  ;;  %302 = vmatprep.subr.bf16.mxu1 %v883_v0  ;;  %v266_v38 = vpack.c.bf16 %v802_v35, %v800_v34  ;;  %v799_v41 = vld [vmem:[%s1601_s0 + $0x150] sm:$0xff]  ;;  %v801_v43 = vld [vmem:[%s1601_s0 + $0x160] sm:$0xff]  ;;  %v80_v47 = vld [vmem:[%s1601_s0 + $0xb8] sm:$0xff] }
  0x16   :  { %v265_v45 = vpack.c.bf16 %v801_v43, %v799_v41  ;;  %v804_v48 = vld [vmem:[%s1601_s0 + $0x178] sm:$0xff]  ;;  %v806_v49 = vld [vmem:[%s1601_s0 + $0x188] sm:$0xff]  ;;  %v77_v53 = vld [vmem:[%s1601_s0 + $0xa0] sm:$0xff] }
  0x17   :  { %v268_v51 = vpack.c.bf16 %v806_v49, %v804_v48  ;;  %v82_v57 = vld [vmem:[%s1601_s0 + $0xc8] sm:$0xff]  ;;  %v808_v58 = vld [vmem:[%s1601_s0 + $0x198] sm:$0xff]  ;;  %v81_v61 = vld [vmem:[%s1601_s0 + $0xc0] sm:$0xff] }
  0x18   :  { %140 = vmatpush1.bf16.msra.mxu0 %v984_v24  ;;  %303 = vmatpush1.bf16.msra.mxu1 %v984_v24  ;;  %v95_v62 = vpack.c.bf16 %v81_v61, %v81_v61  ;;  %v850_v2 = vld [vmem:[%s1601_s0 + $0x278] sm:$0xff]  ;;  %v816_v7 = vld [vmem:[%s1601_s0 + $0x1a0] sm:$0xff]  ;;  %v818_v8 = vld [vmem:[%s1601_s0 + $0x1b0] sm:$0xff] }
  0x19   :  { %141 = vmatprep.subr.bf16.mxu0 %v883_v0  ;;  %304 = vmatprep.subr.bf16.mxu1 %v883_v0  ;;  %v433_v13 = vpack.c.bf16 %v818_v8, %v816_v7  ;;  %v825_v19 = vld [vmem:[%s1601_s0 + $0x1e8] sm:$0xff]  ;;  %v827_v20 = vld [vmem:[%s1601_s0 + $0x1f8] sm:$0xff] }
  0x1a   :  { %v438_v26 = vpack.c.bf16 %v827_v20, %v825_v19  ;;  %v829_v34 = vld [vmem:[%s1601_s0 + $0x208] sm:$0xff]  ;;  %v831_v35 = vld [vmem:[%s1601_s0 + $0x218] sm:$0xff] }
  0x1b   :  { %v440_v41 = vpack.c.bf16 %v831_v35, %v829_v34  ;;  %v833_v48 = vld [vmem:[%s1601_s0 + $0x228] sm:$0xff]  ;;  %v835_v49 = vld [vmem:[%s1601_s0 + $0x238] sm:$0xff] }
  0x1c   :  { %142 = vmatpush1.bf16.msra.mxu0 %v996_v27  ;;  %305 = vmatpush1.bf16.msra.mxu1 %v996_v27  ;;  %v870_v61 = vld [vmem:[%s1601_s0 + $0x318] sm:$0xff]  ;;  %v841_v7 = vld [vmem:[%s1601_s0 + $0x268] sm:$0xff] }
  0x1d   :  { %143 = vmatprep.subr.bf16.mxu0 %v883_v0  ;;  %306 = vmatprep.subr.bf16.mxu1 %v883_v0  ;;  %v874_v8 = vld [vmem:[%s1601_s0 + $0x338] sm:$0xff] }
  0x20   :  { %144 = vmatpush1.bf16.msra.mxu0 %v1008_v30  ;;  %307 = vmatpush1.bf16.msra.mxu1 %v1008_v30 }
  0x21   :  { %145 = vmatprep.subr.bf16.mxu0 %v883_v0  ;;  %308 = vmatprep.subr.bf16.mxu1 %v883_v0 }
  0x24   :  { %146 = vmatpush1.bf16.msra.mxu0 %v1020_v33  ;;  %309 = vmatpush1.bf16.msra.mxu1 %v1020_v33 }
  0x25   :  { %147 = vmatprep.subr.bf16.mxu0 %v883_v0  ;;  %310 = vmatprep.subr.bf16.mxu1 %v883_v0 }
  0x28   :  { %148 = vmatpush1.bf16.msra.mxu0 %v1032_v36  ;;  %311 = vmatpush1.bf16.msra.mxu1 %v1032_v36 }
  0x29   :  { %149 = vmatprep.subr.bf16.mxu0 %v883_v0  ;;  %312 = vmatprep.subr.bf16.mxu1 %v883_v0 }
  0x2c   :  { %150 = vmatpush1.bf16.msra.mxu0 %v1044_v39  ;;  %313 = vmatpush1.bf16.msra.mxu1 %v1044_v39 }
  0x2d   :  { %151 = vmatprep.subr.bf16.mxu0 %v883_v0  ;;  %314 = vmatprep.subr.bf16.mxu1 %v883_v0 }
  0x30   :  { %152 = vmatpush1.bf16.msra.mxu0 %v1056_v42  ;;  %315 = vmatpush1.bf16.msra.mxu1 %v1056_v42 }
  0x31   :  { %153 = vmatprep.subr.bf16.mxu0 %v883_v0  ;;  %316 = vmatprep.subr.bf16.mxu1 %v883_v0 }
  0x34   :  { %154 = vmatpush1.bf16.msra.mxu0 %v1071_v46  ;;  %317 = vmatpush1.bf16.msra.mxu1 %v1071_v46 }
  0x35   :  { %155 = vmatprep.subr.bf16.mxu0 %v883_v0  ;;  %318 = vmatprep.subr.bf16.mxu1 %v883_v0 }
  0x38   :  { %156 = vmatpush1.bf16.msra.mxu0 %v1091_v52  ;;  %319 = vmatpush1.bf16.msra.mxu1 %v1091_v52 }
  0x39   :  { %468 = vmatprep.subr.bf16.mxu0 %v883_v0  ;;  %644 = vmatprep.subr.bf16.mxu1 %v883_v0 }
  0x3b   :  { %162 = vmatmul.mubr.bf16.vlgmr.msra.gmra.mrb[0].mxu0 %v83_v54  ;;  %325 = vmatmul.mubr.bf16.vlgmr.msra.gmra.mrb[0].mxu1 %v257_v55  ;;  %v803_v54 = vld [vmem:[%s1601_s0 + $0x170] sm:$0xff]  ;;  %v805_v55 = vld [vmem:[%s1601_s0 + $0x180] sm:$0xff] }
  0x3c   :  { %469 = vmatpush1.bf16.msra.mxu0 %v915_v4  ;;  %645 = vmatpush1.bf16.msra.mxu1 %v915_v4  ;;  %v259_v4 = vpack.c.bf16 %v789_v1, %v787_v63  ;;  %v267_v56 = vpack.c.bf16 %v805_v55, %v803_v54  ;;  %v819_v1 = vld [vmem:[%s1601_s0 + $0x1b8] sm:$0xff]  ;;  %v442_v54 = vpack.c.bf16 %v835_v49, %v833_v48 }
  0x3d   :  { %470 = vmatprep.subr.bf16.mxu0 %v883_v0  ;;  %646 = vmatprep.subr.bf16.mxu1 %v883_v0 }
  0x3e   :  { %777 = vmatprep.mubr.msk.bf16.mxu0 %vm103_vm0, %v86_v59  ;;  %810 = vmatprep.mubr.msk.bf16.mxu1 %vm103_vm0, %v260_v60  ;;  %v96_v59 = vpack.c.bf16 %v82_v57, %v82_v57  ;;  %v270_v60 = vpack.c.bf16 %v808_v58, %v808_v58  ;;  %v865_v57 = vld [vmem:[%s1601_s0 + $0x2f0] sm:$0xff]  ;;  %v867_v58 = vld [vmem:[%s1601_s0 + $0x300] sm:$0xff] }
  0x40   :  { %471 = vmatpush1.bf16.msra.mxu0 %v922_v6  ;;  %647 = vmatpush1.bf16.msra.mxu1 %v922_v6  ;;  %v67_v6 = vld [vmem:[%s1601_s0 + $0x50] sm:$0xff] }
  0x41   :  { %472 = vmatprep.subr.bf16.mxu0 %v883_v0  ;;  %648 = vmatprep.subr.bf16.mxu1 %v883_v0  ;;  %v87_v15 = vpack.c.bf16 %v67_v6, %v65_v12  ;;  %v854_v12 = vld [vmem:[%s1601_s0 + $0x298] sm:$0xff]  ;;  %v856_v6 = vld [vmem:[%s1601_s0 + $0x2a8] sm:$0xff] }
  0x43   :  { %170 = vmatmul.mubr.bf16.gmra.mrb[4].mxu0 %v85_v3  ;;  %333 = vmatmul.mubr.bf16.gmra.mrb[4].mxu1 %v259_v4  ;;  %v852_v3 = vld [vmem:[%s1601_s0 + $0x288] sm:$0xff] }
  0x44   :  { %473 = vmatpush1.bf16.msra.mxu0 %v934_v9  ;;  %649 = vmatpush1.bf16.msra.mxu1 %v934_v9  ;;  %v70_v9 = vld [vmem:[%s1601_s0 + $0x68] sm:$0xff]  ;;  %v610_v5 = vpack.c.bf16 %v852_v3, %v850_v2  ;;  %v836_v2 = vld [vmem:[%s1601_s0 + $0x240] sm:$0xff]  ;;  %v838_v3 = vld [vmem:[%s1601_s0 + $0x250] sm:$0xff] }
  0x45   :  { %474 = vmatprep.subr.bf16.mxu0 %v883_v0  ;;  %650 = vmatprep.subr.bf16.mxu1 %v883_v0  ;;  %v90_v22 = vpack.c.bf16 %v72_v18, %v70_v9  ;;  %v612_v9 = vpack.c.bf16 %v856_v6, %v854_v12  ;;  %v855_v18 = vld [vmem:[%s1601_s0 + $0x2a0] sm:$0xff]  ;;  %v873_v6 = vld [vmem:[%s1601_s0 + $0x330] sm:$0xff] }
  0x46   :  { %778 = vmatprep.mubr.msk.bf16.mxu0 %vm103_vm0, %v88_v10  ;;  %811 = vmatprep.mubr.msk.bf16.mxu1 %vm103_vm0, %v262_v11  ;;  %v851_v10 = vld [vmem:[%s1601_s0 + $0x280] sm:$0xff]  ;;  %v821_v11 = vld [vmem:[%s1601_s0 + $0x1c8] sm:$0xff] }
  0x47   :  { %v840_v12 = vld [vmem:[%s1601_s0 + $0x260] sm:$0xff] }
  0x48   :  { %475 = vmatpush1.bf16.msra.mxu0 %v958_v17  ;;  %651 = vmatpush1.bf16.msra.mxu1 %v958_v17  ;;  %v71_v17 = vld [vmem:[%s1601_s0 + $0x70] sm:$0xff] }
  0x49   :  { %476 = vmatprep.subr.bf16.mxu0 %v883_v0  ;;  %652 = vmatprep.subr.bf16.mxu1 %v883_v0  ;;  %v89_v29 = vpack.c.bf16 %v71_v17, %v69_v25 }
  0x4b   :  { %178 = vmatmul.mubr.bf16.gmra.mrb[8].mxu0 %v87_v15  ;;  %341 = vmatmul.mubr.bf16.gmra.mrb[8].mxu1 %v261_v16  ;;  %v820_v15 = vld [vmem:[%s1601_s0 + $0x1c0] sm:$0xff]  ;;  %v822_v16 = vld [vmem:[%s1601_s0 + $0x1d0] sm:$0xff] }
  0x4c   :  { %477 = vmatpush1.bf16.msra.mxu0 %v972_v21  ;;  %653 = vmatpush1.bf16.msra.mxu1 %v972_v21  ;;  %v74_v21 = vld [vmem:[%s1601_s0 + $0x88] sm:$0xff]  ;;  %v435_v25 = vpack.c.bf16 %v822_v16, %v820_v15 }
  0x4d   :  { %478 = vmatprep.subr.bf16.mxu0 %v883_v0  ;;  %654 = vmatprep.subr.bf16.mxu1 %v883_v0  ;;  %v92_v37 = vpack.c.bf16 %v76_v32, %v74_v21  ;;  %v824_v21 = vld [vmem:[%s1601_s0 + $0x1e0] sm:$0xff] }
  0x4e   :  { %779 = vmatprep.mubr.msk.bf16.mxu0 %vm103_vm0, %v90_v22  ;;  %812 = vmatprep.mubr.msk.bf16.mxu1 %vm103_vm0, %v264_v23  ;;  %v858_v22 = vld [vmem:[%s1601_s0 + $0x2b8] sm:$0xff]  ;;  %v860_v23 = vld [vmem:[%s1601_s0 + $0x2c8] sm:$0xff]  ;;  %v859_v32 = vld [vmem:[%s1601_s0 + $0x2c0] sm:$0xff] }
  0x4f   :  { %v614_v28 = vpack.c.bf16 %v860_v23, %v858_v22 }
  0x50   :  { %479 = vmatpush1.bf16.msra.mxu0 %v984_v24  ;;  %655 = vmatpush1.bf16.msra.mxu1 %v984_v24  ;;  %v75_v24 = vld [vmem:[%s1601_s0 + $0x90] sm:$0xff] }
  0x51   :  { %480 = vmatprep.subr.bf16.mxu0 %v883_v0  ;;  %656 = vmatprep.subr.bf16.mxu1 %v883_v0  ;;  %v91_v44 = vpack.c.bf16 %v75_v24, %v73_v40 }
  0x53   :  { %186 = vmatmul.mubr.bf16.gmra.mrb[12].mxu0 %v89_v29  ;;  %349 = vmatmul.mubr.bf16.gmra.mrb[12].mxu1 %v263_v31  ;;  %v826_v29 = vld [vmem:[%s1601_s0 + $0x1f0] sm:$0xff] }
  0x54   :  { %481 = vmatpush1.bf16.msra.mxu0 %v996_v27  ;;  %657 = vmatpush1.bf16.msra.mxu1 %v996_v27  ;;  %v78_v27 = vld [vmem:[%s1601_s0 + $0xa8] sm:$0xff]  ;;  %v857_v31 = vld [vmem:[%s1601_s0 + $0x2b0] sm:$0xff]  ;;  %v437_v40 = vpack.c.bf16 %v826_v29, %v824_v21 }
  0x55   :  { %482 = vmatprep.subr.bf16.mxu0 %v883_v0  ;;  %658 = vmatprep.subr.bf16.mxu1 %v883_v0  ;;  %v94_v50 = vpack.c.bf16 %v80_v47, %v78_v27  ;;  %v613_v24 = vpack.c.bf16 %v859_v32, %v857_v31  ;;  %v828_v27 = vld [vmem:[%s1601_s0 + $0x200] sm:$0xff] }
  0x56   :  { %780 = vmatprep.mubr.msk.bf16.mxu0 %vm103_vm0, %v92_v37  ;;  %813 = vmatprep.mubr.msk.bf16.mxu1 %vm103_vm0, %v266_v38  ;;  %v862_v37 = vld [vmem:[%s1601_s0 + $0x2d8] sm:$0xff]  ;;  %v864_v38 = vld [vmem:[%s1601_s0 + $0x2e8] sm:$0xff]  ;;  %v863_v47 = vld [vmem:[%s1601_s0 + $0x2e0] sm:$0xff] }
  0x57   :  { %v616_v43 = vpack.c.bf16 %v864_v38, %v862_v37 }
  0x58   :  { %483 = vmatpush1.bf16.msra.mxu0 %v1008_v30  ;;  %659 = vmatpush1.bf16.msra.mxu1 %v1008_v30  ;;  %v79_v30 = vld [vmem:[%s1601_s0 + $0xb0] sm:$0xff] }
  0x59   :  { %484 = vmatprep.subr.bf16.mxu0 %v883_v0  ;;  %660 = vmatprep.subr.bf16.mxu1 %v883_v0 }
  0x5b   :  { %194 = vmatmul.mubr.bf16.gmra.mrb[16].mxu0 %v91_v44  ;;  %357 = vmatmul.mubr.bf16.gmra.mrb[16].mxu1 %v265_v45  ;;  %v830_v44 = vld [vmem:[%s1601_s0 + $0x210] sm:$0xff] }
  0x5c   :  { %485 = vmatpush1.bf16.msra.mxu0 %v1020_v33  ;;  %661 = vmatpush1.bf16.msra.mxu1 %v1020_v33  ;;  %v93_v33 = vpack.c.bf16 %v79_v30, %v77_v53  ;;  %v861_v45 = vld [vmem:[%s1601_s0 + $0x2d0] sm:$0xff]  ;;  %v439_v53 = vpack.c.bf16 %v830_v44, %v828_v27 }
  0x5d   :  { %486 = vmatprep.subr.bf16.mxu0 %v883_v0  ;;  %662 = vmatprep.subr.bf16.mxu1 %v883_v0  ;;  %v615_v30 = vpack.c.bf16 %v863_v47, %v861_v45 }
  0x5e   :  { %781 = vmatprep.mubr.msk.bf16.mxu0 %vm103_vm0, %v94_v50  ;;  %814 = vmatprep.mubr.msk.bf16.mxu1 %vm103_vm0, %v268_v51  ;;  %v866_v50 = vld [vmem:[%s1601_s0 + $0x2f8] sm:$0xff]  ;;  %v868_v51 = vld [vmem:[%s1601_s0 + $0x308] sm:$0xff] }
  0x5f   :  { %v618_v55 = vpack.c.bf16 %v868_v51, %v866_v50 }
  0x60   :  { %487 = vmatpush1.bf16.msra.mxu0 %v1032_v36  ;;  %663 = vmatpush1.bf16.msra.mxu1 %v1032_v36  ;;  %v807_v36 = vld [vmem:[%s1601_s0 + $0x190] sm:$0xff] }
  0x61   :  { %488 = vmatprep.subr.bf16.mxu0 %v883_v0  ;;  %664 = vmatprep.subr.bf16.mxu1 %v883_v0  ;;  %v269_v63 = vpack.c.bf16 %v807_v36, %v807_v36  ;;  %v872_v36 = vld [vmem:[%s1601_s0 + $0x328] sm:$0xff] }
  0x63   :  { %202 = vmatmul.mubr.bf16.gmra.mrb[20].mxu0 %v93_v33  ;;  %365 = vmatmul.mubr.bf16.gmra.mrb[20].mxu1 %v267_v56  ;;  %v832_v33 = vld [vmem:[%s1601_s0 + $0x220] sm:$0xff]  ;;  %v834_v56 = vld [vmem:[%s1601_s0 + $0x230] sm:$0xff] }
  0x64   :  { %489 = vmatpush1.bf16.msra.mxu0 %v1044_v39  ;;  %665 = vmatpush1.bf16.msra.mxu1 %v1044_v39  ;;  %v817_v39 = vld [vmem:[%s1601_s0 + $0x1a8] sm:$0xff] }
  0x65   :  { %490 = vmatprep.subr.bf16.mxu0 %v883_v0  ;;  %666 = vmatprep.subr.bf16.mxu1 %v883_v0  ;;  %v434_v4 = vpack.c.bf16 %v819_v1, %v817_v39  ;;  %v441_v39 = vpack.c.bf16 %v834_v56, %v832_v33  ;;  %v620_v1 = vpack.c.bf16 %v872_v36, %v870_v61 }
  0x66   :  { %782 = vmatprep.mubr.msk.bf16.mxu0 %vm103_vm0, %v96_v59  ;;  %815 = vmatprep.mubr.msk.bf16.mxu1 %vm103_vm0, %v270_v60  ;;  %v837_v59 = vld [vmem:[%s1601_s0 + $0x248] sm:$0xff]  ;;  %v839_v60 = vld [vmem:[%s1601_s0 + $0x258] sm:$0xff] }
  0x68   :  { %491 = vmatpush1.bf16.msra.mxu0 %v1056_v42  ;;  %667 = vmatpush1.bf16.msra.mxu1 %v1056_v42  ;;  %v849_v42 = vld [vmem:[%s1601_s0 + $0x270] sm:$0xff] }
  0x69   :  { %492 = vmatprep.subr.bf16.mxu0 %v883_v0  ;;  %668 = vmatprep.subr.bf16.mxu1 %v883_v0  ;;  %v609_v14 = vpack.c.bf16 %v851_v10, %v849_v42  ;;  %v443_v42 = vpack.c.bf16 %v838_v3, %v836_v2 }
  0x6b   :  { %210 = vmatmul.mubr.bf16.gmra.mrb[24].mxu0 %v95_v62  ;;  %373 = vmatmul.mubr.bf16.gmra.mrb[24].mxu1 %v269_v63  ;;  %v617_v62 = vpack.c.bf16 %v867_v58, %v865_v57  ;;  %v444_v63 = vpack.c.bf16 %v839_v60, %v837_v59 }
  0x6c   :  { %493 = vmatpush1.bf16.msra.mxu0 %v1071_v46  ;;  %669 = vmatpush1.bf16.msra.mxu1 %v1071_v46  ;;  %v823_v46 = vld [vmem:[%s1601_s0 + $0x1d8] sm:$0xff] }
  0x6d   :  { %494 = vmatprep.subr.bf16.mxu0 %v883_v0  ;;  %670 = vmatprep.subr.bf16.mxu1 %v883_v0  ;;  %v436_v0 = vpack.c.bf16 %v823_v46, %v821_v11  ;;  %v446_v11 = vpack.c.bf16 %v841_v7, %v841_v7  ;;  %v622_v46 = vpack.c.bf16 %v874_v8, %v874_v8 }
  0x6e   :  { %842 = vmatprep.mubr.msk.bf16.mxu0 %vm103_vm0, %v434_v4  ;;  %875 = vmatprep.mubr.msk.bf16.mxu1 %vm103_vm0, %v610_v5  ;;  %v869_v4 = vld [vmem:[%s1601_s0 + $0x310] sm:$0xff]  ;;  %v871_v5 = vld [vmem:[%s1601_s0 + $0x320] sm:$0xff] }
  0x6f   :  { %v619_v10 = vpack.c.bf16 %v871_v5, %v869_v4 }
  0x70   :  { %495 = vmatpush1.bf16.msra.mxu0 %v1091_v52  ;;  %671 = vmatpush1.bf16.msra.mxu1 %v1091_v52  ;;  %v853_v52 = vld [vmem:[%s1601_s0 + $0x290] sm:$0xff] }
  0x71   :  { %v611_v17 = vpack.c.bf16 %v855_v18, %v853_v52 }
  0x73   :  { %501 = vmatmul.mubr.bf16.vlgmr.msra.gmra.mrb[28].mxu0 %v433_v13  ;;  %677 = vmatmul.mubr.bf16.vlgmr.msra.gmra.mrb[28].mxu1 %v609_v14  ;;  %v445_v13 = vpack.c.bf16 %v840_v12, %v840_v12  ;;  %v621_v14 = vpack.c.bf16 %v873_v6, %v873_v6 }
  0x74   :  { %843 = vmatprep.mubr.msk.bf16.mxu0 %vm103_vm0, %v436_v0  ;;  %876 = vmatprep.mubr.msk.bf16.mxu1 %vm103_vm0, %v612_v9  ;;  %v1468_v0 = vld [vmem:[%s1602_s2] ss:$0 sm:$0xff] }
  0x7b   :  { %509 = vmatmul.mubr.bf16.gmra.mrb[32].mxu0 %v435_v25  ;;  %685 = vmatmul.mubr.bf16.gmra.mrb[32].mxu1 %v611_v17 }
  0x7c   :  { %844 = vmatprep.mubr.msk.bf16.mxu0 %vm103_vm0, %v438_v26  ;;  %877 = vmatprep.mubr.msk.bf16.mxu1 %vm103_vm0, %v614_v28 }
  0x83   :  { %517 = vmatmul.mubr.bf16.gmra.mrb[36].mxu0 %v437_v40  ;;  %693 = vmatmul.mubr.bf16.gmra.mrb[36].mxu1 %v613_v24 }
  0x84   :  { %845 = vmatprep.mubr.msk.bf16.mxu0 %vm103_vm0, %v440_v41  ;;  %878 = vmatprep.mubr.msk.bf16.mxu1 %vm103_vm0, %v616_v43 }
  0x8b   :  { %525 = vmatmul.mubr.bf16.gmra.mrb[40].mxu0 %v439_v53  ;;  %701 = vmatmul.mubr.bf16.gmra.mrb[40].mxu1 %v615_v30 }
  0x8c   :  { %846 = vmatprep.mubr.msk.bf16.mxu0 %vm103_vm0, %v442_v54  ;;  %879 = vmatprep.mubr.msk.bf16.mxu1 %vm103_vm0, %v618_v55 }
  0x93   :  { %533 = vmatmul.mubr.bf16.gmra.mrb[44].mxu0 %v441_v39  ;;  %709 = vmatmul.mubr.bf16.gmra.mrb[44].mxu1 %v617_v62 }
  0x94   :  { %847 = vmatprep.mubr.msk.bf16.mxu0 %vm103_vm0, %v444_v63  ;;  %880 = vmatprep.mubr.msk.bf16.mxu1 %vm103_vm0, %v620_v1 }
  0x9b   :  { %541 = vmatmul.mubr.bf16.gmra.mrb[48].mxu0 %v443_v42  ;;  %717 = vmatmul.mubr.bf16.gmra.mrb[48].mxu1 %v619_v10 }
  0x9c   :  { %848 = vmatprep.mubr.msk.bf16.mxu0 %vm103_vm0, %v446_v11  ;;  %881 = vmatprep.mubr.msk.bf16.mxu1 %vm103_vm0, %v622_v46 }
  0xa3   :  { %549 = vmatmul.mubr.bf16.gmra.mrb[52].mxu0 %v445_v13  ;;  %725 = vmatmul.mubr.bf16.gmra.mrb[52].mxu1 %v621_v14 }
 0x10e   :  { %v163_v9 = vpop.f32.mrb[0].mxu0  ;;  %v326_v15 = vpop.f32.mrb[0].mxu1 }
 0x10f   :  { %v164_v16 = vadd.f32 %v1468_v0, %v163_v9  ;;  %v327_v52 = vadd.f32 %v1468_v0, %v326_v15  ;;  %v165_v18 = vpop.f32.mrb[1].mxu0  ;;  %v328_v19 = vpop.f32.mrb[1].mxu1 }
 0x110   :  { %v166_v20 = vpop.f32.mrb[2].mxu0  ;;  %v329_v22 = vpop.f32.mrb[2].mxu1 }
 0x111   :  { %v217_v23 = vmax.f32 %v164_v16, 0.0  ;;  %v380_v25 = vmax.f32 %v327_v52, 0.0  ;;  %v167_v17 = vadd.f32 %v1468_v0, %v166_v20  ;;  %v330_v26 = vadd.f32 %v1468_v0, %v329_v22  ;;  %v168_v28 = vpop.f32.mrb[3].mxu0  ;;  %v331_v21 = vpop.f32.mrb[3].mxu1 }
 0x113   :  { %v1474_v29 = vmax.f32 %v217_v23, %v380_v25  ;;  %v218_v31 = vmax.f32 %v167_v17, 0.0  ;;  %v381_v32 = vmax.f32 %v330_v26, 0.0 }
 0x115   :  { %v1476_v34 = vmax.f32 %v218_v31, %v381_v32 }
 0x116   :  { %v171_v35 = vpop.f32.mrb[4].mxu0  ;;  %v334_v37 = vpop.f32.mrb[4].mxu1 }
 0x117   :  { %v172_v38 = vadd.f32 %v1468_v0, %v171_v35  ;;  %v335_v40 = vadd.f32 %v1468_v0, %v334_v37  ;;  %v173_v24 = vpop.f32.mrb[5].mxu0  ;;  %v336_v41 = vpop.f32.mrb[5].mxu1 }
 0x118   :  { %v174_v43 = vpop.f32.mrb[6].mxu0  ;;  %v337_v27 = vpop.f32.mrb[6].mxu1 }
 0x119   :  { %v219_v44 = vmax.f32 %v172_v38, 0.0  ;;  %v382_v45 = vmax.f32 %v335_v40, 0.0  ;;  %v175_v47 = vadd.f32 %v1468_v0, %v174_v43  ;;  %v338_v48 = vadd.f32 %v1468_v0, %v337_v27  ;;  %v176_v49 = vpop.f32.mrb[7].mxu0  ;;  %v339_v50 = vpop.f32.mrb[7].mxu1 }
 0x11b   :  { %v1482_v51 = vmax.f32 %v219_v44, %v382_v45  ;;  %v220_v53 = vmax.f32 %v175_v47, 0.0  ;;  %v383_v30 = vmax.f32 %v338_v48, 0.0 }
 0x11d   :  { %v1484_v54 = vmax.f32 %v220_v53, %v383_v30 }
 0x11e   :  { %v179_v55 = vpop.f32.mrb[8].mxu0  ;;  %v342_v33 = vpop.f32.mrb[8].mxu1 }
 0x11f   :  { %v180_v56 = vadd.f32 %v1468_v0, %v179_v55  ;;  %v343_v57 = vadd.f32 %v1468_v0, %v342_v33  ;;  %v181_v58 = vpop.f32.mrb[9].mxu0  ;;  %v344_v59 = vpop.f32.mrb[9].mxu1 }
 0x120   :  { %v182_v60 = vpop.f32.mrb[10].mxu0  ;;  %v345_v61 = vpop.f32.mrb[10].mxu1 }
 0x121   :  { %v221_v36 = vmax.f32 %v180_v56, 0.0  ;;  %v384_v39 = vmax.f32 %v343_v57, 0.0  ;;  %v183_v62 = vadd.f32 %v1468_v0, %v182_v60  ;;  %v346_v63 = vadd.f32 %v1468_v0, %v345_v61  ;;  %v184_v1 = vpop.f32.mrb[11].mxu0  ;;  %v347_v2 = vpop.f32.mrb[11].mxu1 }
 0x123   :  { %v1490_v3 = vmax.f32 %v221_v36, %v384_v39  ;;  %v222_v4 = vmax.f32 %v183_v62, 0.0  ;;  %v385_v5 = vmax.f32 %v346_v63, 0.0 }
 0x125   :  { %v1492_v7 = vmax.f32 %v222_v4, %v385_v5 }
 0x126   :  { %v187_v8 = vpop.f32.mrb[12].mxu0  ;;  %v350_v42 = vpop.f32.mrb[12].mxu1 }
 0x127   :  { %v188_v10 = vadd.f32 %v1468_v0, %v187_v8  ;;  %v351_v11 = vadd.f32 %v1468_v0, %v350_v42  ;;  %v189_v46 = vpop.f32.mrb[13].mxu0  ;;  %v352_v12 = vpop.f32.mrb[13].mxu1 }
 0x128   :  { %v190_v6 = vpop.f32.mrb[14].mxu0  ;;  %v353_v13 = vpop.f32.mrb[14].mxu1 }
 0x129   :  { %v223_v14 = vmax.f32 %v188_v10, 0.0  ;;  %v386_v9 = vmax.f32 %v351_v11, 0.0  ;;  %v191_v15 = vadd.f32 %v1468_v0, %v190_v6  ;;  %v354_v16 = vadd.f32 %v1468_v0, %v353_v13  ;;  %v192_v52 = vpop.f32.mrb[15].mxu0  ;;  %v355_v18 = vpop.f32.mrb[15].mxu1 }
 0x12b   :  { %v1498_v19 = vmax.f32 %v223_v14, %v386_v9  ;;  %v224_v20 = vmax.f32 %v191_v15, 0.0  ;;  %v387_v22 = vmax.f32 %v354_v16, 0.0 }
 0x12d   :  { %v1500_v23 = vmax.f32 %v224_v20, %v387_v22 }
 0x12e   :  { %v195_v25 = vpop.f32.mrb[16].mxu0  ;;  %v358_v17 = vpop.f32.mrb[16].mxu1 }
 0x12f   :  { %v196_v26 = vadd.f32 %v1468_v0, %v195_v25  ;;  %v359_v28 = vadd.f32 %v1468_v0, %v358_v17  ;;  %v197_v21 = vpop.f32.mrb[17].mxu0  ;;  %v360_v31 = vpop.f32.mrb[17].mxu1 }
 0x130   :  { %v198_v32 = vpop.f32.mrb[18].mxu0  ;;  %v361_v35 = vpop.f32.mrb[18].mxu1 }
 0x131   :  { %v225_v37 = vmax.f32 %v196_v26, 0.0  ;;  %v388_v38 = vmax.f32 %v359_v28, 0.0  ;;  %v199_v40 = vadd.f32 %v1468_v0, %v198_v32  ;;  %v362_v24 = vadd.f32 %v1468_v0, %v361_v35  ;;  %v200_v41 = vpop.f32.mrb[19].mxu0  ;;  %v363_v43 = vpop.f32.mrb[19].mxu1 }
 0x133   :  { %v1506_v27 = vmax.f32 %v225_v37, %v388_v38  ;;  %v226_v44 = vmax.f32 %v199_v40, 0.0  ;;  %v389_v45 = vmax.f32 %v362_v24, 0.0 }
 0x135   :  { %v1508_v47 = vmax.f32 %v226_v44, %v389_v45 }
 0x136   :  { %v203_v48 = vpop.f32.mrb[20].mxu0  ;;  %v366_v49 = vpop.f32.mrb[20].mxu1 }
 0x137   :  { %v204_v50 = vadd.f32 %v1468_v0, %v203_v48  ;;  %v367_v53 = vadd.f32 %v1468_v0, %v366_v49  ;;  %v205_v30 = vpop.f32.mrb[21].mxu0  ;;  %v368_v55 = vpop.f32.mrb[21].mxu1 }
 0x138   :  { %v206_v33 = vpop.f32.mrb[22].mxu0  ;;  %v369_v56 = vpop.f32.mrb[22].mxu1 }
 0x139   :  { %v227_v57 = vmax.f32 %v204_v50, 0.0  ;;  %v390_v58 = vmax.f32 %v367_v53, 0.0  ;;  %v207_v59 = vadd.f32 %v1468_v0, %v206_v33  ;;  %v370_v60 = vadd.f32 %v1468_v0, %v369_v56  ;;  %v208_v61 = vpop.f32.mrb[23].mxu0  ;;  %v371_v36 = vpop.f32.mrb[23].mxu1 }
 0x13b   :  { %v1514_v39 = vmax.f32 %v227_v57, %v390_v58  ;;  %v228_v62 = vmax.f32 %v207_v59, 0.0  ;;  %v391_v63 = vmax.f32 %v370_v60, 0.0 }
 0x13d   :  { %v1516_v1 = vmax.f32 %v228_v62, %v391_v63 }
 0x13e   :  { %v211_v2 = vpop.f32.mrb[24].mxu0  ;;  %v374_v4 = vpop.f32.mrb[24].mxu1 }
 0x13f   :  { %v212_v5 = vadd.f32 %v1468_v0, %v211_v2  ;;  %v375_v8 = vadd.f32 %v1468_v0, %v374_v4  ;;  %v213_v42 = vpop.f32.mrb[25].mxu0  ;;  %v376_v10 = vpop.f32.mrb[25].mxu1 }
 0x140   :  { %v214_v11 = vpop.f32.mrb[26].mxu0  ;;  %v377_v46 = vpop.f32.mrb[26].mxu1 }
 0x141   :  { %v229_v12 = vmax.f32 %v212_v5, 0.0  ;;  %v392_v6 = vmax.f32 %v375_v8, 0.0  ;;  %v215_v13 = vpop.f32.mrb[27].mxu0  ;;  %v378_v14 = vpop.f32.mrb[27].mxu1 }
 0x143   :  { %v1520_v9 = vmax.f32 %v229_v12, %v392_v6 }
 0x146   :  { %v502_v15 = vpop.f32.mrb[28].mxu0  ;;  %v678_v16 = vpop.f32.mrb[28].mxu1 }
 0x147   :  { %v503_v52 = vadd.f32 %v1468_v0, %v502_v15  ;;  %v679_v18 = vadd.f32 %v1468_v0, %v678_v16  ;;  %v504_v20 = vpop.f32.mrb[29].mxu0  ;;  %v680_v22 = vpop.f32.mrb[29].mxu1 }
 0x148   :  { %v505_v25 = vpop.f32.mrb[30].mxu0  ;;  %v681_v17 = vpop.f32.mrb[30].mxu1 }
 0x149   :  { %v556_v26 = vmax.f32 %v503_v52, 0.0  ;;  %v732_v28 = vmax.f32 %v679_v18, 0.0  ;;  %v506_v21 = vadd.f32 %v1468_v0, %v505_v25  ;;  %v682_v31 = vadd.f32 %v1468_v0, %v681_v17  ;;  %v507_v32 = vpop.f32.mrb[31].mxu0  ;;  %v683_v35 = vpop.f32.mrb[31].mxu1 }
 0x14b   :  { %v569_v37 = vmax.f32 %v1474_v29, %v556_v26  ;;  %v557_v38 = vmax.f32 %v506_v21, 0.0  ;;  %v733_v41 = vmax.f32 %v682_v31, 0.0 }
 0x14d   :  { %v745_v40 = vmax.f32 %v569_v37, %v732_v28  ;;  %v570_v24 = vmax.f32 %v1476_v34, %v557_v38 }
 0x14e   :  { %v510_v43 = vpop.f32.mrb[32].mxu0  ;;  %v686_v44 = vpop.f32.mrb[32].mxu1 }
 0x14f   :  { %758 = vst [vmem:[%s1603_s3] sm:$0xff] %v745_v40  ;;  %v746_v45 = vmax.f32 %v570_v24, %v733_v41  ;;  %v511_v48 = vadd.f32 %v1468_v0, %v510_v43  ;;  %v687_v49 = vadd.f32 %v1468_v0, %v686_v44  ;;  %v512_v50 = vpop.f32.mrb[33].mxu0  ;;  %v688_v53 = vpop.f32.mrb[33].mxu1 }
 0x150   :  { %v513_v30 = vpop.f32.mrb[34].mxu0  ;;  %v689_v29 = vpop.f32.mrb[34].mxu1 }
 0x151   :  { %759 = vst [vmem:[%s1603_s3 + $0x8] sm:$0xff] %v746_v45  ;;  %v558_v34 = vmax.f32 %v511_v48, 0.0  ;;  %v734_v55 = vmax.f32 %v687_v49, 0.0  ;;  %v514_v33 = vadd.f32 %v1468_v0, %v513_v30  ;;  %v690_v56 = vadd.f32 %v1468_v0, %v689_v29  ;;  %v515_v57 = vpop.f32.mrb[35].mxu0  ;;  %v691_v58 = vpop.f32.mrb[35].mxu1 }
 0x153   :  { %v571_v59 = vmax.f32 %v1482_v51, %v558_v34  ;;  %v559_v60 = vmax.f32 %v514_v33, 0.0  ;;  %v735_v62 = vmax.f32 %v690_v56, 0.0 }
 0x155   :  { %v747_v61 = vmax.f32 %v571_v59, %v734_v55  ;;  %v572_v36 = vmax.f32 %v1484_v54, %v559_v60 }
 0x156   :  { %v518_v63 = vpop.f32.mrb[36].mxu0  ;;  %v694_v2 = vpop.f32.mrb[36].mxu1 }
 0x157   :  { %760 = vst [vmem:[%s1603_s3 + $0x10] sm:$0xff] %v747_v61  ;;  %v748_v4 = vmax.f32 %v572_v36, %v735_v62  ;;  %v519_v5 = vadd.f32 %v1468_v0, %v518_v63  ;;  %v695_v8 = vadd.f32 %v1468_v0, %v694_v2  ;;  %v520_v42 = vpop.f32.mrb[37].mxu0  ;;  %v696_v10 = vpop.f32.mrb[37].mxu1 }
 0x158   :  { %v521_v11 = vpop.f32.mrb[38].mxu0  ;;  %v697_v51 = vpop.f32.mrb[38].mxu1 }
 0x159   :  { %761 = vst [vmem:[%s1603_s3 + $0x18] sm:$0xff] %v748_v4  ;;  %v560_v54 = vmax.f32 %v519_v5, 0.0  ;;  %v736_v46 = vmax.f32 %v695_v8, 0.0  ;;  %v522_v12 = vadd.f32 %v1468_v0, %v521_v11  ;;  %v698_v6 = vadd.f32 %v1468_v0, %v697_v51  ;;  %v523_v13 = vpop.f32.mrb[39].mxu0  ;;  %v699_v14 = vpop.f32.mrb[39].mxu1 }
 0x15b   :  { %v573_v15 = vmax.f32 %v1490_v3, %v560_v54  ;;  %v561_v16 = vmax.f32 %v522_v12, 0.0  ;;  %v737_v20 = vmax.f32 %v698_v6, 0.0 }
 0x15d   :  { %v749_v52 = vmax.f32 %v573_v15, %v736_v46  ;;  %v574_v18 = vmax.f32 %v1492_v7, %v561_v16 }
 0x15e   :  { %v526_v22 = vpop.f32.mrb[40].mxu0  ;;  %v702_v25 = vpop.f32.mrb[40].mxu1 }
 0x15f   :  { %762 = vst [vmem:[%s1603_s3 + $0x20] sm:$0xff] %v749_v52  ;;  %v750_v17 = vmax.f32 %v574_v18, %v737_v20  ;;  %v527_v26 = vadd.f32 %v1468_v0, %v526_v22  ;;  %v703_v28 = vadd.f32 %v1468_v0, %v702_v25  ;;  %v528_v21 = vpop.f32.mrb[41].mxu0  ;;  %v704_v31 = vpop.f32.mrb[41].mxu1 }
 0x160   :  { %v529_v32 = vpop.f32.mrb[42].mxu0  ;;  %v705_v3 = vpop.f32.mrb[42].mxu1 }
 0x161   :  { %763 = vst [vmem:[%s1603_s3 + $0x28] sm:$0xff] %v750_v17  ;;  %v562_v7 = vmax.f32 %v527_v26, 0.0  ;;  %v738_v35 = vmax.f32 %v703_v28, 0.0  ;;  %v530_v37 = vadd.f32 %v1468_v0, %v529_v32  ;;  %v706_v38 = vadd.f32 %v1468_v0, %v705_v3  ;;  %v531_v40 = vpop.f32.mrb[43].mxu0  ;;  %v707_v24 = vpop.f32.mrb[43].mxu1 }
 0x163   :  { %v575_v41 = vmax.f32 %v1498_v19, %v562_v7  ;;  %v563_v43 = vmax.f32 %v530_v37, 0.0  ;;  %v739_v48 = vmax.f32 %v706_v38, 0.0 }
 0x165   :  { %v751_v44 = vmax.f32 %v575_v41, %v738_v35  ;;  %v576_v45 = vmax.f32 %v1500_v23, %v563_v43 }
 0x166   :  { %v534_v49 = vpop.f32.mrb[44].mxu0  ;;  %v710_v50 = vpop.f32.mrb[44].mxu1 }
 0x167   :  { %764 = vst [vmem:[%s1603_s3 + $0x30] sm:$0xff] %v751_v44  ;;  %v752_v53 = vmax.f32 %v576_v45, %v739_v48  ;;  %v535_v30 = vadd.f32 %v1468_v0, %v534_v49  ;;  %v711_v29 = vadd.f32 %v1468_v0, %v710_v50  ;;  %v536_v34 = vpop.f32.mrb[45].mxu0  ;;  %v712_v55 = vpop.f32.mrb[45].mxu1 }
 0x168   :  { %v537_v33 = vpop.f32.mrb[46].mxu0  ;;  %v713_v19 = vpop.f32.mrb[46].mxu1 }
 0x169   :  { %765 = vst [vmem:[%s1603_s3 + $0x38] sm:$0xff] %v752_v53  ;;  %v564_v23 = vmax.f32 %v535_v30, 0.0  ;;  %v740_v56 = vmax.f32 %v711_v29, 0.0  ;;  %v538_v57 = vadd.f32 %v1468_v0, %v537_v33  ;;  %v714_v58 = vadd.f32 %v1468_v0, %v713_v19  ;;  %v539_v59 = vpop.f32.mrb[47].mxu0  ;;  %v715_v60 = vpop.f32.mrb[47].mxu1 }
 0x16b   :  { %v577_v61 = vmax.f32 %v1506_v27, %v564_v23  ;;  %v565_v36 = vmax.f32 %v538_v57, 0.0  ;;  %v741_v2 = vmax.f32 %v714_v58, 0.0 }
 0x16d   :  { %v753_v62 = vmax.f32 %v577_v61, %v740_v56  ;;  %v578_v63 = vmax.f32 %v1508_v47, %v565_v36 }
 0x16e   :  { %v542_v4 = vpop.f32.mrb[48].mxu0  ;;  %v718_v5 = vpop.f32.mrb[48].mxu1 }
 0x16f   :  { %766 = vst [vmem:[%s1603_s3 + $0x40] sm:$0xff] %v753_v62  ;;  %v754_v8 = vmax.f32 %v578_v63, %v741_v2  ;;  %v543_v42 = vadd.f32 %v1468_v0, %v542_v4  ;;  %v719_v10 = vadd.f32 %v1468_v0, %v718_v5  ;;  %v544_v11 = vpop.f32.mrb[49].mxu0  ;;  %v720_v51 = vpop.f32.mrb[49].mxu1 }
 0x170   :  { %v545_v54 = vpop.f32.mrb[50].mxu0  ;;  %v721_v27 = vpop.f32.mrb[50].mxu1 }
 0x171   :  { %767 = vst [vmem:[%s1603_s3 + $0x48] sm:$0xff] %v754_v8  ;;  %v566_v47 = vmax.f32 %v543_v42, 0.0  ;;  %v742_v46 = vmax.f32 %v719_v10, 0.0  ;;  %v546_v12 = vadd.f32 %v1468_v0, %v545_v54  ;;  %v722_v6 = vadd.f32 %v1468_v0, %v721_v27  ;;  %v547_v13 = vpop.f32.mrb[51].mxu0  ;;  %v723_v14 = vpop.f32.mrb[51].mxu1 }
 0x173   :  { %v579_v15 = vmax.f32 %v1514_v39, %v566_v47  ;;  %v567_v16 = vmax.f32 %v546_v12, 0.0  ;;  %v743_v20 = vmax.f32 %v722_v6, 0.0 }
 0x175   :  { %v755_v52 = vmax.f32 %v579_v15, %v742_v46  ;;  %v580_v18 = vmax.f32 %v1516_v1, %v567_v16 }
 0x176   :  { %v550_v22 = vpop.f32.mrb[52].mxu0  ;;  %v726_v25 = vpop.f32.mrb[52].mxu1 }
 0x177   :  { %768 = vst [vmem:[%s1603_s3 + $0x50] sm:$0xff] %v755_v52  ;;  %v756_v17 = vmax.f32 %v580_v18, %v743_v20  ;;  %v551_v26 = vadd.f32 %v1468_v0, %v550_v22  ;;  %v727_v28 = vadd.f32 %v1468_v0, %v726_v25  ;;  %v552_v21 = vpop.f32.mrb[53].mxu0  ;;  %v728_v31 = vpop.f32.mrb[53].mxu1 }
 0x178   :  { %v553_v32 = vpop.f32.mrb[54].mxu0  ;;  %v729_v39 = vpop.f32.mrb[54].mxu1 }
 0x179   :  { %769 = vst [vmem:[%s1603_s3 + $0x58] sm:$0xff] %v756_v17  ;;  %v568_v1 = vmax.f32 %v551_v26, 0.0  ;;  %v744_v3 = vmax.f32 %v727_v28, 0.0  ;;  %v554_v7 = vpop.f32.mrb[55].mxu0  ;;  %v730_v35 = vpop.f32.mrb[55].mxu1 }
 0x17b   :  { %v581_v37 = vmax.f32 %v1520_v9, %v568_v1 }
 0x17d   :  { %v757_v38 = vmax.f32 %v581_v37, %v744_v3 }
 0x17f   :  { %770 = vst [vmem:[%s1603_s3 + $0x60] sm:$0xff] %v757_v38 }

// kernel: forward.7
= control target key start
LH: loop header
LB: loop body
LE: loop exit
PB: predicated region body
PF: predicated region fallthrough
CT: control target
= control target key end

     0   :  { %v284_v0 = vmov 0   ;;  %vm103_vm0 = vcmask 719872   ;;  %vm125_vm1 = vcmask 1043456   ;;  %s556_s1 = inlined_call_operand.vmem [shape: f32[216,128], index: 1, kind: input, shape index: {}]   ;;  %s557_s0 = inlined_call_operand.vmem [shape: f32[1,104,216], index: 0, kind: input, shape index: {}]   ;;  %s558_s2 = inlined_call_operand.vmem [shape: f32[1,128], index: 2, kind: input, shape index: {}]   ;;  %s559_s3 = inlined_call_operand.vmem [shape: f32[104,128], index: 3, kind: output, shape index: {}]  }
   0x1   :  { %129 = vmatprep.subr.bf16.mxu0 %v284_v0  ;;  %v15_v1 = vld [vmem:[%s556_s1] sm:$0xff]  ;;  %v16_v2 = vld [vmem:[%s556_s1 + $0x8] sm:$0xff]  ;;  %v17_v3 = vld [vmem:[%s556_s1 + $0x10] sm:$0xff]  ;;  %255 = vmatprep.subr.bf16.mxu1 %v284_v0 }
   0x2   :  { %v42_v4 = vpack.c.bf16 %v16_v2, %v15_v1  ;;  %v18_v5 = vld [vmem:[%s556_s1 + $0x18] sm:$0xff]  ;;  %v19_v7 = vld [vmem:[%s556_s1 + $0x20] sm:$0xff]  ;;  %v20_v8 = vld [vmem:[%s556_s1 + $0x28] sm:$0xff] }
   0x3   :  { %v43_v6 = vpack.c.bf16 %v18_v5, %v17_v3  ;;  %v44_v9 = vpack.c.bf16 %v20_v8, %v19_v7  ;;  %v21_v10 = vld [vmem:[%s556_s1 + $0x30] sm:$0xff]  ;;  %v22_v11 = vld [vmem:[%s556_s1 + $0x38] sm:$0xff]  ;;  %v58_v12 = vld [vmem:[%s557_s0 + $0x8] sm:$0xff] }
   0x4   :  { %130 = vmatpush1.bf16.msra.mxu0 %v42_v4  ;;  %269 = vmatpush1.bf16.msra.mxu1 %v42_v4  ;;  %v60_v13 = vld [vmem:[%s557_s0 + $0x18] sm:$0xff]  ;;  %v74_v15 = vld [vmem:[%s557_s0 + $0x88] sm:$0xff]  ;;  %v45_v17 = vpack.c.bf16 %v22_v11, %v21_v10  ;;  %v23_v19 = vld [vmem:[%s556_s1 + $0x40] sm:$0xff] }
   0x5   :  { %131 = vmatprep.subr.bf16.mxu0 %v284_v0  ;;  %256 = vmatprep.subr.bf16.mxu1 %v284_v0  ;;  %v84_v14 = vpack.c.bf16 %v60_v13, %v58_v12  ;;  %v76_v16 = vld [vmem:[%s557_s0 + $0x98] sm:$0xff]  ;;  %v24_v20 = vld [vmem:[%s556_s1 + $0x48] sm:$0xff]  ;;  %v25_v22 = vld [vmem:[%s556_s1 + $0x50] sm:$0xff] }
   0x6   :  { %v92_v18 = vpack.c.bf16 %v76_v16, %v74_v15  ;;  %v46_v21 = vpack.c.bf16 %v24_v20, %v23_v19  ;;  %v26_v23 = vld [vmem:[%s556_s1 + $0x58] sm:$0xff]  ;;  %v27_v25 = vld [vmem:[%s556_s1 + $0x60] sm:$0xff]  ;;  %v28_v26 = vld [vmem:[%s556_s1 + $0x68] sm:$0xff] }
   0x7   :  { %248 = vmatprep.mubr.msk.bf16.mxu0 %vm103_vm0, %v84_v14  ;;  %v47_v24 = vpack.c.bf16 %v26_v23, %v25_v22  ;;  %v48_v27 = vpack.c.bf16 %v28_v26, %v27_v25  ;;  %v29_v28 = vld [vmem:[%s556_s1 + $0x70] sm:$0xff]  ;;  %v30_v29 = vld [vmem:[%s556_s1 + $0x78] sm:$0xff]  ;;  %v31_v31 = vld [vmem:[%s556_s1 + $0x80] sm:$0xff] }
   0x8   :  { %132 = vmatpush1.bf16.msra.mxu0 %v43_v6  ;;  %270 = vmatpush1.bf16.msra.mxu1 %v43_v6  ;;  %v49_v30 = vpack.c.bf16 %v30_v29, %v29_v28  ;;  %v32_v32 = vld [vmem:[%s556_s1 + $0x88] sm:$0xff]  ;;  %v33_v34 = vld [vmem:[%s556_s1 + $0x90] sm:$0xff]  ;;  %v34_v35 = vld [vmem:[%s556_s1 + $0x98] sm:$0xff] }
   0x9   :  { %133 = vmatprep.subr.bf16.mxu0 %v284_v0  ;;  %257 = vmatprep.subr.bf16.mxu1 %v284_v0  ;;  %v50_v33 = vpack.c.bf16 %v32_v32, %v31_v31  ;;  %v51_v36 = vpack.c.bf16 %v34_v35, %v33_v34  ;;  %v35_v37 = vld [vmem:[%s556_s1 + $0xa0] sm:$0xff]  ;;  %v36_v38 = vld [vmem:[%s556_s1 + $0xa8] sm:$0xff]  ;;  %v37_v40 = vld [vmem:[%s556_s1 + $0xb0] sm:$0xff] }
   0xa   :  { %252 = vmatprep.mubr.msk.bf16.mxu1 %vm103_vm0, %v92_v18  ;;  %v52_v39 = vpack.c.bf16 %v36_v38, %v35_v37  ;;  %v38_v41 = vld [vmem:[%s556_s1 + $0xb8] sm:$0xff]  ;;  %v39_v43 = vld [vmem:[%s556_s1 + $0xc0] sm:$0xff]  ;;  %v40_v44 = vld [vmem:[%s556_s1 + $0xc8] sm:$0xff] }
   0xb   :  { %v53_v42 = vpack.c.bf16 %v38_v41, %v37_v40  ;;  %v41_v45 = vld [vmem:[%s556_s1 + $0xd0] sm:$0xff]  ;;  %v54_v46 = vpack.c.bf16 %v40_v44, %v39_v43  ;;  %v57_v48 = vld [vmem:[%s557_s0] sm:$0xff]  ;;  %v62_v50 = vld [vmem:[%s557_s0 + $0x28] sm:$0xff] }
   0xc   :  { %134 = vmatpush1.bf16.msra.mxu0 %v44_v9  ;;  %271 = vmatpush1.bf16.msra.mxu1 %v44_v9  ;;  %v55_v47 = vpack.c.bf16 %v41_v45, %v41_v45  ;;  %v59_v49 = vld [vmem:[%s557_s0 + $0x10] sm:$0xff]  ;;  %v73_v51 = vld [vmem:[%s557_s0 + $0x80] sm:$0xff]  ;;  %v64_v54 = vld [vmem:[%s557_s0 + $0x38] sm:$0xff] }
   0xd   :  { %135 = vmatprep.subr.bf16.mxu0 %v284_v0  ;;  %258 = vmatprep.subr.bf16.mxu1 %v284_v0  ;;  %v75_v52 = vld [vmem:[%s557_s0 + $0x90] sm:$0xff]  ;;  %v78_v55 = vld [vmem:[%s557_s0 + $0xa8] sm:$0xff]  ;;  %v80_v56 = vld [vmem:[%s557_s0 + $0xb8] sm:$0xff]  ;;  %v83_v57 = vpack.c.bf16 %v59_v49, %v57_v48  ;;  %v86_v59 = vpack.c.bf16 %v64_v54, %v62_v50 }
   0xe   :  { %v127_v53 = vsel %vm125_vm1, %v55_v47, 0  ;;  %v91_v58 = vpack.c.bf16 %v75_v52, %v73_v51  ;;  %v94_v60 = vpack.c.bf16 %v80_v56, %v78_v55  ;;  %v61_v61 = vld [vmem:[%s557_s0 + $0x20] sm:$0xff]  ;;  %v63_v62 = vld [vmem:[%s557_s0 + $0x30] sm:$0xff]  ;;  %v66_v1 = vld [vmem:[%s557_s0 + $0x48] sm:$0xff] }
   0xf   :  { %v77_v63 = vld [vmem:[%s557_s0 + $0xa0] sm:$0xff]  ;;  %v68_v2 = vld [vmem:[%s557_s0 + $0x58] sm:$0xff]  ;;  %v82_v3 = vld [vmem:[%s557_s0 + $0xc8] sm:$0xff]  ;;  %v85_v4 = vpack.c.bf16 %v63_v62, %v61_v61 }
  0x10   :  { %136 = vmatpush1.bf16.msra.mxu0 %v45_v17  ;;  %272 = vmatpush1.bf16.msra.mxu1 %v45_v17  ;;  %v88_v6 = vpack.c.bf16 %v68_v2, %v66_v1  ;;  %v96_v7 = vpack.c.bf16 %v82_v3, %v82_v3  ;;  %v65_v8 = vld [vmem:[%s557_s0 + $0x40] sm:$0xff]  ;;  %v67_v9 = vld [vmem:[%s557_s0 + $0x50] sm:$0xff]  ;;  %v70_v11 = vld [vmem:[%s557_s0 + $0x68] sm:$0xff] }
  0x11   :  { %137 = vmatprep.subr.bf16.mxu0 %v284_v0  ;;  %259 = vmatprep.subr.bf16.mxu1 %v284_v0  ;;  %v81_v10 = vld [vmem:[%s557_s0 + $0xc0] sm:$0xff]  ;;  %v72_v12 = vld [vmem:[%s557_s0 + $0x78] sm:$0xff]  ;;  %v87_v13 = vpack.c.bf16 %v67_v9, %v65_v8  ;;  %v71_v17 = vld [vmem:[%s557_s0 + $0x70] sm:$0xff] }
  0x12   :  { %v95_v14 = vpack.c.bf16 %v81_v10, %v81_v10  ;;  %v90_v15 = vpack.c.bf16 %v72_v12, %v70_v11  ;;  %v69_v16 = vld [vmem:[%s557_s0 + $0x60] sm:$0xff] }
  0x13   :  { %v89_v18 = vpack.c.bf16 %v71_v17, %v69_v16  ;;  %v502_v19 = vld [vmem:[%s558_s2] ss:$0 sm:$0xff] }
  0x14   :  { %138 = vmatpush1.bf16.msra.mxu0 %v46_v21  ;;  %273 = vmatpush1.bf16.msra.mxu1 %v46_v21 }
  0x15   :  { %139 = vmatprep.subr.bf16.mxu0 %v284_v0  ;;  %260 = vmatprep.subr.bf16.mxu1 %v284_v0 }
  0x18   :  { %140 = vmatpush1.bf16.msra.mxu0 %v47_v24  ;;  %274 = vmatpush1.bf16.msra.mxu1 %v47_v24 }
  0x19   :  { %141 = vmatprep.subr.bf16.mxu0 %v284_v0  ;;  %261 = vmatprep.subr.bf16.mxu1 %v284_v0 }
  0x1c   :  { %142 = vmatpush1.bf16.msra.mxu0 %v48_v27  ;;  %275 = vmatpush1.bf16.msra.mxu1 %v48_v27 }
  0x1d   :  { %143 = vmatprep.subr.bf16.mxu0 %v284_v0  ;;  %262 = vmatprep.subr.bf16.mxu1 %v284_v0 }
  0x20   :  { %144 = vmatpush1.bf16.msra.mxu0 %v49_v30  ;;  %276 = vmatpush1.bf16.msra.mxu1 %v49_v30 }
  0x21   :  { %145 = vmatprep.subr.bf16.mxu0 %v284_v0  ;;  %263 = vmatprep.subr.bf16.mxu1 %v284_v0 }
  0x24   :  { %146 = vmatpush1.bf16.msra.mxu0 %v50_v33  ;;  %277 = vmatpush1.bf16.msra.mxu1 %v50_v33 }
  0x25   :  { %147 = vmatprep.subr.bf16.mxu0 %v284_v0  ;;  %264 = vmatprep.subr.bf16.mxu1 %v284_v0 }
  0x28   :  { %148 = vmatpush1.bf16.msra.mxu0 %v51_v36  ;;  %278 = vmatpush1.bf16.msra.mxu1 %v51_v36 }
  0x29   :  { %149 = vmatprep.subr.bf16.mxu0 %v284_v0  ;;  %265 = vmatprep.subr.bf16.mxu1 %v284_v0 }
  0x2c   :  { %150 = vmatpush1.bf16.msra.mxu0 %v52_v39  ;;  %279 = vmatpush1.bf16.msra.mxu1 %v52_v39 }
  0x2d   :  { %151 = vmatprep.subr.bf16.mxu0 %v284_v0  ;;  %266 = vmatprep.subr.bf16.mxu1 %v284_v0 }
  0x30   :  { %152 = vmatpush1.bf16.msra.mxu0 %v53_v42  ;;  %280 = vmatpush1.bf16.msra.mxu1 %v53_v42 }
  0x31   :  { %153 = vmatprep.subr.bf16.mxu0 %v284_v0  ;;  %267 = vmatprep.subr.bf16.mxu1 %v284_v0 }
  0x34   :  { %154 = vmatpush1.bf16.msra.mxu0 %v54_v46  ;;  %281 = vmatpush1.bf16.msra.mxu1 %v54_v46 }
  0x35   :  { %155 = vmatprep.subr.bf16.mxu0 %v284_v0  ;;  %268 = vmatprep.subr.bf16.mxu1 %v284_v0  ;;  %v79_v0 = vld [vmem:[%s557_s0 + $0xb0] sm:$0xff] }
  0x36   :  { %v93_v5 = vpack.c.bf16 %v79_v0, %v77_v63 }
  0x38   :  { %156 = vmatpush1.bf16.msra.mxu0 %v127_v53  ;;  %282 = vmatpush1.bf16.msra.mxu1 %v127_v53 }
  0x3b   :  { %162 = vmatmul.mubr.bf16.vlgmr.msra.gmra.mrb[0].mxu0 %v83_v57  ;;  %194 = vmatmul.mubr.bf16.vlgmr.msra.gmra.mrb[0].mxu1 %v91_v58 }
  0x3c   :  { %249 = vmatprep.mubr.msk.bf16.mxu0 %vm103_vm0, %v86_v59  ;;  %253 = vmatprep.mubr.msk.bf16.mxu1 %vm103_vm0, %v94_v60 }
  0x43   :  { %170 = vmatmul.mubr.bf16.gmra.mrb[4].mxu0 %v85_v4  ;;  %202 = vmatmul.mubr.bf16.gmra.mrb[4].mxu1 %v93_v5 }
  0x44   :  { %250 = vmatprep.mubr.msk.bf16.mxu0 %vm103_vm0, %v88_v6  ;;  %254 = vmatprep.mubr.msk.bf16.mxu1 %vm103_vm0, %v96_v7 }
  0x4b   :  { %178 = vmatmul.mubr.bf16.gmra.mrb[8].mxu0 %v87_v13  ;;  %210 = vmatmul.mubr.bf16.gmra.mrb[8].mxu1 %v95_v14 }
  0x4c   :  { %251 = vmatprep.mubr.msk.bf16.mxu0 %vm103_vm0, %v90_v15 }
  0x53   :  { %186 = vmatmul.mubr.bf16.gmra.mrb[12].mxu0 %v89_v18 }
 0x10e   :  { %v163_v20 = vpop.f32.mrb[0].mxu0  ;;  %v195_v21 = vpop.f32.mrb[0].mxu1 }
 0x10f   :  { %v164_v22 = vadd.f32 %v502_v19, %v163_v20  ;;  %v165_v23 = vpop.f32.mrb[1].mxu0  ;;  %v196_v24 = vadd.f32 %v502_v19, %v195_v21  ;;  %v197_v25 = vpop.f32.mrb[1].mxu1 }
 0x110   :  { %v166_v26 = vpop.f32.mrb[2].mxu0  ;;  %v198_v27 = vpop.f32.mrb[2].mxu1 }
 0x111   :  { %v217_v28 = vmax.f32 %v164_v22, 0.0  ;;  %v167_v29 = vadd.f32 %v502_v19, %v166_v26  ;;  %v168_v30 = vpop.f32.mrb[3].mxu0  ;;  %v225_v31 = vmax.f32 %v196_v24, 0.0  ;;  %v199_v32 = vadd.f32 %v502_v19, %v198_v27  ;;  %v200_v33 = vpop.f32.mrb[3].mxu1 }
 0x113   :  { %230 = vst [vmem:[%s559_s3] sm:$0xff] %v217_v28  ;;  %v218_v34 = vmax.f32 %v167_v29, 0.0  ;;  %238 = vst [vmem:[%s559_s3 + $0x40] sm:$0xff] %v225_v31  ;;  %v226_v35 = vmax.f32 %v199_v32, 0.0 }
 0x115   :  { %231 = vst [vmem:[%s559_s3 + $0x8] sm:$0xff] %v218_v34  ;;  %239 = vst [vmem:[%s559_s3 + $0x48] sm:$0xff] %v226_v35 }
 0x116   :  { %v171_v36 = vpop.f32.mrb[4].mxu0  ;;  %v203_v37 = vpop.f32.mrb[4].mxu1 }
 0x117   :  { %v172_v38 = vadd.f32 %v502_v19, %v171_v36  ;;  %v173_v39 = vpop.f32.mrb[5].mxu0  ;;  %v204_v40 = vadd.f32 %v502_v19, %v203_v37  ;;  %v205_v41 = vpop.f32.mrb[5].mxu1 }
 0x118   :  { %v174_v42 = vpop.f32.mrb[6].mxu0  ;;  %v206_v43 = vpop.f32.mrb[6].mxu1 }
 0x119   :  { %v219_v44 = vmax.f32 %v172_v38, 0.0  ;;  %v175_v45 = vadd.f32 %v502_v19, %v174_v42  ;;  %v176_v46 = vpop.f32.mrb[7].mxu0  ;;  %v227_v47 = vmax.f32 %v204_v40, 0.0  ;;  %v207_v48 = vadd.f32 %v502_v19, %v206_v43  ;;  %v208_v49 = vpop.f32.mrb[7].mxu1 }
 0x11b   :  { %232 = vst [vmem:[%s559_s3 + $0x10] sm:$0xff] %v219_v44  ;;  %v220_v50 = vmax.f32 %v175_v45, 0.0  ;;  %240 = vst [vmem:[%s559_s3 + $0x50] sm:$0xff] %v227_v47  ;;  %v228_v51 = vmax.f32 %v207_v48, 0.0 }
 0x11d   :  { %233 = vst [vmem:[%s559_s3 + $0x18] sm:$0xff] %v220_v50  ;;  %241 = vst [vmem:[%s559_s3 + $0x58] sm:$0xff] %v228_v51 }
 0x11e   :  { %v179_v52 = vpop.f32.mrb[8].mxu0  ;;  %v211_v53 = vpop.f32.mrb[8].mxu1 }
 0x11f   :  { %v180_v54 = vadd.f32 %v502_v19, %v179_v52  ;;  %v181_v55 = vpop.f32.mrb[9].mxu0  ;;  %v212_v56 = vadd.f32 %v502_v19, %v211_v53  ;;  %v213_v57 = vpop.f32.mrb[9].mxu1 }
 0x120   :  { %v182_v58 = vpop.f32.mrb[10].mxu0  ;;  %v214_v59 = vpop.f32.mrb[10].mxu1 }
 0x121   :  { %v221_v60 = vmax.f32 %v180_v54, 0.0  ;;  %v183_v61 = vadd.f32 %v502_v19, %v182_v58  ;;  %v184_v62 = vpop.f32.mrb[11].mxu0  ;;  %v229_v63 = vmax.f32 %v212_v56, 0.0  ;;  %v215_v0 = vpop.f32.mrb[11].mxu1 }
 0x123   :  { %234 = vst [vmem:[%s559_s3 + $0x20] sm:$0xff] %v221_v60  ;;  %v222_v1 = vmax.f32 %v183_v61, 0.0  ;;  %242 = vst [vmem:[%s559_s3 + $0x60] sm:$0xff] %v229_v63 }
 0x125   :  { %235 = vst [vmem:[%s559_s3 + $0x28] sm:$0xff] %v222_v1 }
 0x126   :  { %v187_v2 = vpop.f32.mrb[12].mxu0 }
 0x127   :  { %v188_v3 = vadd.f32 %v502_v19, %v187_v2  ;;  %v189_v4 = vpop.f32.mrb[13].mxu0 }
 0x128   :  { %v190_v5 = vpop.f32.mrb[14].mxu0 }
 0x129   :  { %v223_v6 = vmax.f32 %v188_v3, 0.0  ;;  %v191_v7 = vadd.f32 %v502_v19, %v190_v5  ;;  %v192_v8 = vpop.f32.mrb[15].mxu0 }
 0x12b   :  { %236 = vst [vmem:[%s559_s3 + $0x30] sm:$0xff] %v223_v6  ;;  %v224_v9 = vmax.f32 %v191_v7, 0.0 }
 0x12d   :  { %237 = vst [vmem:[%s559_s3 + $0x38] sm:$0xff] %v224_v9 }

// kernel: forward.9
= control target key start
LH: loop header
LB: loop body
LE: loop exit
PB: predicated region body
PF: predicated region fallthrough
CT: control target
= control target key end

     0   :  { %vm126_vm0 = vcmask 523264   ;;  %s801_s0 = inlined_call_operand.vmem [shape: f32[2,192], index: 0, kind: input, shape index: {}]   ;;  %s802_s1 = inlined_call_operand.vmem [shape: f32[192,256], index: 1, kind: input, shape index: {}]   ;;  %s803_s2 = inlined_call_operand.vmem [shape: f32[1,256], index: 2, kind: input, shape index: {}]   ;;  %s804_s3 = inlined_call_operand.vmem [shape: f32[256,128], index: 3, kind: input, shape index: {}]   ;;  %s805_s4 = inlined_call_operand.vmem [shape: f32[1,128], index: 4, kind: input, shape index: {}]   ;;  %s806_s5 = inlined_call_operand.vmem [shape: f32[128,128], index: 5, kind: input, shape index: {}]   ;;  %s807_s6 = inlined_call_operand.vmem [shape: f32[1,128], index: 6, kind: input, shape index: {}]   ;;  %s808_s7 = inlined_call_operand.hbm [shape: f32[2,128], index: 7, kind: output, shape index: {}]  }
   0x1   :  { %v43_v0 = vld [vmem:[%s802_s1 + $0x8] sm:$0xff]  ;;  %v45_v1 = vld [vmem:[%s802_s1 + $0x18] sm:$0xff]  ;;  %v42_v2 = vld [vmem:[%s802_s1] sm:$0xff] }
   0x2   :  { %v91_v3 = vpack.c.bf16 %v45_v1, %v43_v0  ;;  %v44_v4 = vld [vmem:[%s802_s1 + $0x10] sm:$0xff]  ;;  %v47_v5 = vld [vmem:[%s802_s1 + $0x28] sm:$0xff]  ;;  %v49_v6 = vld [vmem:[%s802_s1 + $0x38] sm:$0xff] }
   0x3   :  { %v90_v7 = vpack.c.bf16 %v44_v4, %v42_v2  ;;  %v93_v8 = vpack.c.bf16 %v49_v6, %v47_v5  ;;  %v46_v9 = vld [vmem:[%s802_s1 + $0x20] sm:$0xff]  ;;  %v48_v10 = vld [vmem:[%s802_s1 + $0x30] sm:$0xff]  ;;  %v51_v11 = vld [vmem:[%s802_s1 + $0x48] sm:$0xff] }
   0x4   :  { %130 = vmatprep.subr.bf16.mxu0 %v91_v3  ;;  %v53_v12 = vld [vmem:[%s802_s1 + $0x58] sm:$0xff]  ;;  %v92_v13 = vpack.c.bf16 %v48_v10, %v46_v9  ;;  %v50_v15 = vld [vmem:[%s802_s1 + $0x40] sm:$0xff]  ;;  %v52_v16 = vld [vmem:[%s802_s1 + $0x50] sm:$0xff] }
   0x5   :  { %131 = vmatpush1.bf16.msra.mxu0 %v90_v7  ;;  %v95_v14 = vpack.c.bf16 %v53_v12, %v51_v11  ;;  %v55_v17 = vld [vmem:[%s802_s1 + $0x68] sm:$0xff]  ;;  %v57_v18 = vld [vmem:[%s802_s1 + $0x78] sm:$0xff]  ;;  %v94_v19 = vpack.c.bf16 %v52_v16, %v50_v15  ;;  %v54_v21 = vld [vmem:[%s802_s1 + $0x60] sm:$0xff] }
   0x6   :  { %132 = vmatprep.subr.bf16.mxu0 %v93_v8  ;;  %v97_v20 = vpack.c.bf16 %v57_v18, %v55_v17  ;;  %v56_v22 = vld [vmem:[%s802_s1 + $0x70] sm:$0xff]  ;;  %v59_v23 = vld [vmem:[%s802_s1 + $0x88] sm:$0xff]  ;;  %v61_v24 = vld [vmem:[%s802_s1 + $0x98] sm:$0xff] }
   0x7   :  { %v96_v25 = vpack.c.bf16 %v56_v22, %v54_v21  ;;  %v99_v26 = vpack.c.bf16 %v61_v24, %v59_v23  ;;  %v58_v27 = vld [vmem:[%s802_s1 + $0x80] sm:$0xff]  ;;  %v60_v28 = vld [vmem:[%s802_s1 + $0x90] sm:$0xff]  ;;  %v63_v29 = vld [vmem:[%s802_s1 + $0xa8] sm:$0xff] }
   0x8   :  { %v65_v30 = vld [vmem:[%s802_s1 + $0xb8] sm:$0xff]  ;;  %v62_v31 = vld [vmem:[%s802_s1 + $0xa0] sm:$0xff]  ;;  %v64_v32 = vld [vmem:[%s802_s1 + $0xb0] sm:$0xff]  ;;  %v98_v33 = vpack.c.bf16 %v60_v28, %v58_v27 }
   0x9   :  { %133 = vmatpush1.bf16.msra.mxu0 %v92_v13  ;;  %v67_v34 = vld [vmem:[%s802_s1 + $0xc8] sm:$0xff]  ;;  %v69_v35 = vld [vmem:[%s802_s1 + $0xd8] sm:$0xff]  ;;  %v563_v36 = vld.sshfl [vmem:[%s801_s0] sm:$0x33 pattern:$0x76325410]  ;;  %v101_v39 = vpack.c.bf16 %v65_v30, %v63_v29  ;;  %v100_v53 = vpack.c.bf16 %v64_v32, %v62_v31 }
   0xa   :  { %134 = vmatprep.subr.bf16.mxu0 %v95_v14  ;;  %v191_v37 = vld [vmem:[%s804_s3 + $0x80] sm:$0xff]  ;;  %v192_v38 = vld [vmem:[%s804_s3 + $0x88] sm:$0xff]  ;;  %v37_v40 = vcombine.high %v563_v36, %v563_v36  ;;  %v193_v44 = vld [vmem:[%s804_s3 + $0x90] sm:$0xff]  ;;  %v103_v57 = vpack.c.bf16 %v69_v35, %v67_v34 }
   0xb   :  { %v215_v41 = vpack.c.bf16 %v192_v38, %v191_v37  ;;  %v175_v42 = vld [vmem:[%s804_s3] sm:$0xff]  ;;  %v176_v43 = vld [vmem:[%s804_s3 + $0x8] sm:$0xff]  ;;  %v194_v46 = vld [vmem:[%s804_s3 + $0x98] sm:$0xff] }
   0xc   :  { %v207_v45 = vpack.c.bf16 %v176_v43, %v175_v42  ;;  %v177_v47 = vld [vmem:[%s804_s3 + $0x10] sm:$0xff]  ;;  %v178_v48 = vld [vmem:[%s804_s3 + $0x18] sm:$0xff]  ;;  %v41_v49 = vpack.c.bf16 %v37_v40, %v37_v40  ;;  %v216_v50 = vpack.c.bf16 %v194_v46, %v193_v44  ;;  %v195_v51 = vld [vmem:[%s804_s3 + $0xa0] sm:$0xff] }
   0xd   :  { %135 = vmatpush1.bf16.msra.mxu0 %v94_v19  ;;  %361 = vmatprep.subr.bf16.mxu1 %v215_v41  ;;  %v196_v52 = vld [vmem:[%s804_s3 + $0xa8] sm:$0xff]  ;;  %v66_v54 = vld [vmem:[%s802_s1 + $0xc0] sm:$0xff]  ;;  %v68_v55 = vld [vmem:[%s802_s1 + $0xd0] sm:$0xff]  ;;  %v208_v56 = vpack.c.bf16 %v178_v48, %v177_v47 }
   0xe   :  { %136 = vmatprep.subr.bf16.mxu0 %v97_v20  ;;  %362 = vmatpush3.bf16.msra.mxu1 %v207_v45  ;;  %v71_v58 = vld [vmem:[%s802_s1 + $0xe8] sm:$0xff]  ;;  %v217_v59 = vpack.c.bf16 %v196_v52, %v195_v51  ;;  %v179_v60 = vld [vmem:[%s804_s3 + $0x20] sm:$0xff]  ;;  %v73_v62 = vld [vmem:[%s802_s1 + $0xf8] sm:$0xff]  ;;  %v102_v1 = vpack.c.bf16 %v68_v55, %v66_v54 }
   0xf   :  { %358 = vmatprep.mubr.msk.bf16.mxu0 %vm126_vm0, %v41_v49  ;;  %v180_v61 = vld [vmem:[%s804_s3 + $0x28] sm:$0xff]  ;;  %363 = vmatprep.subr.bf16.mxu1 %v216_v50  ;;  %v197_v63 = vld [vmem:[%s804_s3 + $0xb0] sm:$0xff]  ;;  %v198_v0 = vld [vmem:[%s804_s3 + $0xb8] sm:$0xff] }
  0x10   :  { %v70_v2 = vld [vmem:[%s802_s1 + $0xe0] sm:$0xff]  ;;  %v72_v3 = vld [vmem:[%s802_s1 + $0xf0] sm:$0xff]  ;;  %v209_v4 = vpack.c.bf16 %v180_v61, %v179_v60 }
  0x11   :  { %137 = vmatpush1.bf16.msra.mxu0 %v96_v25 }
  0x12   :  { %138 = vmatprep.subr.bf16.mxu0 %v99_v26  ;;  %364 = vmatpush3.bf16.msra.mxu1 %v208_v56 }
  0x15   :  { %139 = vmatpush1.bf16.msra.mxu0 %v98_v33 }
  0x16   :  { %140 = vmatprep.subr.bf16.mxu0 %v101_v39 }
  0x19   :  { %141 = vmatpush1.bf16.msra.mxu0 %v100_v53 }
  0x1a   :  { %12 = vsyncpa [#allocation3], 0  ;;  %142 = vmatprep.subr.bf16.mxu0 %v103_v57  ;;  %v105_v5 = vpack.c.bf16 %v73_v62, %v71_v58  ;;  %v75_v6 = vld [vmem:[%s802_s1 + $0x108] sm:$0xff]  ;;  %365 = vmatprep.subr.bf16.mxu1 %v217_v59  ;;  %v218_v7 = vpack.c.bf16 %v198_v0, %v197_v63  ;;  %v181_v8 = vld [vmem:[%s804_s3 + $0x30] sm:$0xff]  ;;  %v104_v13 = vpack.c.bf16 %v72_v3, %v70_v2  ;;  %v439_v60 = vmov 0.0  }
  0x1b   :  { %v182_v9 = vld [vmem:[%s804_s3 + $0x38] sm:$0xff]  ;;  %v199_v11 = vld [vmem:[%s804_s3 + $0xc0] sm:$0xff]  ;;  %v200_v12 = vld [vmem:[%s804_s3 + $0xc8] sm:$0xff]  ;;  %366 = vmatpush3.bf16.msra.mxu1 %v209_v4  ;;  %v40_v48 = vpack.c.bf16 %v563_v36, %v563_v36  ;;  %v116_v61 = vlaneseq  ;;  %vm440_vm1 = vmmov 0  }
  0x1c   :  { %v77_v10 = vld [vmem:[%s802_s1 + $0x118] sm:$0xff]  ;;  %v74_v14 = vld [vmem:[%s802_s1 + $0x100] sm:$0xff]  ;;  %v76_v15 = vld [vmem:[%s802_s1 + $0x110] sm:$0xff]  ;;  %v210_v16 = vpack.c.bf16 %v182_v9, %v181_v8  ;;  %367 = vmatprep.subr.bf16.mxu1 %v218_v7  ;;  %v219_v19 = vpack.c.bf16 %v200_v12, %v199_v11 }
  0x1d   :  { %143 = vmatpush1.bf16.msra.mxu0 %v102_v1  ;;  %v107_v17 = vpack.c.bf16 %v77_v10, %v75_v6  ;;  %v79_v18 = vld [vmem:[%s802_s1 + $0x128] sm:$0xff]  ;;  %v183_v20 = vld [vmem:[%s804_s3 + $0x40] sm:$0xff]  ;;  %v81_v22 = vld [vmem:[%s802_s1 + $0x138] sm:$0xff]  ;;  %v106_v25 = vpack.c.bf16 %v76_v15, %v74_v14  ;;  %v117_v62 = vshrl.u32 %v116_v61, 7 }
  0x1e   :  { %144 = vmatprep.subr.bf16.mxu0 %v105_v5  ;;  %v184_v21 = vld [vmem:[%s804_s3 + $0x48] sm:$0xff]  ;;  %v201_v23 = vld [vmem:[%s804_s3 + $0xd0] sm:$0xff]  ;;  %v202_v24 = vld [vmem:[%s804_s3 + $0xd8] sm:$0xff]  ;;  %v109_v28 = vpack.c.bf16 %v81_v22, %v79_v18 }
  0x1f   :  { %v78_v26 = vld [vmem:[%s802_s1 + $0x120] sm:$0xff]  ;;  %368 = vmatpush3.bf16.msra.mxu1 %v210_v16  ;;  %v211_v27 = vpack.c.bf16 %v184_v21, %v183_v20  ;;  %v80_v29 = vld [vmem:[%s802_s1 + $0x130] sm:$0xff]  ;;  %v220_v30 = vpack.c.bf16 %v202_v24, %v201_v23  ;;  %v186_v32 = vld [vmem:[%s804_s3 + $0x58] sm:$0xff]  ;;  %v118_v63 = vsub.s32 0, %v117_v62  ;;  %v122_v1 = vsub.s32 1, %v117_v62 }
  0x20   :  { %369 = vmatprep.subr.bf16.mxu1 %v219_v19  ;;  %v185_v31 = vld [vmem:[%s804_s3 + $0x50] sm:$0xff]  ;;  %v83_v33 = vld [vmem:[%s802_s1 + $0x148] sm:$0xff]  ;;  %v85_v34 = vld [vmem:[%s802_s1 + $0x158] sm:$0xff]  ;;  %v108_v35 = vpack.c.bf16 %v80_v29, %v78_v26 }
  0x21   :  { %145 = vmatpush1.bf16.msra.mxu0 %v104_v13  ;;  %v212_v37 = vpack.c.bf16 %v186_v32, %v185_v31  ;;  %v111_v38 = vpack.c.bf16 %v85_v34, %v83_v33  ;;  %v82_v39 = vld [vmem:[%s802_s1 + $0x140] sm:$0xff]  ;;  %v84_v40 = vld [vmem:[%s802_s1 + $0x150] sm:$0xff]  ;;  %v87_v41 = vld [vmem:[%s802_s1 + $0x168] sm:$0xff] }
  0x22   :  { %146 = vmatprep.subr.bf16.mxu0 %v107_v17  ;;  %v89_v42 = vld [vmem:[%s802_s1 + $0x178] sm:$0xff]  ;;  %v110_v43 = vpack.c.bf16 %v84_v40, %v82_v39  ;;  %v86_v45 = vld [vmem:[%s802_s1 + $0x160] sm:$0xff]  ;;  %v88_v46 = vld [vmem:[%s802_s1 + $0x170] sm:$0xff] }
  0x23   :  { %370 = vmatpush3.bf16.msra.mxu1 %v211_v27  ;;  %v113_v44 = vpack.c.bf16 %v89_v42, %v87_v41  ;;  %v112_v47 = vpack.c.bf16 %v88_v46, %v86_v45  ;;  %v203_v49 = vld [vmem:[%s804_s3 + $0xe0] sm:$0xff]  ;;  %v204_v50 = vld [vmem:[%s804_s3 + $0xe8] sm:$0xff]  ;;  %v205_v54 = vld [vmem:[%s804_s3 + $0xf0] sm:$0xff] }
  0x24   :  { %371 = vmatprep.subr.bf16.mxu1 %v220_v30  ;;  %v221_v51 = vpack.c.bf16 %v204_v50, %v203_v49  ;;  %v187_v52 = vld [vmem:[%s804_s3 + $0x60] sm:$0xff]  ;;  %v188_v53 = vld [vmem:[%s804_s3 + $0x68] sm:$0xff]  ;;  %v206_v55 = vld [vmem:[%s804_s3 + $0xf8] sm:$0xff] }
  0x25   :  { %147 = vmatpush1.bf16.msra.mxu0 %v106_v25  ;;  %v213_v36 = vpack.c.bf16 %v188_v53, %v187_v52  ;;  %v222_v56 = vpack.c.bf16 %v206_v55, %v205_v54  ;;  %v189_v57 = vld [vmem:[%s804_s3 + $0x70] sm:$0xff]  ;;  %v190_v58 = vld [vmem:[%s804_s3 + $0x78] sm:$0xff]  ;;  %v114_v0 = vld [vmem:[%s803_s2] sm:$0x3] }
  0x26   :  { %148 = vmatprep.subr.bf16.mxu0 %v109_v28  ;;  %v214_v59 = vpack.c.bf16 %v190_v58, %v189_v57  ;;  %v119_v2 = vrot.slane %v114_v0, %v118_v63  ;;  %v123_v3 = vrot.slane %v114_v0, %v122_v1  ;;  %v271_v11 = vld [vmem:[%s806_s5] sm:$0xff]  ;;  %v272_v12 = vld [vmem:[%s806_s5 + $0x8] sm:$0xff]  ;;  %v273_v17 = vld [vmem:[%s806_s5 + $0x10] sm:$0xff] }
  0x27   :  { %372 = vmatpush3.bf16.msra.mxu1 %v212_v37  ;;  %v287_v15 = vpack.c.bf16 %v272_v12, %v271_v11  ;;  %v274_v18 = vld [vmem:[%s806_s5 + $0x18] sm:$0xff]  ;;  %v275_v20 = vld [vmem:[%s806_s5 + $0x20] sm:$0xff]  ;;  %v276_v21 = vld [vmem:[%s806_s5 + $0x28] sm:$0xff] }
  0x28   :  { %373 = vmatprep.subr.bf16.mxu1 %v221_v51  ;;  %v288_v19 = vpack.c.bf16 %v274_v18, %v273_v17  ;;  %v289_v22 = vpack.c.bf16 %v276_v21, %v275_v20  ;;  %v277_v23 = vld [vmem:[%s806_s5 + $0x30] sm:$0xff]  ;;  %v278_v24 = vld [vmem:[%s806_s5 + $0x38] sm:$0xff]  ;;  %v279_v26 = vld [vmem:[%s806_s5 + $0x40] sm:$0xff] }
  0x29   :  { %149 = vmatpush1.bf16.msra.mxu0 %v108_v35  ;;  %v290_v25 = vpack.c.bf16 %v278_v24, %v277_v23  ;;  %v280_v27 = vld [vmem:[%s806_s5 + $0x48] sm:$0xff]  ;;  %v281_v29 = vld [vmem:[%s806_s5 + $0x50] sm:$0xff]  ;;  %v282_v30 = vld [vmem:[%s806_s5 + $0x58] sm:$0xff] }
  0x2a   :  { %150 = vmatprep.subr.bf16.mxu0 %v111_v38  ;;  %v291_v28 = vpack.c.bf16 %v280_v27, %v279_v26  ;;  %v292_v31 = vpack.c.bf16 %v282_v30, %v281_v29  ;;  %v283_v32 = vld [vmem:[%s806_s5 + $0x60] sm:$0xff]  ;;  %v284_v33 = vld [vmem:[%s806_s5 + $0x68] sm:$0xff]  ;;  %v285_v35 = vld [vmem:[%s806_s5 + $0x70] sm:$0xff] }
  0x2b   :  { %374 = vmatpush3.bf16.msra.mxu1 %v213_v36  ;;  %v293_v34 = vpack.c.bf16 %v284_v33, %v283_v32  ;;  %v286_v37 = vld [vmem:[%s806_s5 + $0x78] sm:$0xff]  ;;  %v359_v40 = vld [vmem:[%s805_s4] ss:$0 sm:$0xff]  ;;  %s441_s5 = smov [#allocation2]  }
  0x2c   :  { %375 = vmatprep.subr.bf16.mxu1 %v222_v56  ;;  %v294_v38 = vpack.c.bf16 %v286_v37, %v285_v35  ;;  %s349_s28 = sshll.u32 %s441_s5, 4  ;;  %s350_s28 = int_to_ptr.vmem [resolvable:$true] %s349_s28 }
  0x2d   :  { %151 = vmatpush1.bf16.msra.mxu0 %v110_v43  ;;  %s415_s4 = scalar_lea.vmem %s350_s28, 32  ;;  %p420_p1 = scmp.lt.s32.totalorder %s350_s28, %s350_s28 }
  0x2e   :  { %152 = vmatprep.subr.bf16.mxu0 %v113_v44  ;;  %p416_p0 = scmp.ne.s32.totalorder %s350_s28, %s415_s4  ;;  %p421_p2 = scmp.lt.s32.totalorder %s415_s4, %s415_s4 }
  0x2f   :  { %376 = vmatpush3.bf16.msra.mxu1 %v214_v59 }
  0x30   :  { %392 = vmatprep.subr.bf16.mxu1 %v439_v60  ;;  %p422_p3 = por %p421_p2, %p420_p1 }
  0x31   :  { %153 = vmatpush1.bf16.msra.mxu0 %v112_v47  ;;  %v360_v47 = vld [vmem:[%s807_s6] ss:$0 sm:$0xff] }
  0x32   :  { %p423_p4 = pnand %p422_p3, %p416_p0 }
  0x34   :  { %163 = vmatmul.mubr.bf16.vlgmr.msra.gmra.mrb[0].mxu0 %v40_v48 }
 0x107   :  { %v164_v4 = vpop.f32.mrb[0].mxu0 }
 0x108   :  { %v165_v5 = vadd.f32 %v164_v4, %v119_v2  ;;  %v166_v6 = vpop.f32.mrb[1].mxu0 }
 0x109   :  { %v167_v7 = vadd.f32 %v166_v6, %v123_v3  ;;  %v168_v8 = vpop.f32.mrb[2].mxu0 }
 0x10a   :  { %v171_v9 = vmax.f32 %v165_v5, 0.0  ;;  %v169_v10 = vpop.f32.mrb[3].mxu0 }
 0x10b   :  { %v172_v13 = vmax.f32 %v167_v7, 0.0 }
 0x10c   :  { %v173_v16 = vpack.c.bf16 %v171_v9, %v171_v9 }
 0x10d   :  { %v174_v14 = vpack.c.bf16 %v172_v13, %v172_v13 }
 0x10f   :  { %262 = vmatprep.mubr.bf16.mxu1 %v174_v14 }
 0x110   :  { %263 = vmatmul.mubr.bf16.vlgmr.msra.gmra.mrb[0].mxu1 %v173_v16 }
 0x111   :  { %393 = vmatpush3.bf16.msra.mxu1 %v287_v15  ;;  %408 = vmatprep.mubr.msk.bf16.mxu1 %vm440_vm1, %v439_v60 }
 0x112   :  { %394 = vmatprep.subr.bf16.mxu1 %v439_v60 }
 0x115   :  { %395 = vmatpush3.bf16.msra.mxu1 %v288_v19 }
 0x116   :  { %396 = vmatprep.subr.bf16.mxu1 %v439_v60 }
 0x119   :  { %397 = vmatpush3.bf16.msra.mxu1 %v289_v22 }
 0x11a   :  { %398 = vmatprep.subr.bf16.mxu1 %v439_v60 }
 0x11d   :  { %399 = vmatpush3.bf16.msra.mxu1 %v290_v25 }
 0x11e   :  { %400 = vmatprep.subr.bf16.mxu1 %v439_v60 }
 0x121   :  { %401 = vmatpush3.bf16.msra.mxu1 %v291_v28 }
 0x122   :  { %402 = vmatprep.subr.bf16.mxu1 %v439_v60 }
 0x125   :  { %403 = vmatpush3.bf16.msra.mxu1 %v292_v31 }
 0x126   :  { %404 = vmatprep.subr.bf16.mxu1 %v439_v60 }
 0x129   :  { %405 = vmatpush3.bf16.msra.mxu1 %v293_v34 }
 0x12a   :  { %406 = vmatprep.subr.bf16.mxu1 %v439_v60 }
 0x12d   :  { %407 = vmatpush3.bf16.msra.mxu1 %v294_v38 }
 0x1e3   :  { %v377_v39 = vpop.f32.mrb[0].mxu1 }
 0x1e4   :  { %v378_v41 = vpop.f32.mrb[1].mxu1 }
 0x1e5   :  { %v379_v42 = vadd.f32 %v378_v41, %v377_v39  ;;  %v380_v43 = vpop.f32.mrb[2].mxu1 }
 0x1e6   :  { %v381_v44 = vpop.f32.mrb[3].mxu1 }
 0x1e7   :  { %v265_v45 = vadd.f32 %v379_v42, %v359_v40 }
 0x1e9   :  { %v270_v46 = vpack.c.bf16 %v265_v45, %v265_v45 }
 0x1eb   :  { %409 = vmatmul.mubr.bf16.vlgmr.msra.gmra.mrb[4].mxu1 %v270_v46 }
 0x2be   :  { %v336_v48 = vpop.f32.mrb[4].mxu1 }
 0x2bf   :  { %v337_v49 = vadd.f32 %v360_v47, %v336_v48  ;;  %v410_v50 = vpop.f32.mrb[5].mxu1 }
 0x2c0   :  { %v339_v51 = vpop.f32.mrb[6].mxu1 }
 0x2c1   :  { %342 = vst [vmem:[#allocation2] sm:$0x3] %v337_v49  ;;  %v411_v52 = vpop.f32.mrb[7].mxu1 }
 0x2c2   :  { %426 = shalt.err (!%p423_p4)
}
 0x2c3   :  { %s427_s6 = scalar_lea.hbm %s808_s7, 32 }
 0x2c4   :  { %p428_p5 = scmp.ne.s32.totalorder %s808_s7, %s427_s6  ;;  %p431_p6 = scmp.lt.u32.totalorder %s427_s6, %s808_s7 }
 0x2c6   :  { %p433_p7 = pnand %p431_p6, %p428_p5 }
 0x2c8   :  { %436 = shalt.err (!%p433_p7)
}
 0x2c9   :  { %352 = dma.vmem_to_hbm [thread:$0]  %s350_s28, 32, %s808_s7, [#allocation3]  }
 0x2ca   :  { %437 = dma.done.wait [#allocation3], 32  }
 0x2cb   :  { %438 = vsyncadd [#allocation3], 4294967264 }
 0x2cc   :  { %356 = vsyncpa [#allocation3], 1 }

// kernel: forward.8
= control target key start
LH: loop header
LB: loop body
LE: loop exit
PB: predicated region body
PF: predicated region fallthrough
CT: control target
= control target key end

     0   :  { %v1194_v0 = vmov 0   ;;  %vm111_vm0 = vcmask 392192   ;;  %s1910_s1 = inlined_call_operand.vmem [shape: f32[432,128], index: 1, kind: input, shape index: {}]   ;;  %s1911_s0 = inlined_call_operand.vmem [shape: f32[9,8,432], index: 0, kind: input, shape index: {}]   ;;  %s1912_s2 = inlined_call_operand.vmem [shape: f32[1,128], index: 2, kind: input, shape index: {}]   ;;  %s1913_s3 = inlined_call_operand.vmem [shape: f32[8,128], index: 3, kind: output, shape index: {}]  }
   0x1   :  { %155 = vmatprep.subr.bf16.mxu1 %v1194_v0  ;;  %v31_v1 = vld [vmem:[%s1910_s1 + $0x80] sm:$0xff]  ;;  %v32_v2 = vld [vmem:[%s1910_s1 + $0x88] sm:$0xff]  ;;  %v33_v10 = vld [vmem:[%s1910_s1 + $0x90] sm:$0xff] }
   0x2   :  { %v47_v3 = vld [vmem:[%s1910_s1 + $0x100] sm:$0xff]  ;;  %v1225_v4 = vpack.c.bf16 %v32_v2, %v31_v1  ;;  %v48_v5 = vld [vmem:[%s1910_s1 + $0x108] sm:$0xff]  ;;  %v34_v11 = vld [vmem:[%s1910_s1 + $0x98] sm:$0xff] }
   0x3   :  { %v15_v6 = vld [vmem:[%s1910_s1] sm:$0xff]  ;;  %v16_v7 = vld [vmem:[%s1910_s1 + $0x8] sm:$0xff]  ;;  %v1236_v8 = vpack.c.bf16 %v48_v5, %v47_v3  ;;  %v49_v12 = vld [vmem:[%s1910_s1 + $0x110] sm:$0xff]  ;;  %v1250_v13 = vpack.c.bf16 %v34_v11, %v33_v10 }
   0x4   :  { %v1238_v9 = vpack.c.bf16 %v16_v7, %v15_v6  ;;  %995 = vmatprep.subr.bf16.mxu0 %v1225_v4  ;;  %v50_v14 = vld [vmem:[%s1910_s1 + $0x118] sm:$0xff]  ;;  %v17_v15 = vld [vmem:[%s1910_s1 + $0x10] sm:$0xff]  ;;  %v35_v19 = vld [vmem:[%s1910_s1 + $0xa0] sm:$0xff] }
   0x5   :  { %v18_v16 = vld [vmem:[%s1910_s1 + $0x18] sm:$0xff]  ;;  %156 = vmatpush1.bf16.msra.mxu1 %v1236_v8  ;;  %v1263_v17 = vpack.c.bf16 %v50_v14, %v49_v12  ;;  %v36_v20 = vld [vmem:[%s1910_s1 + $0xa8] sm:$0xff]  ;;  %v51_v21 = vld [vmem:[%s1910_s1 + $0x120] sm:$0xff] }
   0x6   :  { %996 = vmatpush3.bf16.msra.mxu0 %v1238_v9  ;;  %v1265_v18 = vpack.c.bf16 %v18_v16, %v17_v15  ;;  %157 = vmatprep.subr.bf16.mxu1 %v1194_v0  ;;  %v1278_v22 = vpack.c.bf16 %v36_v20, %v35_v19  ;;  %v52_v23 = vld [vmem:[%s1910_s1 + $0x128] sm:$0xff]  ;;  %v19_v24 = vld [vmem:[%s1910_s1 + $0x20] sm:$0xff]  ;;  %v37_v26 = vld [vmem:[%s1910_s1 + $0xb0] sm:$0xff] }
   0x7   :  { %997 = vmatprep.subr.bf16.mxu0 %v1250_v13  ;;  %v20_v25 = vld [vmem:[%s1910_s1 + $0x28] sm:$0xff]  ;;  %v38_v27 = vld [vmem:[%s1910_s1 + $0xb8] sm:$0xff]  ;;  %v1297_v28 = vpack.c.bf16 %v52_v23, %v51_v21  ;;  %v53_v30 = vld [vmem:[%s1910_s1 + $0x130] sm:$0xff] }
   0x8   :  { %v1299_v29 = vpack.c.bf16 %v20_v25, %v19_v24  ;;  %v1306_v31 = vpack.c.bf16 %v38_v27, %v37_v26  ;;  %v54_v32 = vld [vmem:[%s1910_s1 + $0x138] sm:$0xff]  ;;  %v21_v33 = vld [vmem:[%s1910_s1 + $0x30] sm:$0xff]  ;;  %v39_v35 = vld [vmem:[%s1910_s1 + $0xc0] sm:$0xff] }
   0x9   :  { %158 = vmatpush1.bf16.msra.mxu1 %v1263_v17  ;;  %v22_v34 = vld [vmem:[%s1910_s1 + $0x38] sm:$0xff]  ;;  %v40_v36 = vld [vmem:[%s1910_s1 + $0xc8] sm:$0xff]  ;;  %v1325_v37 = vpack.c.bf16 %v54_v32, %v53_v30  ;;  %v55_v39 = vld [vmem:[%s1910_s1 + $0x140] sm:$0xff] }
   0xa   :  { %998 = vmatpush3.bf16.msra.mxu0 %v1265_v18  ;;  %159 = vmatprep.subr.bf16.mxu1 %v1194_v0  ;;  %v1327_v38 = vpack.c.bf16 %v22_v34, %v21_v33  ;;  %v1334_v40 = vpack.c.bf16 %v40_v36, %v39_v35  ;;  %v56_v41 = vld [vmem:[%s1910_s1 + $0x148] sm:$0xff]  ;;  %v23_v42 = vld [vmem:[%s1910_s1 + $0x40] sm:$0xff]  ;;  %v41_v44 = vld [vmem:[%s1910_s1 + $0xd0] sm:$0xff] }
   0xb   :  { %999 = vmatprep.subr.bf16.mxu0 %v1278_v22  ;;  %v24_v43 = vld [vmem:[%s1910_s1 + $0x48] sm:$0xff]  ;;  %v42_v45 = vld [vmem:[%s1910_s1 + $0xd8] sm:$0xff]  ;;  %v1353_v46 = vpack.c.bf16 %v56_v41, %v55_v39  ;;  %v57_v48 = vld [vmem:[%s1910_s1 + $0x150] sm:$0xff] }
   0xc   :  { %v1355_v47 = vpack.c.bf16 %v24_v43, %v23_v42  ;;  %v98_v49 = vld [vmem:[%s1911_s0 + $0x8] sm:$0xff]  ;;  %v1365_v50 = vpack.c.bf16 %v42_v45, %v41_v44  ;;  %v58_v51 = vld [vmem:[%s1910_s1 + $0x158] sm:$0xff]  ;;  %v25_v52 = vld [vmem:[%s1910_s1 + $0x50] sm:$0xff] }
   0xd   :  { %160 = vmatpush1.bf16.msra.mxu1 %v1297_v28  ;;  %v26_v53 = vld [vmem:[%s1910_s1 + $0x58] sm:$0xff]  ;;  %v102_v54 = vpack.c.bf16 %v98_v49, %v98_v49  ;;  %v43_v55 = vld [vmem:[%s1910_s1 + $0xe0] sm:$0xff]  ;;  %v44_v56 = vld [vmem:[%s1910_s1 + $0xe8] sm:$0xff]  ;;  %v1387_v59 = vpack.c.bf16 %v58_v51, %v57_v48 }
   0xe   :  { %1000 = vmatpush3.bf16.msra.mxu0 %v1299_v29  ;;  %161 = vmatprep.subr.bf16.mxu1 %v1194_v0  ;;  %v100_v57 = vld [vmem:[%s1911_s0 + $0x18] sm:$0xff]  ;;  %v1389_v60 = vpack.c.bf16 %v26_v53, %v25_v52  ;;  %v59_v61 = vld [vmem:[%s1910_s1 + $0x160] sm:$0xff]  ;;  %v1396_v62 = vpack.c.bf16 %v44_v56, %v43_v55  ;;  %v60_v63 = vld [vmem:[%s1910_s1 + $0x168] sm:$0xff] }
   0xf   :  { %1001 = vmatprep.subr.bf16.mxu0 %v1306_v31  ;;  %147 = vmatprep.mubr.bf16.mxu0 %v102_v54  ;;  %v104_v58 = vpack.c.bf16 %v100_v57, %v100_v57  ;;  %v27_v1 = vld [vmem:[%s1910_s1 + $0x60] sm:$0xff]  ;;  %v28_v2 = vld [vmem:[%s1910_s1 + $0x68] sm:$0xff]  ;;  %v45_v3 = vld [vmem:[%s1910_s1 + $0xf0] sm:$0xff]  ;;  %v1416_v6 = vpack.c.bf16 %v60_v63, %v59_v61 }
  0x10   :  { %v46_v5 = vld [vmem:[%s1910_s1 + $0xf8] sm:$0xff]  ;;  %v1418_v7 = vpack.c.bf16 %v28_v2, %v27_v1  ;;  %v61_v10 = vld [vmem:[%s1910_s1 + $0x170] sm:$0xff]  ;;  %v97_v20 = vld [vmem:[%s1911_s0] sm:$0xff] }
  0x11   :  { %162 = vmatpush1.bf16.msra.mxu1 %v1325_v37  ;;  %954 = vmatprep.mubr.msk.bf16.mxu1 %vm111_vm0, %v104_v58  ;;  %v1425_v11 = vpack.c.bf16 %v46_v5, %v45_v3  ;;  %v62_v12 = vld [vmem:[%s1910_s1 + $0x178] sm:$0xff]  ;;  %v29_v14 = vld [vmem:[%s1910_s1 + $0x70] sm:$0xff]  ;;  %v63_v21 = vld [vmem:[%s1910_s1 + $0x180] sm:$0xff]  ;;  %v101_v24 = vpack.c.bf16 %v97_v20, %v97_v20 }
  0x12   :  { %1002 = vmatpush3.bf16.msra.mxu0 %v1327_v38  ;;  %163 = vmatprep.subr.bf16.mxu1 %v1194_v0  ;;  %v30_v15 = vld [vmem:[%s1910_s1 + $0x78] sm:$0xff]  ;;  %v1438_v16 = vpack.c.bf16 %v62_v12, %v61_v10  ;;  %v64_v23 = vld [vmem:[%s1910_s1 + $0x188] sm:$0xff]  ;;  %v65_v27 = vld [vmem:[%s1910_s1 + $0x190] sm:$0xff] }
  0x13   :  { %1003 = vmatprep.subr.bf16.mxu0 %v1334_v40  ;;  %v1440_v19 = vpack.c.bf16 %v30_v15, %v29_v14  ;;  %v956_v25 = vld [vmem:[%s1911_s0 + $0x28] sm:$0xff]  ;;  %v1458_v26 = vpack.c.bf16 %v64_v23, %v63_v21  ;;  %v66_v30 = vld [vmem:[%s1910_s1 + $0x198] sm:$0xff]  ;;  %v67_v34 = vld [vmem:[%s1910_s1 + $0x1a0] sm:$0xff] }
  0x14   :  { %v202_v32 = vpack.c.bf16 %v956_v25, %v956_v25  ;;  %v1470_v33 = vpack.c.bf16 %v66_v30, %v65_v27  ;;  %v68_v35 = vld [vmem:[%s1910_s1 + $0x1a8] sm:$0xff]  ;;  %v99_v39 = vld [vmem:[%s1911_s0 + $0x10] sm:$0xff]  ;;  %v958_v42 = vld [vmem:[%s1911_s0 + $0x38] sm:$0xff] }
  0x15   :  { %164 = vmatpush1.bf16.msra.mxu1 %v1353_v46  ;;  %v1482_v36 = vpack.c.bf16 %v68_v35, %v67_v34  ;;  %v103_v41 = vpack.c.bf16 %v99_v39, %v99_v39  ;;  %v204_v43 = vpack.c.bf16 %v958_v42, %v958_v42  ;;  %v955_v44 = vld [vmem:[%s1911_s0 + $0x20] sm:$0xff]  ;;  %v961_v48 = vld [vmem:[%s1911_s0 + $0x48] sm:$0xff]  ;;  %v957_v51 = vld [vmem:[%s1911_s0 + $0x30] sm:$0xff] }
  0x16   :  { %1004 = vmatpush3.bf16.msra.mxu0 %v1355_v47  ;;  %165 = vmatprep.subr.bf16.mxu1 %v1194_v0  ;;  %v201_v45 = vpack.c.bf16 %v955_v44, %v955_v44  ;;  %v296_v49 = vpack.c.bf16 %v961_v48, %v961_v48  ;;  %v203_v52 = vpack.c.bf16 %v957_v51, %v957_v51  ;;  %v963_v53 = vld [vmem:[%s1911_s0 + $0x58] sm:$0xff]  ;;  %v960_v55 = vld [vmem:[%s1911_s0 + $0x40] sm:$0xff]  ;;  %v966_v57 = vld [vmem:[%s1911_s0 + $0x68] sm:$0xff] }
  0x17   :  { %1005 = vmatprep.subr.bf16.mxu0 %v1365_v50  ;;  %v298_v54 = vpack.c.bf16 %v963_v53, %v963_v53  ;;  %v295_v56 = vpack.c.bf16 %v960_v55, %v960_v55  ;;  %v390_v58 = vpack.c.bf16 %v966_v57, %v966_v57  ;;  %v965_v61 = vld [vmem:[%s1911_s0 + $0x60] sm:$0xff]  ;;  %v968_v1 = vld [vmem:[%s1911_s0 + $0x78] sm:$0xff]  ;;  %v962_v2 = vld [vmem:[%s1911_s0 + $0x50] sm:$0xff] }
  0x18   :  { %v389_v63 = vpack.c.bf16 %v965_v61, %v965_v61  ;;  %v392_v3 = vpack.c.bf16 %v968_v1, %v968_v1  ;;  %v297_v5 = vpack.c.bf16 %v962_v2, %v962_v2  ;;  %v973_v10 = vld [vmem:[%s1911_s0 + $0x98] sm:$0xff]  ;;  %v967_v14 = vld [vmem:[%s1911_s0 + $0x70] sm:$0xff]  ;;  %v971_v20 = vld [vmem:[%s1911_s0 + $0x88] sm:$0xff] }
  0x19   :  { %166 = vmatpush1.bf16.msra.mxu1 %v1387_v59  ;;  %v486_v12 = vpack.c.bf16 %v973_v10, %v973_v10  ;;  %v391_v15 = vpack.c.bf16 %v967_v14, %v967_v14  ;;  %v972_v21 = vld [vmem:[%s1911_s0 + $0x90] sm:$0xff]  ;;  %v484_v23 = vpack.c.bf16 %v971_v20, %v971_v20  ;;  %v981_v25 = vld [vmem:[%s1911_s0 + $0xc8] sm:$0xff]  ;;  %v970_v30 = vld [vmem:[%s1911_s0 + $0x80] sm:$0xff] }
  0x1a   :  { %1006 = vmatpush3.bf16.msra.mxu0 %v1389_v60  ;;  %167 = vmatprep.subr.bf16.mxu1 %v1194_v0  ;;  %v672_v27 = vpack.c.bf16 %v981_v25, %v981_v25  ;;  %v976_v34 = vld [vmem:[%s1911_s0 + $0xa8] sm:$0xff]  ;;  %v980_v35 = vld [vmem:[%s1911_s0 + $0xc0] sm:$0xff]  ;;  %v983_v42 = vld [vmem:[%s1911_s0 + $0xd8] sm:$0xff] }
  0x1b   :  { %1007 = vmatprep.subr.bf16.mxu0 %v1396_v62  ;;  %v578_v39 = vpack.c.bf16 %v976_v34, %v976_v34  ;;  %v975_v44 = vld [vmem:[%s1911_s0 + $0xa0] sm:$0xff]  ;;  %v978_v48 = vld [vmem:[%s1911_s0 + $0xb8] sm:$0xff]  ;;  %v982_v55 = vld [vmem:[%s1911_s0 + $0xd0] sm:$0xff] }
  0x1c   :  { %v673_v57 = vpack.c.bf16 %v982_v55, %v982_v55  ;;  %v1779_v61 = vld [vmem:[%s1912_s2] ss:$0 sm:$0xff]  ;;  %v977_v14 = vld [vmem:[%s1911_s0 + $0xb0] sm:$0xff] }
  0x1d   :  { %168 = vmatpush1.bf16.msra.mxu1 %v1416_v6 }
  0x1e   :  { %1008 = vmatpush3.bf16.msra.mxu0 %v1418_v7  ;;  %169 = vmatprep.subr.bf16.mxu1 %v1194_v0 }
  0x1f   :  { %1009 = vmatprep.subr.bf16.mxu0 %v1425_v11 }
  0x21   :  { %170 = vmatpush1.bf16.msra.mxu1 %v1438_v16 }
  0x22   :  { %1010 = vmatpush3.bf16.msra.mxu0 %v1440_v19  ;;  %171 = vmatprep.subr.bf16.mxu1 %v1194_v0 }
  0x23   :  { %1017 = vmatprep.subr.bf16.mxu0 %v1225_v4 }
  0x25   :  { %148 = vmatmul.mubr.bf16.vlgmr.msra.gmra.mrb[0].mxu0 %v101_v24  ;;  %172 = vmatpush1.bf16.msra.mxu1 %v1458_v26  ;;  %v485_v24 = vpack.c.bf16 %v972_v21, %v972_v21  ;;  %v579_v21 = vpack.c.bf16 %v977_v14, %v977_v14 }
  0x26   :  { %1018 = vmatpush3.bf16.msra.mxu0 %v1238_v9  ;;  %173 = vmatprep.subr.bf16.mxu1 %v1194_v0 }
  0x27   :  { %1019 = vmatprep.subr.bf16.mxu0 %v1250_v13  ;;  %240 = vmatprep.mubr.bf16.mxu0 %v202_v32  ;;  %v483_v32 = vpack.c.bf16 %v970_v30, %v970_v30 }
  0x29   :  { %174 = vmatpush1.bf16.msra.mxu1 %v1470_v33 }
  0x2a   :  { %1020 = vmatpush3.bf16.msra.mxu0 %v1265_v18  ;;  %175 = vmatprep.subr.bf16.mxu1 %v1194_v0 }
  0x2b   :  { %1021 = vmatprep.subr.bf16.mxu0 %v1278_v22 }
  0x2d   :  { %176 = vmatpush1.bf16.msra.mxu1 %v1482_v36 }
  0x2e   :  { %1022 = vmatpush3.bf16.msra.mxu0 %v1299_v29  ;;  %248 = vmatprep.subr.bf16.mxu1 %v1194_v0 }
  0x2f   :  { %1023 = vmatprep.subr.bf16.mxu0 %v1306_v31 }
  0x30   :  { %188 = vmatmul.mubr.bf16.vlgmr.msra.gmra.mrb[0].mxu1 %v103_v41  ;;  %v671_v41 = vpack.c.bf16 %v980_v35, %v980_v35  ;;  %v993_v35 = vld [vmem:[%s1911_s0 + $0x118] sm:$0xff] }
  0x31   :  { %249 = vmatpush1.bf16.msra.mxu1 %v1236_v8  ;;  %959 = vmatprep.mubr.msk.bf16.mxu1 %vm111_vm0, %v204_v43  ;;  %v674_v43 = vpack.c.bf16 %v983_v42, %v983_v42 }
  0x32   :  { %1024 = vmatpush3.bf16.msra.mxu0 %v1327_v38  ;;  %250 = vmatprep.subr.bf16.mxu1 %v1194_v0 }
  0x33   :  { %1025 = vmatprep.subr.bf16.mxu0 %v1334_v40 }
  0x35   :  { %251 = vmatpush1.bf16.msra.mxu1 %v1263_v17 }
  0x36   :  { %1026 = vmatpush3.bf16.msra.mxu0 %v1355_v47  ;;  %252 = vmatprep.subr.bf16.mxu1 %v1194_v0 }
  0x37   :  { %1027 = vmatprep.subr.bf16.mxu0 %v1365_v50 }
  0x39   :  { %253 = vmatpush1.bf16.msra.mxu1 %v1297_v28 }
  0x3a   :  { %1028 = vmatpush3.bf16.msra.mxu0 %v1389_v60  ;;  %254 = vmatprep.subr.bf16.mxu1 %v1194_v0 }
  0x3b   :  { %1029 = vmatprep.subr.bf16.mxu0 %v1396_v62 }
  0x3d   :  { %255 = vmatpush1.bf16.msra.mxu1 %v1325_v37 }
  0x3e   :  { %1030 = vmatpush3.bf16.msra.mxu0 %v1418_v7  ;;  %256 = vmatprep.subr.bf16.mxu1 %v1194_v0 }
  0x3f   :  { %1031 = vmatprep.subr.bf16.mxu0 %v1425_v11 }
  0x41   :  { %257 = vmatpush1.bf16.msra.mxu1 %v1353_v46 }
  0x42   :  { %1032 = vmatpush3.bf16.msra.mxu0 %v1440_v19  ;;  %258 = vmatprep.subr.bf16.mxu1 %v1194_v0 }
  0x43   :  { %1039 = vmatprep.subr.bf16.mxu0 %v1225_v4 }
  0x45   :  { %241 = vmatmul.mubr.bf16.vlgmr.msra.gmra.mrb[4].mxu0 %v201_v45  ;;  %259 = vmatpush1.bf16.msra.mxu1 %v1387_v59  ;;  %v577_v45 = vpack.c.bf16 %v975_v44, %v975_v44 }
  0x46   :  { %1040 = vmatpush3.bf16.msra.mxu0 %v1238_v9  ;;  %260 = vmatprep.subr.bf16.mxu1 %v1194_v0 }
  0x47   :  { %1041 = vmatprep.subr.bf16.mxu0 %v1250_v13  ;;  %334 = vmatprep.mubr.bf16.mxu0 %v296_v49  ;;  %v580_v49 = vpack.c.bf16 %v978_v48, %v978_v48 }
  0x49   :  { %261 = vmatpush1.bf16.msra.mxu1 %v1416_v6 }
  0x4a   :  { %1042 = vmatpush3.bf16.msra.mxu0 %v1265_v18  ;;  %262 = vmatprep.subr.bf16.mxu1 %v1194_v0 }
  0x4b   :  { %1043 = vmatprep.subr.bf16.mxu0 %v1278_v22 }
  0x4d   :  { %263 = vmatpush1.bf16.msra.mxu1 %v1438_v16 }
  0x4e   :  { %1044 = vmatpush3.bf16.msra.mxu0 %v1299_v29  ;;  %264 = vmatprep.subr.bf16.mxu1 %v1194_v0 }
  0x4f   :  { %1045 = vmatprep.subr.bf16.mxu0 %v1306_v31 }
  0x51   :  { %265 = vmatpush1.bf16.msra.mxu1 %v1458_v26 }
  0x52   :  { %1046 = vmatpush3.bf16.msra.mxu0 %v1327_v38  ;;  %266 = vmatprep.subr.bf16.mxu1 %v1194_v0 }
  0x53   :  { %1047 = vmatprep.subr.bf16.mxu0 %v1334_v40 }
  0x55   :  { %267 = vmatpush1.bf16.msra.mxu1 %v1470_v33 }
  0x56   :  { %1048 = vmatpush3.bf16.msra.mxu0 %v1355_v47  ;;  %268 = vmatprep.subr.bf16.mxu1 %v1194_v0 }
  0x57   :  { %1049 = vmatprep.subr.bf16.mxu0 %v1365_v50 }
  0x59   :  { %269 = vmatpush1.bf16.msra.mxu1 %v1482_v36 }
  0x5a   :  { %1050 = vmatpush3.bf16.msra.mxu0 %v1389_v60  ;;  %342 = vmatprep.subr.bf16.mxu1 %v1194_v0 }
  0x5b   :  { %1051 = vmatprep.subr.bf16.mxu0 %v1396_v62 }
  0x5c   :  { %281 = vmatmul.mubr.bf16.vlgmr.msra.gmra.mrb[4].mxu1 %v203_v52 }
  0x5d   :  { %343 = vmatpush1.bf16.msra.mxu1 %v1236_v8  ;;  %964 = vmatprep.mubr.msk.bf16.mxu1 %vm111_vm0, %v298_v54 }
  0x5e   :  { %1052 = vmatpush3.bf16.msra.mxu0 %v1418_v7  ;;  %344 = vmatprep.subr.bf16.mxu1 %v1194_v0 }
  0x5f   :  { %1053 = vmatprep.subr.bf16.mxu0 %v1425_v11 }
  0x61   :  { %345 = vmatpush1.bf16.msra.mxu1 %v1263_v17 }
  0x62   :  { %1054 = vmatpush3.bf16.msra.mxu0 %v1440_v19  ;;  %346 = vmatprep.subr.bf16.mxu1 %v1194_v0 }
  0x63   :  { %1061 = vmatprep.subr.bf16.mxu0 %v1225_v4 }
  0x65   :  { %335 = vmatmul.mubr.bf16.vlgmr.msra.gmra.mrb[8].mxu0 %v295_v56  ;;  %347 = vmatpush1.bf16.msra.mxu1 %v1297_v28 }
  0x66   :  { %1062 = vmatpush3.bf16.msra.mxu0 %v1238_v9  ;;  %348 = vmatprep.subr.bf16.mxu1 %v1194_v0 }
  0x67   :  { %1063 = vmatprep.subr.bf16.mxu0 %v1250_v13  ;;  %428 = vmatprep.mubr.bf16.mxu0 %v390_v58  ;;  %v991_v58 = vld [vmem:[%s1911_s0 + $0x108] sm:$0xff] }
  0x69   :  { %349 = vmatpush1.bf16.msra.mxu1 %v1325_v37 }
  0x6a   :  { %1064 = vmatpush3.bf16.msra.mxu0 %v1265_v18  ;;  %350 = vmatprep.subr.bf16.mxu1 %v1194_v0 }
  0x6b   :  { %1065 = vmatprep.subr.bf16.mxu0 %v1278_v22 }
  0x6d   :  { %351 = vmatpush1.bf16.msra.mxu1 %v1353_v46 }
  0x6e   :  { %1066 = vmatpush3.bf16.msra.mxu0 %v1299_v29  ;;  %352 = vmatprep.subr.bf16.mxu1 %v1194_v0 }
  0x6f   :  { %1067 = vmatprep.subr.bf16.mxu0 %v1306_v31 }
  0x71   :  { %353 = vmatpush1.bf16.msra.mxu1 %v1387_v59 }
  0x72   :  { %1068 = vmatpush3.bf16.msra.mxu0 %v1327_v38  ;;  %354 = vmatprep.subr.bf16.mxu1 %v1194_v0 }
  0x73   :  { %1069 = vmatprep.subr.bf16.mxu0 %v1334_v40 }
  0x75   :  { %355 = vmatpush1.bf16.msra.mxu1 %v1416_v6 }
  0x76   :  { %1070 = vmatpush3.bf16.msra.mxu0 %v1355_v47  ;;  %356 = vmatprep.subr.bf16.mxu1 %v1194_v0 }
  0x77   :  { %1071 = vmatprep.subr.bf16.mxu0 %v1365_v50 }
  0x79   :  { %357 = vmatpush1.bf16.msra.mxu1 %v1438_v16 }
  0x7a   :  { %1072 = vmatpush3.bf16.msra.mxu0 %v1389_v60  ;;  %358 = vmatprep.subr.bf16.mxu1 %v1194_v0 }
  0x7b   :  { %1073 = vmatprep.subr.bf16.mxu0 %v1396_v62 }
  0x7d   :  { %359 = vmatpush1.bf16.msra.mxu1 %v1458_v26 }
  0x7e   :  { %1074 = vmatpush3.bf16.msra.mxu0 %v1418_v7  ;;  %360 = vmatprep.subr.bf16.mxu1 %v1194_v0 }
  0x7f   :  { %1075 = vmatprep.subr.bf16.mxu0 %v1425_v11 }
  0x81   :  { %361 = vmatpush1.bf16.msra.mxu1 %v1470_v33 }
  0x82   :  { %1076 = vmatpush3.bf16.msra.mxu0 %v1440_v19  ;;  %362 = vmatprep.subr.bf16.mxu1 %v1194_v0 }
  0x83   :  { %436 = vmatprep.subr.bf16.mxu0 %v1194_v0 }
  0x85   :  { %429 = vmatmul.mubr.bf16.vlgmr.msra.gmra.mrb[12].mxu0 %v389_v63  ;;  %363 = vmatpush1.bf16.msra.mxu1 %v1482_v36  ;;  %v860_v63 = vpack.c.bf16 %v991_v58, %v991_v58 }
  0x86   :  { %437 = vmatpush1.bf16.msra.mxu0 %v1236_v8  ;;  %530 = vmatprep.subr.bf16.mxu1 %v1194_v0 }
  0x87   :  { %438 = vmatprep.subr.bf16.mxu0 %v1194_v0  ;;  %969 = vmatprep.mubr.msk.bf16.mxu0 %vm111_vm0, %v392_v3 }
  0x88   :  { %375 = vmatmul.mubr.bf16.vlgmr.msra.gmra.mrb[8].mxu1 %v297_v5 }
  0x89   :  { %531 = vmatpush1.bf16.msra.mxu1 %v1236_v8  ;;  %974 = vmatprep.mubr.msk.bf16.mxu1 %vm111_vm0, %v486_v12 }
  0x8a   :  { %439 = vmatpush1.bf16.msra.mxu0 %v1263_v17  ;;  %532 = vmatprep.subr.bf16.mxu1 %v1194_v0 }
  0x8b   :  { %440 = vmatprep.subr.bf16.mxu0 %v1194_v0 }
  0x8d   :  { %533 = vmatpush1.bf16.msra.mxu1 %v1263_v17 }
  0x8e   :  { %441 = vmatpush1.bf16.msra.mxu0 %v1297_v28  ;;  %534 = vmatprep.subr.bf16.mxu1 %v1194_v0 }
  0x8f   :  { %442 = vmatprep.subr.bf16.mxu0 %v1194_v0 }
  0x91   :  { %535 = vmatpush1.bf16.msra.mxu1 %v1297_v28 }
  0x92   :  { %443 = vmatpush1.bf16.msra.mxu0 %v1325_v37  ;;  %536 = vmatprep.subr.bf16.mxu1 %v1194_v0 }
  0x93   :  { %444 = vmatprep.subr.bf16.mxu0 %v1194_v0 }
  0x95   :  { %537 = vmatpush1.bf16.msra.mxu1 %v1325_v37 }
  0x96   :  { %445 = vmatpush1.bf16.msra.mxu0 %v1353_v46  ;;  %538 = vmatprep.subr.bf16.mxu1 %v1194_v0 }
  0x97   :  { %446 = vmatprep.subr.bf16.mxu0 %v1194_v0 }
  0x99   :  { %539 = vmatpush1.bf16.msra.mxu1 %v1353_v46 }
  0x9a   :  { %447 = vmatpush1.bf16.msra.mxu0 %v1387_v59  ;;  %540 = vmatprep.subr.bf16.mxu1 %v1194_v0 }
  0x9b   :  { %448 = vmatprep.subr.bf16.mxu0 %v1194_v0 }
  0x9d   :  { %541 = vmatpush1.bf16.msra.mxu1 %v1387_v59 }
  0x9e   :  { %449 = vmatpush1.bf16.msra.mxu0 %v1416_v6  ;;  %542 = vmatprep.subr.bf16.mxu1 %v1194_v0 }
  0x9f   :  { %450 = vmatprep.subr.bf16.mxu0 %v1194_v0 }
  0xa1   :  { %543 = vmatpush1.bf16.msra.mxu1 %v1416_v6 }
  0xa2   :  { %451 = vmatpush1.bf16.msra.mxu0 %v1438_v16  ;;  %544 = vmatprep.subr.bf16.mxu1 %v1194_v0 }
  0xa3   :  { %452 = vmatprep.subr.bf16.mxu0 %v1194_v0 }
  0xa5   :  { %545 = vmatpush1.bf16.msra.mxu1 %v1438_v16 }
  0xa6   :  { %453 = vmatpush1.bf16.msra.mxu0 %v1458_v26  ;;  %546 = vmatprep.subr.bf16.mxu1 %v1194_v0 }
  0xa7   :  { %454 = vmatprep.subr.bf16.mxu0 %v1194_v0 }
  0xa9   :  { %547 = vmatpush1.bf16.msra.mxu1 %v1458_v26 }
  0xaa   :  { %455 = vmatpush1.bf16.msra.mxu0 %v1470_v33  ;;  %548 = vmatprep.subr.bf16.mxu1 %v1194_v0 }
  0xab   :  { %456 = vmatprep.subr.bf16.mxu0 %v1194_v0 }
  0xad   :  { %549 = vmatpush1.bf16.msra.mxu1 %v1470_v33 }
  0xae   :  { %457 = vmatpush1.bf16.msra.mxu0 %v1482_v36  ;;  %550 = vmatprep.subr.bf16.mxu1 %v1194_v0 }
  0xaf   :  { %1083 = vmatprep.subr.bf16.mxu0 %v1225_v4 }
  0xb1   :  { %469 = vmatmul.mubr.bf16.vlgmr.msra.gmra.mrb[16].mxu0 %v391_v15  ;;  %551 = vmatpush1.bf16.msra.mxu1 %v1482_v36 }
  0xb2   :  { %1084 = vmatpush3.bf16.msra.mxu0 %v1238_v9  ;;  %1127 = vmatprep.subr.bf16.mxu1 %v1225_v4 }
  0xb3   :  { %1085 = vmatprep.subr.bf16.mxu0 %v1250_v13  ;;  %522 = vmatprep.mubr.bf16.mxu0 %v484_v23  ;;  %v986_v23 = vld [vmem:[%s1911_s0 + $0xe8] sm:$0xff] }
  0xb4   :  { %563 = vmatmul.mubr.bf16.vlgmr.msra.gmra.mrb[12].mxu1 %v485_v24 }
  0xb5   :  { %1128 = vmatpush3.bf16.msra.mxu1 %v1238_v9  ;;  %710 = vmatprep.mubr.bf16.mxu1 %v672_v27  ;;  %v990_v27 = vld [vmem:[%s1911_s0 + $0x100] sm:$0xff] }
  0xb6   :  { %1086 = vmatpush3.bf16.msra.mxu0 %v1265_v18  ;;  %1129 = vmatprep.subr.bf16.mxu1 %v1250_v13  ;;  %v859_v34 = vpack.c.bf16 %v990_v27, %v990_v27 }
  0xb7   :  { %1087 = vmatprep.subr.bf16.mxu0 %v1278_v22 }
  0xb9   :  { %1130 = vmatpush3.bf16.msra.mxu1 %v1265_v18 }
  0xba   :  { %1088 = vmatpush3.bf16.msra.mxu0 %v1299_v29  ;;  %1131 = vmatprep.subr.bf16.mxu1 %v1278_v22 }
  0xbb   :  { %1089 = vmatprep.subr.bf16.mxu0 %v1306_v31 }
  0xbd   :  { %1132 = vmatpush3.bf16.msra.mxu1 %v1299_v29 }
  0xbe   :  { %1090 = vmatpush3.bf16.msra.mxu0 %v1327_v38  ;;  %1133 = vmatprep.subr.bf16.mxu1 %v1306_v31 }
  0xbf   :  { %1091 = vmatprep.subr.bf16.mxu0 %v1334_v40 }
  0xc1   :  { %1134 = vmatpush3.bf16.msra.mxu1 %v1327_v38 }
  0xc2   :  { %1092 = vmatpush3.bf16.msra.mxu0 %v1355_v47  ;;  %1135 = vmatprep.subr.bf16.mxu1 %v1334_v40 }
  0xc3   :  { %1093 = vmatprep.subr.bf16.mxu0 %v1365_v50 }
  0xc5   :  { %1136 = vmatpush3.bf16.msra.mxu1 %v1355_v47 }
  0xc6   :  { %1094 = vmatpush3.bf16.msra.mxu0 %v1389_v60  ;;  %1137 = vmatprep.subr.bf16.mxu1 %v1365_v50 }
  0xc7   :  { %1095 = vmatprep.subr.bf16.mxu0 %v1396_v62 }
  0xc9   :  { %1138 = vmatpush3.bf16.msra.mxu1 %v1389_v60 }
  0xca   :  { %1096 = vmatpush3.bf16.msra.mxu0 %v1418_v7  ;;  %1139 = vmatprep.subr.bf16.mxu1 %v1396_v62 }
  0xcb   :  { %1097 = vmatprep.subr.bf16.mxu0 %v1425_v11 }
  0xcd   :  { %1140 = vmatpush3.bf16.msra.mxu1 %v1418_v7 }
  0xce   :  { %1098 = vmatpush3.bf16.msra.mxu0 %v1440_v19  ;;  %1141 = vmatprep.subr.bf16.mxu1 %v1425_v11 }
  0xcf   :  { %1105 = vmatprep.subr.bf16.mxu0 %v1225_v4 }
  0xd1   :  { %523 = vmatmul.mubr.bf16.vlgmr.msra.gmra.mrb[20].mxu0 %v483_v32  ;;  %1142 = vmatpush3.bf16.msra.mxu1 %v1440_v19  ;;  %v766_v32 = vpack.c.bf16 %v986_v23, %v986_v23 }
  0xd2   :  { %1106 = vmatpush3.bf16.msra.mxu0 %v1238_v9  ;;  %718 = vmatprep.subr.bf16.mxu1 %v1194_v0 }
  0xd3   :  { %1107 = vmatprep.subr.bf16.mxu0 %v1250_v13  ;;  %616 = vmatprep.mubr.bf16.mxu0 %v578_v39  ;;  %v862_v39 = vpack.c.bf16 %v993_v35, %v993_v35 }
  0xd4   :  { %711 = vmatmul.mubr.bf16.vlgmr.msra.gmra.mrb[16].mxu1 %v671_v41 }
  0xd5   :  { %719 = vmatpush1.bf16.msra.mxu1 %v1236_v8  ;;  %984 = vmatprep.mubr.msk.bf16.mxu1 %vm111_vm0, %v674_v43 }
  0xd6   :  { %1108 = vmatpush3.bf16.msra.mxu0 %v1265_v18  ;;  %720 = vmatprep.subr.bf16.mxu1 %v1194_v0 }
  0xd7   :  { %1109 = vmatprep.subr.bf16.mxu0 %v1278_v22 }
  0xd9   :  { %721 = vmatpush1.bf16.msra.mxu1 %v1263_v17 }
  0xda   :  { %1110 = vmatpush3.bf16.msra.mxu0 %v1299_v29  ;;  %722 = vmatprep.subr.bf16.mxu1 %v1194_v0 }
  0xdb   :  { %1111 = vmatprep.subr.bf16.mxu0 %v1306_v31 }
  0xdd   :  { %723 = vmatpush1.bf16.msra.mxu1 %v1297_v28 }
  0xde   :  { %1112 = vmatpush3.bf16.msra.mxu0 %v1327_v38  ;;  %724 = vmatprep.subr.bf16.mxu1 %v1194_v0 }
  0xdf   :  { %1113 = vmatprep.subr.bf16.mxu0 %v1334_v40 }
  0xe1   :  { %725 = vmatpush1.bf16.msra.mxu1 %v1325_v37 }
  0xe2   :  { %1114 = vmatpush3.bf16.msra.mxu0 %v1355_v47  ;;  %726 = vmatprep.subr.bf16.mxu1 %v1194_v0 }
  0xe3   :  { %1115 = vmatprep.subr.bf16.mxu0 %v1365_v50 }
  0xe5   :  { %727 = vmatpush1.bf16.msra.mxu1 %v1353_v46 }
  0xe6   :  { %1116 = vmatpush3.bf16.msra.mxu0 %v1389_v60  ;;  %728 = vmatprep.subr.bf16.mxu1 %v1194_v0 }
  0xe7   :  { %1117 = vmatprep.subr.bf16.mxu0 %v1396_v62 }
  0xe9   :  { %729 = vmatpush1.bf16.msra.mxu1 %v1387_v59 }
  0xea   :  { %1118 = vmatpush3.bf16.msra.mxu0 %v1418_v7  ;;  %730 = vmatprep.subr.bf16.mxu1 %v1194_v0 }
  0xeb   :  { %1119 = vmatprep.subr.bf16.mxu0 %v1425_v11 }
  0xed   :  { %731 = vmatpush1.bf16.msra.mxu1 %v1416_v6 }
  0xee   :  { %1120 = vmatpush3.bf16.msra.mxu0 %v1440_v19  ;;  %732 = vmatprep.subr.bf16.mxu1 %v1194_v0 }
  0xef   :  { %624 = vmatprep.subr.bf16.mxu0 %v1194_v0 }
  0xf1   :  { %617 = vmatmul.mubr.bf16.vlgmr.msra.gmra.mrb[24].mxu0 %v577_v45  ;;  %733 = vmatpush1.bf16.msra.mxu1 %v1438_v16 }
  0xf2   :  { %625 = vmatpush1.bf16.msra.mxu0 %v1236_v8  ;;  %734 = vmatprep.subr.bf16.mxu1 %v1194_v0 }
  0xf3   :  { %626 = vmatprep.subr.bf16.mxu0 %v1194_v0  ;;  %979 = vmatprep.mubr.msk.bf16.mxu0 %vm111_vm0, %v580_v49 }
  0xf5   :  { %735 = vmatpush1.bf16.msra.mxu1 %v1458_v26 }
  0xf6   :  { %627 = vmatpush1.bf16.msra.mxu0 %v1263_v17  ;;  %736 = vmatprep.subr.bf16.mxu1 %v1194_v0 }
  0xf7   :  { %628 = vmatprep.subr.bf16.mxu0 %v1194_v0 }
  0xf8   :  { %v1011_v51 = vpop.f32.mrb[0].mxu0 }
  0xf9   :  { %v1012_v52 = vpop.f32.mrb[1].mxu0  ;;  %737 = vmatpush1.bf16.msra.mxu1 %v1470_v33 }
  0xfa   :  { %v1013_v53 = vadd.f32 %v1012_v52, %v1011_v51  ;;  %v1014_v54 = vpop.f32.mrb[2].mxu0  ;;  %629 = vmatpush1.bf16.msra.mxu0 %v1297_v28  ;;  %738 = vmatprep.subr.bf16.mxu1 %v1194_v0 }
  0xfb   :  { %v1015_v56 = vpop.f32.mrb[3].mxu0  ;;  %630 = vmatprep.subr.bf16.mxu0 %v1194_v0 }
  0xfc   :  { %v150_v1 = vadd.f32 %v1013_v53, %v1779_v61 }
  0xfd   :  { %739 = vmatpush1.bf16.msra.mxu1 %v1482_v36 }
  0xfe   :  { %631 = vmatpush1.bf16.msra.mxu0 %v1325_v37  ;;  %1171 = vmatprep.subr.bf16.mxu1 %v1225_v4 }
  0xff   :  { %632 = vmatprep.subr.bf16.mxu0 %v1194_v0 }
 0x100   :  { %751 = vmatmul.mubr.bf16.vlgmr.msra.gmra.mrb[20].mxu1 %v673_v57 }
 0x101   :  { %1172 = vmatpush3.bf16.msra.mxu1 %v1238_v9  ;;  %898 = vmatprep.mubr.bf16.mxu1 %v860_v63 }
 0x102   :  { %633 = vmatpush1.bf16.msra.mxu0 %v1353_v46  ;;  %1173 = vmatprep.subr.bf16.mxu1 %v1250_v13 }
 0x103   :  { %634 = vmatprep.subr.bf16.mxu0 %v1194_v0  ;;  %v189_v2 = vpop.f32.mrb[0].mxu1 }
 0x104   :  { %v1786_v3 = vadd.f32 %v189_v2, %v150_v1  ;;  %v191_v5 = vpop.f32.mrb[1].mxu1 }
 0x105   :  { %1174 = vmatpush3.bf16.msra.mxu1 %v1265_v18  ;;  %v192_v10 = vpop.f32.mrb[2].mxu1 }
 0x106   :  { %635 = vmatpush1.bf16.msra.mxu0 %v1387_v59  ;;  %1175 = vmatprep.subr.bf16.mxu1 %v1278_v22  ;;  %v193_v12 = vpop.f32.mrb[3].mxu1 }
 0x107   :  { %636 = vmatprep.subr.bf16.mxu0 %v1194_v0 }
 0x109   :  { %1176 = vmatpush3.bf16.msra.mxu1 %v1299_v29 }
 0x10a   :  { %637 = vmatpush1.bf16.msra.mxu0 %v1416_v6  ;;  %1177 = vmatprep.subr.bf16.mxu1 %v1306_v31 }
 0x10b   :  { %638 = vmatprep.subr.bf16.mxu0 %v1194_v0 }
 0x10d   :  { %1178 = vmatpush3.bf16.msra.mxu1 %v1327_v38 }
 0x10e   :  { %639 = vmatpush1.bf16.msra.mxu0 %v1438_v16  ;;  %1179 = vmatprep.subr.bf16.mxu1 %v1334_v40 }
 0x10f   :  { %640 = vmatprep.subr.bf16.mxu0 %v1194_v0 }
 0x111   :  { %1180 = vmatpush3.bf16.msra.mxu1 %v1355_v47 }
 0x112   :  { %641 = vmatpush1.bf16.msra.mxu0 %v1458_v26  ;;  %1181 = vmatprep.subr.bf16.mxu1 %v1365_v50 }
 0x113   :  { %642 = vmatprep.subr.bf16.mxu0 %v1194_v0 }
 0x115   :  { %1182 = vmatpush3.bf16.msra.mxu1 %v1389_v60 }
 0x116   :  { %643 = vmatpush1.bf16.msra.mxu0 %v1470_v33  ;;  %1183 = vmatprep.subr.bf16.mxu1 %v1396_v62 }
 0x117   :  { %644 = vmatprep.subr.bf16.mxu0 %v1194_v0 }
 0x118   :  { %v1033_v15 = vpop.f32.mrb[4].mxu0 }
 0x119   :  { %v1034_v20 = vpop.f32.mrb[5].mxu0  ;;  %1184 = vmatpush3.bf16.msra.mxu1 %v1418_v7 }
 0x11a   :  { %v1035_v24 = vadd.f32 %v1034_v20, %v1033_v15  ;;  %v1036_v25 = vpop.f32.mrb[6].mxu0  ;;  %645 = vmatpush1.bf16.msra.mxu0 %v1482_v36  ;;  %1185 = vmatprep.subr.bf16.mxu1 %v1425_v11 }
 0x11b   :  { %v1037_v30 = vpop.f32.mrb[7].mxu0  ;;  %1149 = vmatprep.subr.bf16.mxu0 %v1225_v4 }
 0x11c   :  { %v243_v4 = vadd.f32 %v1035_v24, %v1779_v61 }
 0x11d   :  { %657 = vmatmul.mubr.bf16.vlgmr.msra.gmra.mrb[28].mxu0 %v579_v21  ;;  %1186 = vmatpush3.bf16.msra.mxu1 %v1440_v19 }
 0x11e   :  { %1150 = vmatpush3.bf16.msra.mxu0 %v1238_v9  ;;  %906 = vmatprep.subr.bf16.mxu1 %v1194_v0 }
 0x11f   :  { %1151 = vmatprep.subr.bf16.mxu0 %v1250_v13  ;;  %804 = vmatprep.mubr.bf16.mxu0 %v766_v32 }
 0x120   :  { %899 = vmatmul.mubr.bf16.vlgmr.msra.gmra.mrb[24].mxu1 %v859_v34 }
 0x121   :  { %907 = vmatpush1.bf16.msra.mxu1 %v1236_v8  ;;  %994 = vmatprep.mubr.msk.bf16.mxu1 %vm111_vm0, %v862_v39 }
 0x122   :  { %1152 = vmatpush3.bf16.msra.mxu0 %v1265_v18  ;;  %908 = vmatprep.subr.bf16.mxu1 %v1194_v0 }
 0x123   :  { %1153 = vmatprep.subr.bf16.mxu0 %v1278_v22 }
 0x125   :  { %909 = vmatpush1.bf16.msra.mxu1 %v1263_v17 }
 0x126   :  { %1154 = vmatpush3.bf16.msra.mxu0 %v1299_v29  ;;  %910 = vmatprep.subr.bf16.mxu1 %v1194_v0  ;;  %v195_v29 = vmax.f32 %v1786_v3, 0.0 }
 0x127   :  { %1155 = vmatprep.subr.bf16.mxu0 %v1306_v31 }
 0x129   :  { %911 = vmatpush1.bf16.msra.mxu1 %v1297_v28 }
 0x12a   :  { %1156 = vmatpush3.bf16.msra.mxu0 %v1327_v38  ;;  %912 = vmatprep.subr.bf16.mxu1 %v1194_v0 }
 0x12b   :  { %1157 = vmatprep.subr.bf16.mxu0 %v1334_v40 }
 0x12d   :  { %913 = vmatpush1.bf16.msra.mxu1 %v1325_v37 }
 0x12e   :  { %1158 = vmatpush3.bf16.msra.mxu0 %v1355_v47  ;;  %914 = vmatprep.subr.bf16.mxu1 %v1194_v0  ;;  %v985_v47 = vld [vmem:[%s1911_s0 + $0xe0] sm:$0xff] }
 0x12f   :  { %1159 = vmatprep.subr.bf16.mxu0 %v1365_v50  ;;  %v282_v9 = vpop.f32.mrb[4].mxu1  ;;  %v765_v41 = vpack.c.bf16 %v985_v47, %v985_v47 }
 0x130   :  { %v283_v13 = vadd.f32 %v282_v9, %v243_v4  ;;  %v284_v18 = vpop.f32.mrb[5].mxu1 }
 0x131   :  { %915 = vmatpush1.bf16.msra.mxu1 %v1353_v46  ;;  %v285_v22 = vpop.f32.mrb[6].mxu1 }
 0x132   :  { %1160 = vmatpush3.bf16.msra.mxu0 %v1389_v60  ;;  %v288_v31 = vmax.f32 %v283_v13, 0.0  ;;  %916 = vmatprep.subr.bf16.mxu1 %v1194_v0  ;;  %v286_v38 = vpop.f32.mrb[7].mxu1 }
 0x133   :  { %1161 = vmatprep.subr.bf16.mxu0 %v1396_v62  ;;  %v988_v62 = vld [vmem:[%s1911_s0 + $0xf8] sm:$0xff] }
 0x134   :  { %v289_v40 = vmax.f32 %v195_v29, %v288_v31  ;;  %v768_v44 = vpack.c.bf16 %v988_v62, %v988_v62 }
 0x135   :  { %917 = vmatpush1.bf16.msra.mxu1 %v1387_v59 }
 0x136   :  { %1162 = vmatpush3.bf16.msra.mxu0 %v1418_v7  ;;  %918 = vmatprep.subr.bf16.mxu1 %v1194_v0 }
 0x137   :  { %1163 = vmatprep.subr.bf16.mxu0 %v1425_v11 }
 0x138   :  { %v1055_v50 = vpop.f32.mrb[8].mxu0 }
 0x139   :  { %v1056_v60 = vpop.f32.mrb[9].mxu0  ;;  %919 = vmatpush1.bf16.msra.mxu1 %v1416_v6 }
 0x13a   :  { %v1057_v42 = vadd.f32 %v1056_v60, %v1055_v50  ;;  %v1058_v43 = vpop.f32.mrb[10].mxu0  ;;  %1164 = vmatpush3.bf16.msra.mxu0 %v1440_v19  ;;  %920 = vmatprep.subr.bf16.mxu1 %v1194_v0 }
 0x13b   :  { %v1059_v7 = vpop.f32.mrb[11].mxu0  ;;  %812 = vmatprep.subr.bf16.mxu0 %v1194_v0 }
 0x13d   :  { %805 = vmatmul.mubr.bf16.vlgmr.msra.gmra.mrb[32].mxu0 %v765_v41  ;;  %921 = vmatpush1.bf16.msra.mxu1 %v1438_v16 }
 0x13e   :  { %813 = vmatpush1.bf16.msra.mxu0 %v1236_v8  ;;  %922 = vmatprep.subr.bf16.mxu1 %v1194_v0  ;;  %v992_v8 = vld [vmem:[%s1911_s0 + $0x110] sm:$0xff] }
 0x13f   :  { %814 = vmatprep.subr.bf16.mxu0 %v1194_v0  ;;  %989 = vmatprep.mubr.msk.bf16.mxu0 %vm111_vm0, %v768_v44  ;;  %v861_v11 = vpack.c.bf16 %v992_v8, %v992_v8 }
 0x141   :  { %923 = vmatpush1.bf16.msra.mxu1 %v1458_v26 }
 0x142   :  { %815 = vmatpush1.bf16.msra.mxu0 %v1263_v17  ;;  %924 = vmatprep.subr.bf16.mxu1 %v1194_v0 }
 0x143   :  { %816 = vmatprep.subr.bf16.mxu0 %v1194_v0 }
 0x145   :  { %925 = vmatpush1.bf16.msra.mxu1 %v1470_v33 }
 0x146   :  { %817 = vmatpush1.bf16.msra.mxu0 %v1297_v28  ;;  %926 = vmatprep.subr.bf16.mxu1 %v1194_v0 }
 0x147   :  { %818 = vmatprep.subr.bf16.mxu0 %v1194_v0 }
 0x149   :  { %927 = vmatpush1.bf16.msra.mxu1 %v1482_v36 }
 0x14a   :  { %819 = vmatpush1.bf16.msra.mxu0 %v1325_v37  ;;  %v337_v37 = vadd.f32 %v1057_v42, %v1779_v61 }
 0x14b   :  { %820 = vmatprep.subr.bf16.mxu0 %v1194_v0 }
 0x14c   :  { %939 = vmatmul.mubr.bf16.vlgmr.msra.gmra.mrb[28].mxu1 %v861_v11 }
 0x14e   :  { %821 = vmatpush1.bf16.msra.mxu0 %v1353_v46 }
 0x14f   :  { %822 = vmatprep.subr.bf16.mxu0 %v1194_v0 }
 0x152   :  { %823 = vmatpush1.bf16.msra.mxu0 %v1387_v59 }
 0x153   :  { %824 = vmatprep.subr.bf16.mxu0 %v1194_v0 }
 0x156   :  { %825 = vmatpush1.bf16.msra.mxu0 %v1416_v6 }
 0x157   :  { %826 = vmatprep.subr.bf16.mxu0 %v1194_v0 }
 0x158   :  { %v1077_v17 = vpop.f32.mrb[12].mxu0 }
 0x159   :  { %v1078_v28 = vpop.f32.mrb[13].mxu0 }
 0x15a   :  { %v1079_v19 = vadd.f32 %v1078_v28, %v1077_v17  ;;  %v1080_v45 = vpop.f32.mrb[14].mxu0  ;;  %827 = vmatpush1.bf16.msra.mxu0 %v1438_v16  ;;  %v987_v16 = vld [vmem:[%s1911_s0 + $0xf0] sm:$0xff] }
 0x15b   :  { %v1081_v48 = vpop.f32.mrb[15].mxu0  ;;  %828 = vmatprep.subr.bf16.mxu0 %v1194_v0  ;;  %v376_v46 = vpop.f32.mrb[8].mxu1  ;;  %v767_v54 = vpack.c.bf16 %v987_v16, %v987_v16 }
 0x15c   :  { %v377_v49 = vadd.f32 %v376_v46, %v337_v37  ;;  %v378_v59 = vpop.f32.mrb[9].mxu1 }
 0x15d   :  { %v379_v51 = vpop.f32.mrb[10].mxu1 }
 0x15e   :  { %829 = vmatpush1.bf16.msra.mxu0 %v1458_v26  ;;  %v382_v6 = vmax.f32 %v377_v49, 0.0  ;;  %v380_v52 = vpop.f32.mrb[11].mxu1  ;;  %v431_v26 = vadd.f32 %v1079_v19, %v1779_v61 }
 0x15f   :  { %830 = vmatprep.subr.bf16.mxu0 %v1194_v0 }
 0x160   :  { %v383_v53 = vmax.f32 %v289_v40, %v382_v6 }
 0x162   :  { %831 = vmatpush1.bf16.msra.mxu0 %v1470_v33 }
 0x163   :  { %832 = vmatprep.subr.bf16.mxu0 %v1194_v0 }
 0x166   :  { %833 = vmatpush1.bf16.msra.mxu0 %v1482_v36 }
 0x169   :  { %845 = vmatmul.mubr.bf16.vlgmr.msra.gmra.mrb[36].mxu0 %v767_v54 }
 0x184   :  { %v470_v55 = vpop.f32.mrb[16].mxu0 }
 0x185   :  { %v471_v56 = vadd.f32 %v470_v55, %v431_v26  ;;  %v472_v57 = vpop.f32.mrb[17].mxu0 }
 0x186   :  { %v473_v58 = vpop.f32.mrb[18].mxu0 }
 0x187   :  { %v476_v63 = vmax.f32 %v471_v56, 0.0  ;;  %v474_v1 = vpop.f32.mrb[19].mxu0  ;;  %v564_v2 = vpop.f32.mrb[12].mxu1 }
 0x188   :  { %v566_v3 = vpop.f32.mrb[13].mxu1 }
 0x189   :  { %v477_v33 = vmax.f32 %v383_v53, %v476_v63  ;;  %v567_v5 = vpop.f32.mrb[14].mxu1 }
 0x18a   :  { %v568_v10 = vpop.f32.mrb[15].mxu1 }
 0x1a4   :  { %v1099_v12 = vpop.f32.mrb[20].mxu0 }
 0x1a5   :  { %v1100_v14 = vpop.f32.mrb[21].mxu0 }
 0x1a6   :  { %v1101_v0 = vadd.f32 %v1100_v14, %v1099_v12  ;;  %v1102_v15 = vpop.f32.mrb[22].mxu0 }
 0x1a7   :  { %v1103_v20 = vpop.f32.mrb[23].mxu0  ;;  %v1143_v21 = vpop.f32.mrb[16].mxu1 }
 0x1a8   :  { %v525_v36 = vadd.f32 %v1101_v0, %v1779_v61  ;;  %v1144_v23 = vpop.f32.mrb[17].mxu1 }
 0x1a9   :  { %v1145_v25 = vadd.f32 %v1144_v23, %v1143_v21  ;;  %v1146_v27 = vpop.f32.mrb[18].mxu1 }
 0x1aa   :  { %v565_v24 = vadd.f32 %v564_v2, %v525_v36  ;;  %v1147_v30 = vpop.f32.mrb[19].mxu1 }
 0x1ab   :  { %v713_v18 = vadd.f32 %v1145_v25, %v1779_v61 }
 0x1ac   :  { %v570_v32 = vmax.f32 %v565_v24, 0.0 }
 0x1ae   :  { %v571_v34 = vmax.f32 %v477_v33, %v570_v32 }
 0x1c4   :  { %v1121_v35 = vpop.f32.mrb[24].mxu0 }
 0x1c5   :  { %v1122_v39 = vpop.f32.mrb[25].mxu0 }
 0x1c6   :  { %v1123_v4 = vadd.f32 %v1122_v39, %v1121_v35  ;;  %v1124_v9 = vpop.f32.mrb[26].mxu0 }
 0x1c7   :  { %v1125_v13 = vpop.f32.mrb[27].mxu0 }
 0x1c8   :  { %v619_v47 = vadd.f32 %v1123_v4, %v1779_v61 }
 0x1d3   :  { %v752_v22 = vpop.f32.mrb[20].mxu1 }
 0x1d4   :  { %v753_v29 = vadd.f32 %v752_v22, %v713_v18  ;;  %v754_v31 = vpop.f32.mrb[21].mxu1 }
 0x1d5   :  { %v755_v38 = vpop.f32.mrb[22].mxu1 }
 0x1d6   :  { %v756_v40 = vpop.f32.mrb[23].mxu1  ;;  %v758_v44 = vmax.f32 %v753_v29, 0.0 }
 0x1f0   :  { %v658_v50 = vpop.f32.mrb[28].mxu0 }
 0x1f1   :  { %v659_v60 = vadd.f32 %v658_v50, %v619_v47  ;;  %v660_v41 = vpop.f32.mrb[29].mxu0 }
 0x1f2   :  { %v661_v62 = vpop.f32.mrb[30].mxu0 }
 0x1f3   :  { %v664_v42 = vmax.f32 %v659_v60, 0.0  ;;  %v662_v43 = vpop.f32.mrb[31].mxu0  ;;  %v1187_v7 = vpop.f32.mrb[24].mxu1 }
 0x1f4   :  { %v1188_v11 = vpop.f32.mrb[25].mxu1 }
 0x1f5   :  { %v665_v8 = vmax.f32 %v571_v34, %v664_v42  ;;  %v1189_v17 = vadd.f32 %v1188_v11, %v1187_v7  ;;  %v1190_v28 = vpop.f32.mrb[26].mxu1 }
 0x1f6   :  { %v1191_v19 = vpop.f32.mrb[27].mxu1 }
 0x1f7   :  { %v759_v45 = vmax.f32 %v665_v8, %v758_v44  ;;  %v901_v51 = vadd.f32 %v1189_v17, %v1779_v61 }
 0x210   :  { %v1165_v37 = vpop.f32.mrb[32].mxu0 }
 0x211   :  { %v1166_v48 = vpop.f32.mrb[33].mxu0 }
 0x212   :  { %v1167_v46 = vadd.f32 %v1166_v48, %v1165_v37  ;;  %v1168_v49 = vpop.f32.mrb[34].mxu0 }
 0x213   :  { %v1169_v59 = vpop.f32.mrb[35].mxu0 }
 0x214   :  { %v807_v26 = vadd.f32 %v1167_v46, %v1779_v61 }
 0x21f   :  { %v940_v6 = vpop.f32.mrb[28].mxu1 }
 0x220   :  { %v941_v52 = vadd.f32 %v940_v6, %v901_v51  ;;  %v942_v53 = vpop.f32.mrb[29].mxu1 }
 0x221   :  { %v943_v16 = vpop.f32.mrb[30].mxu1 }
 0x222   :  { %v944_v54 = vpop.f32.mrb[31].mxu1  ;;  %v946_v2 = vmax.f32 %v941_v52, 0.0 }
 0x23c   :  { %v846_v55 = vpop.f32.mrb[36].mxu0 }
 0x23d   :  { %v847_v56 = vadd.f32 %v846_v55, %v807_v26  ;;  %v848_v57 = vpop.f32.mrb[37].mxu0 }
 0x23e   :  { %v849_v58 = vpop.f32.mrb[38].mxu0 }
 0x23f   :  { %v852_v63 = vmax.f32 %v847_v56, 0.0  ;;  %v850_v1 = vpop.f32.mrb[39].mxu0 }
 0x241   :  { %v853_v33 = vmax.f32 %v759_v45, %v852_v63 }
 0x243   :  { %v947_v3 = vmax.f32 %v853_v33, %v946_v2 }
 0x245   :  { %948 = vst [vmem:[%s1913_s3] sm:$0xff] %v947_v3 }

</bundles_post_ra>
